<compile_context>
chip_gen: v5e
topology: v5e:2x2
jax: 0.10.0
libtpu: 0.0.40
codegen_flags: <defaults>
</compile_context>

<pallas_src>
import functools

import numpy as np
import jax
import jax.numpy as jnp
from jax import lax
from jax.experimental import pallas as pl
from jax.experimental.pallas import tpu as pltpu


# ----------------------------------------------------------------------------
# Fused Pallas kernel
# ----------------------------------------------------------------------------

def _fused_attn_upsample_kernel(x_ref, ut_ref, stap_ref, wq_ref, bq_ref,
                                wql_ref, wkv_ref, bkv_ref, wvl_ref, bvl_ref,
                                wp_ref, bp_ref, o_ref,
                                *, nh, kd, d, nh_kd, n_taps, scale):
    """One (batch, N2-tile) block of the whole Attention4DUpsample forward.

    x_ref   : (1, C, N)            input feature map (channel-major, flattened)
    ut_ref  : (N, TILE)            bilinear-x2 (align_corners) operator chunk
    stap_ref: (9, N, TILE) bf16    0/1 scatter matrices of ConvT(k=3,s=2,p=1,op=1)
    wq/bq   : (nh*kd, C), (nh*kd,1)  q proj 1x1 (+BN, + folded local bias)
    wql     : (C, 9)               q local depthwise tap weights
    wkv/bkv : (nh*kd+dh, C), (.,1) fused k & v 1x1 convs (+BN)
    wvl/bvl : (dh, 9), (dh, 1)     v_local depthwise taps with its BN folded in
    wp/bp   : (out_dim, dh), (.,1) output projection 1x1 (+BN)
    o_ref   : (1, out_dim, TILE)   lane-dense output chunk
    """
    f32 = jnp.float32
    x = x_ref[0]                                              # (C, N)
    C = x.shape[0]
    tile = ut_ref.shape[1]
    dh = wvl_ref.shape[0]
    out_dim = wp_ref.shape[0]

    # ---- k / v : fused 1x1 convs (BN folded); x is read once per step ----
    kv = jnp.dot(wkv_ref[...], x, preferred_element_type=f32) + bkv_ref[...]
    k = kv[:nh_kd, :]                                         # (nh*kd, N)
    v = kv[nh_kd:, :]                                         # (dh,    N)

    # ---- q path: bilinear x2 upsample as one matmul (pool_q) ----
    qsum = jnp.dot(x, ut_ref[...], preferred_element_type=f32)   # (C, tile)

    # ---- both depthwise transposed-conv stencils, one matmul per tap ----
    vloc = jnp.zeros((dh, tile), f32)
    xv = jnp.concatenate([x, v], axis=0)                      # (C + dh, N)
    for t in range(n_taps):                                   # static 9-tap unroll
        scat = stap_ref[t].astype(f32)                        # (N, tile), 0/1
        xvs = jnp.dot(xv, scat, preferred_element_type=f32)   # (C + dh, tile)
        qsum = qsum + wql_ref[:, t:t + 1] * xvs[:C, :]        # local_q taps
        vloc = vloc + wvl_ref[:, t:t + 1] * xvs[C:, :]        # v_local taps (BN folded)
    vloc = vloc + bvl_ref[...]

    # q = Conv1x1+BN applied to (local_q + pool_q); local bias folded into bq
    q = jnp.dot(wq_ref[...], qsum, preferred_element_type=f32) + bq_ref[...]

    # ---- attention per head; accumulate the output projection directly ----
    y = jnp.zeros((out_dim, tile), f32)
    for h in range(nh):                                       # static unroll, nh small
        q_h = q[h * kd:(h + 1) * kd, :]                       # (kd, tile)
        k_h = k[h * kd:(h + 1) * kd, :]                       # (kd, N)
        v_h = v[h * d:(h + 1) * d, :]                         # (d,  N)

        # s[tile, N] = q_h^T @ k_h  (contract kd)
        s = lax.dot_general(q_h, k_h, (((0,), (0,)), ((), ())),
                            preferred_element_type=f32) * scale
        s = s - jnp.max(s, axis=-1, keepdims=True)
        p = jnp.exp(s)
        denom = jnp.sum(p, axis=-1, keepdims=True)
        p = p * pl.reciprocal(denom, approx=True)             # EUP, not VPU divide

        # o^T[d, tile] = v_h @ p^T (contract N axes)
        o_t = lax.dot_general(v_h, p, (((1,), (1,)), ((), ())),
                              preferred_element_type=f32)
        act = jnp.maximum(o_t + vloc[h * d:(h + 1) * d, :], 0.0)
        y = y + jnp.dot(wp_ref[:, h * d:(h + 1) * d], act,
                        preferred_element_type=f32)

    o_ref[0] = (y + bp_ref[...]).astype(o_ref.dtype)


# ----------------------------------------------------------------------------
# Pallas wrapper
# ----------------------------------------------------------------------------

def attention4d_upsample_pallas(x_flat, ut, staps, wq, bq, wql, wkv, bkv,
                                wvl, bvl, wp, bp, *, nh, kd, d, scale):
    """x_flat: (B, C, N) -> (B, out_dim, N2)."""
    B, C, N = x_flat.shape
    N2 = ut.shape[1]
    nh_kd = nh * kd
    dh = nh * d
    out_dim = wp.shape[0]
    n_taps = staps.shape[0]

    # 128-lane query/output tiles when possible (full-width stores, low vreg
    # pressure); otherwise fall back to the full N2 extent.
    tile = 128 if N2 % 128 == 0 else N2
    n_tiles = N2 // tile

    kernel = functools.partial(_fused_attn_upsample_kernel, nh=nh, kd=kd, d=d,
                               nh_kd=nh_kd, n_taps=n_taps, scale=scale)
    return pl.pallas_call(
        kernel,
        out_shape=jax.ShapeDtypeStruct((B, out_dim, N2), jnp.float32),
        grid=(B, n_tiles),
        in_specs=[
            pl.BlockSpec((1, C, N), lambda b, j: (b, 0, 0)),
            pl.BlockSpec((N, tile), lambda b, j: (0, j)),
            pl.BlockSpec((n_taps, N, tile), lambda b, j: (0, 0, j)),
            pl.BlockSpec((nh_kd, C), lambda b, j: (0, 0)),
            pl.BlockSpec((nh_kd, 1), lambda b, j: (0, 0)),
            pl.BlockSpec((C, n_taps), lambda b, j: (0, 0)),
            pl.BlockSpec((nh_kd + dh, C), lambda b, j: (0, 0)),
            pl.BlockSpec((nh_kd + dh, 1), lambda b, j: (0, 0)),
            pl.BlockSpec((dh, n_taps), lambda b, j: (0, 0)),
            pl.BlockSpec((dh, 1), lambda b, j: (0, 0)),
            pl.BlockSpec((out_dim, dh), lambda b, j: (0, 0)),
            pl.BlockSpec((out_dim, 1), lambda b, j: (0, 0)),
        ],
        out_specs=pl.BlockSpec((1, out_dim, tile), lambda b, j: (b, 0, j)),
        compiler_params=pltpu.CompilerParams(
            dimension_semantics=("parallel", "parallel")),
    )(x_flat, ut, staps, wq, bq.reshape(nh_kd, 1), wql,
      wkv, bkv.reshape(nh_kd + dh, 1), wvl, bvl.reshape(dh, 1),
      wp, bp.reshape(out_dim, 1))


# ----------------------------------------------------------------------------
# Trace-time spatial operator constants (depend only on H, W)
# ----------------------------------------------------------------------------

def _bilinear_matrix_1d(n_in, n_out):
    """1-D bilinear resize matrix with align_corners=True."""
    if n_in == 1:
        return np.ones((n_out, 1), np.float32)
    src = np.arange(n_out, dtype=np.float64) * (n_in - 1) / (n_out - 1)
    i0 = np.clip(np.floor(src).astype(np.int64), 0, n_in - 2)
    frac = src - i0
    m = np.zeros((n_out, n_in), np.float64)
    m[np.arange(n_out), i0] += 1.0 - frac
    m[np.arange(n_out), i0 + 1] += frac
    return m.astype(np.float32)


def _build_spatial_operators(H, W):
    """Returns:
       UT (N, N2) f32 : x_flat @ UT == bilinear x2 upsample (align_corners)
       S  (9, N, N2)  : 0/1 scatter matrices of ConvTranspose2d(k=3, s=2, p=1,
                        output_padding=1); out = sum_t w[:,t] * (x_flat @ S[t]).
    """
    Ho, Wo = 2 * H, 2 * W
    N, N2 = H * W, Ho * Wo
    Mh = _bilinear_matrix_1d(H, Ho)            # (Ho, H)
    Mw = _bilinear_matrix_1d(W, Wo)            # (Wo, W)
    UT = np.ascontiguousarray(np.kron(Mh, Mw).T)   # (N, N2)

    S = np.zeros((9, N, N2), np.float32)
    for ky in range(3):
        for kx in range(3):
            t = ky * 3 + kx
            for iy in range(H):
                oy = 2 * iy - 1 + ky           # stride*i - padding + k
                if not (0 <= oy < Ho):
                    continue
                for ix in range(W):
                    ox = 2 * ix - 1 + kx
                    if not (0 <= ox < Wo):
                        continue
                    S[t, iy * W + ix, oy * Wo + ox] = 1.0
    return UT, S


# ----------------------------------------------------------------------------
# Eval-mode BatchNorm folding helpers
# ----------------------------------------------------------------------------

def fold_bn_into_pointwise(conv_w, conv_b, bn, eps=1e-5):
    """Fold eval-mode BatchNorm2d into a 1x1 conv.  conv_w: (Cout, Cin, 1, 1).
    Returns channel-major weight (Cout, Cin) and bias (Cout,)."""
    gamma, beta, mean, var = bn
    scale = gamma / jnp.sqrt(var + eps)
    w_mat = conv_w[:, :, 0, 0] * scale[:, None]
    b = (conv_b - mean) * scale + beta
    return w_mat, b


# ----------------------------------------------------------------------------
# Parameter init (deterministic, synthetic)
# ----------------------------------------------------------------------------

def _bn_params(key, c):
    k1, k2, k3, k4 = jax.random.split(key, 4)
    gamma = 1.0 + 0.1 * jax.random.normal(k1, (c,), jnp.float32)
    beta = 0.05 * jax.random.normal(k2, (c,), jnp.float32)
    mean = 0.05 * jax.random.normal(k3, (c,), jnp.float32)
    var = 0.5 + 0.5 * jax.random.uniform(k4, (c,), jnp.float32)
    return gamma, beta, mean, var


def init_params(key, cfg):
    dim, kd, nh, d, out_dim = (cfg["dim"], cfg["key_dim"], cfg["num_heads"],
                               cfg["d"], cfg["out_dim"])
    nh_kd, dh = nh * kd, nh * d
    ks = jax.random.split(key, 20)
    p = {}
    # UpLGQuery.local : depthwise ConvTranspose2d(dim, dim, 3, s=2, groups=dim)
    p["q_local_w"] = 0.1 * jax.random.normal(ks[0], (dim, 1, 3, 3), jnp.float32)
    p["q_local_b"] = 0.05 * jax.random.normal(ks[1], (dim,), jnp.float32)
    # UpLGQuery.proj : Conv2d(dim, nh*kd, 1) + BN
    p["q_proj_w"] = 0.1 * jax.random.normal(ks[2], (nh_kd, dim, 1, 1), jnp.float32)
    p["q_proj_b"] = 0.05 * jax.random.normal(ks[3], (nh_kd,), jnp.float32)
    p["q_proj_bn"] = _bn_params(ks[4], nh_kd)
    # k : Conv2d(dim, nh*kd, 1) + BN
    p["k_w"] = 0.1 * jax.random.normal(ks[5], (nh_kd, dim, 1, 1), jnp.float32)
    p["k_b"] = 0.05 * jax.random.normal(ks[6], (nh_kd,), jnp.float32)
    p["k_bn"] = _bn_params(ks[7], nh_kd)
    # v : Conv2d(dim, nh*d, 1) + BN
    p["v_w"] = 0.1 * jax.random.normal(ks[8], (dh, dim, 1, 1), jnp.float32)
    p["v_b"] = 0.05 * jax.random.normal(ks[9], (dh,), jnp.float32)
    p["v_bn"] = _bn_params(ks[10], dh)
    # v_local : depthwise ConvTranspose2d(dh, dh, 3, s=2, groups=dh) + BN
    p["vl_w"] = 0.1 * jax.random.normal(ks[11], (dh, 1, 3, 3), jnp.float32)
    p["vl_b"] = 0.05 * jax.random.normal(ks[12], (dh,), jnp.float32)
    p["vl_bn"] = _bn_params(ks[13], dh)
    # proj : ReLU -> Conv2d(dh, out_dim, 1) + BN
    p["proj_w"] = 0.1 * jax.random.normal(ks[14], (out_dim, dh, 1, 1), jnp.float32)
    p["proj_b"] = 0.05 * jax.random.normal(ks[15], (out_dim,), jnp.float32)
    p["proj_bn"] = _bn_params(ks[16], out_dim)
    return p


# ----------------------------------------------------------------------------
# Forward pass (mirrors Attention4DUpsample.forward; this spec of the module
# has no attention_biases term; requires resolution2 == 2 * resolution)
# ----------------------------------------------------------------------------

def attention4d_upsample_forward(x, p, cfg):
    B, C, H, W = x.shape
    nh, kd, d = cfg["num_heads"], cfg["key_dim"], cfg["d"]
    out_dim = cfg["out_dim"]
    nh_kd, dh = nh * kd, nh * d
    N = H * W
    scale = kd ** (-0.5)

    # Spatial operators (bilinear x2 matmul + ConvTranspose scatter taps).
    ut_np, s_np = _build_spatial_operators(H, W)
    ut = jnp.asarray(ut_np, jnp.float32)
    # 0/1 values are exact in bf16 -> lossless, halves the dominant DMA stream.
    staps = jnp.asarray(s_np, jnp.bfloat16)

    # ---- fold eval-mode BN into the 1x1 convs (channel-major weights) ----
    wq, bq = fold_bn_into_pointwise(p["q_proj_w"], p["q_proj_b"], p["q_proj_bn"])
    wk, bk = fold_bn_into_pointwise(p["k_w"], p["k_b"], p["k_bn"])
    wv, bv = fold_bn_into_pointwise(p["v_w"], p["v_b"], p["v_bn"])
    wkv = jnp.concatenate([wk, wv], axis=0)                   # (nh_kd + dh, C)
    bkv = jnp.concatenate([bk, bv], axis=0)
    wp, bp = fold_bn_into_pointwise(p["proj_w"], p["proj_b"], p["proj_bn"])

    # q-local depthwise ConvTranspose taps; its bias folds into the q 1x1 bias.
    wql = p["q_local_w"][:, 0].reshape(C, 9)
    bq_eff = bq + wq @ p["q_local_b"]

    # v_local depthwise ConvTranspose taps with its eval-mode BN folded in.
    gamma, beta, mean, var = p["vl_bn"]
    s_bn = gamma / jnp.sqrt(var + 1e-5)
    wvl = p["vl_w"][:, 0].reshape(dh, 9) * s_bn[:, None]
    bvl = s_bn * (p["vl_b"] - mean) + beta

    x_flat = x.reshape(B, C, N)
    out = attention4d_upsample_pallas(
        x_flat, ut, staps, wq, bq_eff, wql, wkv, bkv, wvl, bvl, wp, bp,
        nh=nh, kd=kd, d=d, scale=scale)
    return out.reshape(B, out_dim, 2 * H, 2 * W)


# ----------------------------------------------------------------------------

if __name__ == "__main__":
    # Small config consistent with the module (resolution2 == 2 * resolution,
    # as required by the reshape in forward).
    cfg = dict(dim=32, key_dim=8, num_heads=2, attn_ratio=2, out_dim=24)
    cfg["d"] = int(cfg["attn_ratio"] * cfg["key_dim"])          # 16
    B, H = 2, 8                                                 # resolution = 8

    key = jax.random.PRNGKey(0)
    kx, kp = jax.random.split(key)
    x = jax.random.normal(kx, (B, cfg["dim"], H, H), jnp.float32)
    params = init_params(kp, cfg)

    fwd = jax.jit(functools.partial(attention4d_upsample_forward, cfg=cfg))
    out = fwd(x, params)
    out = jax.block_until_ready(out)

    assert out.shape == (B, cfg["out_dim"], 2 * H, 2 * H), out.shape
    assert bool(jnp.all(jnp.isfinite(out)))
    print("KERNEL_OK")
</pallas_src>

<mosaic_0001>
module attributes {stable_mosaic.version = 11 : i64} {
  func.func @_fused_attn_upsample_kernel(%arg0: i32, %arg1: i32, %arg2: memref<1x32x64xf32, #tpu.memory_space<vmem>>, %arg3: memref<64x128xf32, #tpu.memory_space<vmem>>, %arg4: memref<9x64x128xbf16, #tpu.memory_space<vmem>>, %arg5: memref<16x32xf32, #tpu.memory_space<vmem>>, %arg6: memref<16x1xf32, #tpu.memory_space<vmem>>, %arg7: memref<32x9xf32, #tpu.memory_space<vmem>>, %arg8: memref<48x32xf32, #tpu.memory_space<vmem>>, %arg9: memref<48x1xf32, #tpu.memory_space<vmem>>, %arg10: memref<32x9xf32, #tpu.memory_space<vmem>>, %arg11: memref<32x1xf32, #tpu.memory_space<vmem>>, %arg12: memref<24x32xf32, #tpu.memory_space<vmem>>, %arg13: memref<24x1xf32, #tpu.memory_space<vmem>>, %arg14: memref<1x24x128xf32, #tpu.memory_space<vmem>>) attributes {dimension_semantics = [#tpu.dimension_semantics<parallel>, #tpu.dimension_semantics<parallel>], iteration_bounds = array<i64: 2, 2>, scalar_prefetch = 0 : i64, scratch_operands = 0 : i64, tpu.core_type = #tpu.core_type<tc>, window_params = [{transform_indices = @transform_0, window_bounds = array<i64: 1, 32, 64>}, {transform_indices = @transform_1, window_bounds = array<i64: 64, 128>}, {transform_indices = @transform_2, window_bounds = array<i64: 9, 64, 128>}, {pipeline_mode = #tpu.pipeline_mode<synchronous>, transform_indices = @transform_3, window_bounds = array<i64: 16, 32>}, {pipeline_mode = #tpu.pipeline_mode<synchronous>, transform_indices = @transform_4, window_bounds = array<i64: 16, 1>}, {pipeline_mode = #tpu.pipeline_mode<synchronous>, transform_indices = @transform_5, window_bounds = array<i64: 32, 9>}, {pipeline_mode = #tpu.pipeline_mode<synchronous>, transform_indices = @transform_6, window_bounds = array<i64: 48, 32>}, {pipeline_mode = #tpu.pipeline_mode<synchronous>, transform_indices = @transform_7, window_bounds = array<i64: 48, 1>}, {pipeline_mode = #tpu.pipeline_mode<synchronous>, transform_indices = @transform_8, window_bounds = array<i64: 32, 9>}, {pipeline_mode = #tpu.pipeline_mode<synchronous>, transform_indices = @transform_9, window_bounds = array<i64: 32, 1>}, {pipeline_mode = #tpu.pipeline_mode<synchronous>, transform_indices = @transform_10, window_bounds = array<i64: 24, 32>}, {pipeline_mode = #tpu.pipeline_mode<synchronous>, transform_indices = @transform_11, window_bounds = array<i64: 24, 1>}, {transform_indices = @transform_12, window_bounds = array<i64: 1, 24, 128>}]} {
    %c0 = arith.constant 0 : index
    %c0_0 = arith.constant 0 : index
    %c0_1 = arith.constant 0 : index
    %0 = vector.load %arg2[%c0, %c0_0, %c0_1] : memref<1x32x64xf32, #tpu.memory_space<vmem>>, vector<1x32x64xf32>
    %1 = vector.shape_cast %0 : vector<1x32x64xf32> to vector<32x64xf32>
    %c0_2 = arith.constant 0 : index
    %c0_3 = arith.constant 0 : index
    %2 = vector.load %arg8[%c0_2, %c0_3] : memref<48x32xf32, #tpu.memory_space<vmem>>, vector<48x32xf32>
    %cst = arith.constant dense<0.000000e+00> : vector<48x64xf32>
    %3 = tpu.matmul %2, %1, %cst {dimension_numbers = #tpu.dot_dimension_numbers<[1], [0], [0], [1], [0, 0, 1, 1], [], []>} : vector<48x32xf32>, vector<32x64xf32>, vector<48x64xf32> -> vector<48x64xf32>
    %c0_4 = arith.constant 0 : index
    %c0_5 = arith.constant 0 : index
    %4 = vector.load %arg9[%c0_4, %c0_5] : memref<48x1xf32, #tpu.memory_space<vmem>>, vector<48x1xf32>
    %5 = vector.broadcast %4 : vector<48x1xf32> to vector<48x64xf32>
    %6 = arith.addf %3, %5 : vector<48x64xf32>
    %7 = vector.extract_strided_slice %6 {offsets = [0, 0], sizes = [16, 64], strides = [1, 1]} : vector<48x64xf32> to vector<16x64xf32>
    %8 = vector.extract_strided_slice %6 {offsets = [16, 0], sizes = [32, 64], strides = [1, 1]} : vector<48x64xf32> to vector<32x64xf32>
    %c0_6 = arith.constant 0 : index
    %c0_7 = arith.constant 0 : index
    %9 = vector.load %arg3[%c0_6, %c0_7] : memref<64x128xf32, #tpu.memory_space<vmem>>, vector<64x128xf32>
    %cst_8 = arith.constant dense<0.000000e+00> : vector<32x128xf32>
    %10 = tpu.matmul %1, %9, %cst_8 {dimension_numbers = #tpu.dot_dimension_numbers<[1], [0], [0], [1], [0, 0, 1, 1], [], []>} : vector<32x64xf32>, vector<64x128xf32>, vector<32x128xf32> -> vector<32x128xf32>
    %cst_9 = arith.constant 0.000000e+00 : f32
    %11 = vector.broadcast %cst_9 : f32 to vector<32x128xf32>
    %12 = tpu.concatenate %1, %8 in 0 : vector<32x64xf32>, vector<32x64xf32> -> vector<64x64xf32>
    %c0_10 = arith.constant 0 : index
    %c0_11 = arith.constant 0 : index
    %c0_12 = arith.constant 0 : index
    %13 = vector.load %arg4[%c0_10, %c0_11, %c0_12] : memref<9x64x128xbf16, #tpu.memory_space<vmem>>, vector<1x64x128xbf16>
    %14 = vector.shape_cast %13 : vector<1x64x128xbf16> to vector<64x128xbf16>
    %15 = arith.extf %14 : vector<64x128xbf16> to vector<64x128xf32>
    %cst_13 = arith.constant dense<0.000000e+00> : vector<64x128xf32>
    %16 = tpu.matmul %12, %15, %cst_13 {dimension_numbers = #tpu.dot_dimension_numbers<[1], [0], [0], [1], [0, 0, 1, 1], [], []>} : vector<64x64xf32>, vector<64x128xf32>, vector<64x128xf32> -> vector<64x128xf32>
    %c0_14 = arith.constant 0 : index
    %c0_15 = arith.constant 0 : index
    %17 = vector.load %arg7[%c0_14, %c0_15] : memref<32x9xf32, #tpu.memory_space<vmem>>, vector<32x1xf32>
    %18 = vector.extract_strided_slice %16 {offsets = [0, 0], sizes = [32, 128], strides = [1, 1]} : vector<64x128xf32> to vector<32x128xf32>
    %19 = vector.broadcast %17 : vector<32x1xf32> to vector<32x128xf32>
    %20 = arith.mulf %19, %18 : vector<32x128xf32>
    %21 = arith.addf %10, %20 : vector<32x128xf32>
    %c0_16 = arith.constant 0 : index
    %c0_17 = arith.constant 0 : index
    %22 = vector.load %arg10[%c0_16, %c0_17] : memref<32x9xf32, #tpu.memory_space<vmem>>, vector<32x1xf32>
    %23 = vector.extract_strided_slice %16 {offsets = [32, 0], sizes = [32, 128], strides = [1, 1]} : vector<64x128xf32> to vector<32x128xf32>
    %24 = vector.broadcast %22 : vector<32x1xf32> to vector<32x128xf32>
    %25 = arith.mulf %24, %23 : vector<32x128xf32>
    %26 = arith.addf %11, %25 : vector<32x128xf32>
    %c1 = arith.constant 1 : index
    %c0_18 = arith.constant 0 : index
    %c0_19 = arith.constant 0 : index
    %27 = vector.load %arg4[%c1, %c0_18, %c0_19] : memref<9x64x128xbf16, #tpu.memory_space<vmem>>, vector<1x64x128xbf16>
    %28 = vector.shape_cast %27 : vector<1x64x128xbf16> to vector<64x128xbf16>
    %29 = arith.extf %28 : vector<64x128xbf16> to vector<64x128xf32>
    %cst_20 = arith.constant dense<0.000000e+00> : vector<64x128xf32>
    %30 = tpu.matmul %12, %29, %cst_20 {dimension_numbers = #tpu.dot_dimension_numbers<[1], [0], [0], [1], [0, 0, 1, 1], [], []>} : vector<64x64xf32>, vector<64x128xf32>, vector<64x128xf32> -> vector<64x128xf32>
    %c0_21 = arith.constant 0 : index
    %c1_22 = arith.constant 1 : index
    %31 = vector.load %arg7[%c0_21, %c1_22] : memref<32x9xf32, #tpu.memory_space<vmem>>, vector<32x1xf32>
    %32 = vector.extract_strided_slice %30 {offsets = [0, 0], sizes = [32, 128], strides = [1, 1]} : vector<64x128xf32> to vector<32x128xf32>
    %33 = vector.broadcast %31 : vector<32x1xf32> to vector<32x128xf32>
    %34 = arith.mulf %33, %32 : vector<32x128xf32>
    %35 = arith.addf %21, %34 : vector<32x128xf32>
    %c0_23 = arith.constant 0 : index
    %c1_24 = arith.constant 1 : index
    %36 = vector.load %arg10[%c0_23, %c1_24] : memref<32x9xf32, #tpu.memory_space<vmem>>, vector<32x1xf32>
    %37 = vector.extract_strided_slice %30 {offsets = [32, 0], sizes = [32, 128], strides = [1, 1]} : vector<64x128xf32> to vector<32x128xf32>
    %38 = vector.broadcast %36 : vector<32x1xf32> to vector<32x128xf32>
    %39 = arith.mulf %38, %37 : vector<32x128xf32>
    %40 = arith.addf %26, %39 : vector<32x128xf32>
    %c2 = arith.constant 2 : index
    %c0_25 = arith.constant 0 : index
    %c0_26 = arith.constant 0 : index
    %41 = vector.load %arg4[%c2, %c0_25, %c0_26] : memref<9x64x128xbf16, #tpu.memory_space<vmem>>, vector<1x64x128xbf16>
    %42 = vector.shape_cast %41 : vector<1x64x128xbf16> to vector<64x128xbf16>
    %43 = arith.extf %42 : vector<64x128xbf16> to vector<64x128xf32>
    %cst_27 = arith.constant dense<0.000000e+00> : vector<64x128xf32>
    %44 = tpu.matmul %12, %43, %cst_27 {dimension_numbers = #tpu.dot_dimension_numbers<[1], [0], [0], [1], [0, 0, 1, 1], [], []>} : vector<64x64xf32>, vector<64x128xf32>, vector<64x128xf32> -> vector<64x128xf32>
    %c0_28 = arith.constant 0 : index
    %c2_29 = arith.constant 2 : index
    %45 = vector.load %arg7[%c0_28, %c2_29] : memref<32x9xf32, #tpu.memory_space<vmem>>, vector<32x1xf32>
    %46 = vector.extract_strided_slice %44 {offsets = [0, 0], sizes = [32, 128], strides = [1, 1]} : vector<64x128xf32> to vector<32x128xf32>
    %47 = vector.broadcast %45 : vector<32x1xf32> to vector<32x128xf32>
    %48 = arith.mulf %47, %46 : vector<32x128xf32>
    %49 = arith.addf %35, %48 : vector<32x128xf32>
    %c0_30 = arith.constant 0 : index
    %c2_31 = arith.constant 2 : index
    %50 = vector.load %arg10[%c0_30, %c2_31] : memref<32x9xf32, #tpu.memory_space<vmem>>, vector<32x1xf32>
    %51 = vector.extract_strided_slice %44 {offsets = [32, 0], sizes = [32, 128], strides = [1, 1]} : vector<64x128xf32> to vector<32x128xf32>
    %52 = vector.broadcast %50 : vector<32x1xf32> to vector<32x128xf32>
    %53 = arith.mulf %52, %51 : vector<32x128xf32>
    %54 = arith.addf %40, %53 : vector<32x128xf32>
    %c3 = arith.constant 3 : index
    %c0_32 = arith.constant 0 : index
    %c0_33 = arith.constant 0 : index
    %55 = vector.load %arg4[%c3, %c0_32, %c0_33] : memref<9x64x128xbf16, #tpu.memory_space<vmem>>, vector<1x64x128xbf16>
    %56 = vector.shape_cast %55 : vector<1x64x128xbf16> to vector<64x128xbf16>
    %57 = arith.extf %56 : vector<64x128xbf16> to vector<64x128xf32>
    %cst_34 = arith.constant dense<0.000000e+00> : vector<64x128xf32>
    %58 = tpu.matmul %12, %57, %cst_34 {dimension_numbers = #tpu.dot_dimension_numbers<[1], [0], [0], [1], [0, 0, 1, 1], [], []>} : vector<64x64xf32>, vector<64x128xf32>, vector<64x128xf32> -> vector<64x128xf32>
    %c0_35 = arith.constant 0 : index
    %c3_36 = arith.constant 3 : index
    %59 = vector.load %arg7[%c0_35, %c3_36] : memref<32x9xf32, #tpu.memory_space<vmem>>, vector<32x1xf32>
    %60 = vector.extract_strided_slice %58 {offsets = [0, 0], sizes = [32, 128], strides = [1, 1]} : vector<64x128xf32> to vector<32x128xf32>
    %61 = vector.broadcast %59 : vector<32x1xf32> to vector<32x128xf32>
    %62 = arith.mulf %61, %60 : vector<32x128xf32>
    %63 = arith.addf %49, %62 : vector<32x128xf32>
    %c0_37 = arith.constant 0 : index
    %c3_38 = arith.constant 3 : index
    %64 = vector.load %arg10[%c0_37, %c3_38] : memref<32x9xf32, #tpu.memory_space<vmem>>, vector<32x1xf32>
    %65 = vector.extract_strided_slice %58 {offsets = [32, 0], sizes = [32, 128], strides = [1, 1]} : vector<64x128xf32> to vector<32x128xf32>
    %66 = vector.broadcast %64 : vector<32x1xf32> to vector<32x128xf32>
    %67 = arith.mulf %66, %65 : vector<32x128xf32>
    %68 = arith.addf %54, %67 : vector<32x128xf32>
    %c4 = arith.constant 4 : index
    %c0_39 = arith.constant 0 : index
    %c0_40 = arith.constant 0 : index
    %69 = vector.load %arg4[%c4, %c0_39, %c0_40] : memref<9x64x128xbf16, #tpu.memory_space<vmem>>, vector<1x64x128xbf16>
    %70 = vector.shape_cast %69 : vector<1x64x128xbf16> to vector<64x128xbf16>
    %71 = arith.extf %70 : vector<64x128xbf16> to vector<64x128xf32>
    %cst_41 = arith.constant dense<0.000000e+00> : vector<64x128xf32>
    %72 = tpu.matmul %12, %71, %cst_41 {dimension_numbers = #tpu.dot_dimension_numbers<[1], [0], [0], [1], [0, 0, 1, 1], [], []>} : vector<64x64xf32>, vector<64x128xf32>, vector<64x128xf32> -> vector<64x128xf32>
    %c0_42 = arith.constant 0 : index
    %c4_43 = arith.constant 4 : index
    %73 = vector.load %arg7[%c0_42, %c4_43] : memref<32x9xf32, #tpu.memory_space<vmem>>, vector<32x1xf32>
    %74 = vector.extract_strided_slice %72 {offsets = [0, 0], sizes = [32, 128], strides = [1, 1]} : vector<64x128xf32> to vector<32x128xf32>
    %75 = vector.broadcast %73 : vector<32x1xf32> to vector<32x128xf32>
    %76 = arith.mulf %75, %74 : vector<32x128xf32>
    %77 = arith.addf %63, %76 : vector<32x128xf32>
    %c0_44 = arith.constant 0 : index
    %c4_45 = arith.constant 4 : index
    %78 = vector.load %arg10[%c0_44, %c4_45] : memref<32x9xf32, #tpu.memory_space<vmem>>, vector<32x1xf32>
    %79 = vector.extract_strided_slice %72 {offsets = [32, 0], sizes = [32, 128], strides = [1, 1]} : vector<64x128xf32> to vector<32x128xf32>
    %80 = vector.broadcast %78 : vector<32x1xf32> to vector<32x128xf32>
    %81 = arith.mulf %80, %79 : vector<32x128xf32>
    %82 = arith.addf %68, %81 : vector<32x128xf32>
    %c5 = arith.constant 5 : index
    %c0_46 = arith.constant 0 : index
    %c0_47 = arith.constant 0 : index
    %83 = vector.load %arg4[%c5, %c0_46, %c0_47] : memref<9x64x128xbf16, #tpu.memory_space<vmem>>, vector<1x64x128xbf16>
    %84 = vector.shape_cast %83 : vector<1x64x128xbf16> to vector<64x128xbf16>
    %85 = arith.extf %84 : vector<64x128xbf16> to vector<64x128xf32>
    %cst_48 = arith.constant dense<0.000000e+00> : vector<64x128xf32>
    %86 = tpu.matmul %12, %85, %cst_48 {dimension_numbers = #tpu.dot_dimension_numbers<[1], [0], [0], [1], [0, 0, 1, 1], [], []>} : vector<64x64xf32>, vector<64x128xf32>, vector<64x128xf32> -> vector<64x128xf32>
    %c0_49 = arith.constant 0 : index
    %c5_50 = arith.constant 5 : index
    %87 = vector.load %arg7[%c0_49, %c5_50] : memref<32x9xf32, #tpu.memory_space<vmem>>, vector<32x1xf32>
    %88 = vector.extract_strided_slice %86 {offsets = [0, 0], sizes = [32, 128], strides = [1, 1]} : vector<64x128xf32> to vector<32x128xf32>
    %89 = vector.broadcast %87 : vector<32x1xf32> to vector<32x128xf32>
    %90 = arith.mulf %89, %88 : vector<32x128xf32>
    %91 = arith.addf %77, %90 : vector<32x128xf32>
    %c0_51 = arith.constant 0 : index
    %c5_52 = arith.constant 5 : index
    %92 = vector.load %arg10[%c0_51, %c5_52] : memref<32x9xf32, #tpu.memory_space<vmem>>, vector<32x1xf32>
    %93 = vector.extract_strided_slice %86 {offsets = [32, 0], sizes = [32, 128], strides = [1, 1]} : vector<64x128xf32> to vector<32x128xf32>
    %94 = vector.broadcast %92 : vector<32x1xf32> to vector<32x128xf32>
    %95 = arith.mulf %94, %93 : vector<32x128xf32>
    %96 = arith.addf %82, %95 : vector<32x128xf32>
    %c6 = arith.constant 6 : index
    %c0_53 = arith.constant 0 : index
    %c0_54 = arith.constant 0 : index
    %97 = vector.load %arg4[%c6, %c0_53, %c0_54] : memref<9x64x128xbf16, #tpu.memory_space<vmem>>, vector<1x64x128xbf16>
    %98 = vector.shape_cast %97 : vector<1x64x128xbf16> to vector<64x128xbf16>
    %99 = arith.extf %98 : vector<64x128xbf16> to vector<64x128xf32>
    %cst_55 = arith.constant dense<0.000000e+00> : vector<64x128xf32>
    %100 = tpu.matmul %12, %99, %cst_55 {dimension_numbers = #tpu.dot_dimension_numbers<[1], [0], [0], [1], [0, 0, 1, 1], [], []>} : vector<64x64xf32>, vector<64x128xf32>, vector<64x128xf32> -> vector<64x128xf32>
    %c0_56 = arith.constant 0 : index
    %c6_57 = arith.constant 6 : index
    %101 = vector.load %arg7[%c0_56, %c6_57] : memref<32x9xf32, #tpu.memory_space<vmem>>, vector<32x1xf32>
    %102 = vector.extract_strided_slice %100 {offsets = [0, 0], sizes = [32, 128], strides = [1, 1]} : vector<64x128xf32> to vector<32x128xf32>
    %103 = vector.broadcast %101 : vector<32x1xf32> to vector<32x128xf32>
    %104 = arith.mulf %103, %102 : vector<32x128xf32>
    %105 = arith.addf %91, %104 : vector<32x128xf32>
    %c0_58 = arith.constant 0 : index
    %c6_59 = arith.constant 6 : index
    %106 = vector.load %arg10[%c0_58, %c6_59] : memref<32x9xf32, #tpu.memory_space<vmem>>, vector<32x1xf32>
    %107 = vector.extract_strided_slice %100 {offsets = [32, 0], sizes = [32, 128], strides = [1, 1]} : vector<64x128xf32> to vector<32x128xf32>
    %108 = vector.broadcast %106 : vector<32x1xf32> to vector<32x128xf32>
    %109 = arith.mulf %108, %107 : vector<32x128xf32>
    %110 = arith.addf %96, %109 : vector<32x128xf32>
    %c7 = arith.constant 7 : index
    %c0_60 = arith.constant 0 : index
    %c0_61 = arith.constant 0 : index
    %111 = vector.load %arg4[%c7, %c0_60, %c0_61] : memref<9x64x128xbf16, #tpu.memory_space<vmem>>, vector<1x64x128xbf16>
    %112 = vector.shape_cast %111 : vector<1x64x128xbf16> to vector<64x128xbf16>
    %113 = arith.extf %112 : vector<64x128xbf16> to vector<64x128xf32>
    %cst_62 = arith.constant dense<0.000000e+00> : vector<64x128xf32>
    %114 = tpu.matmul %12, %113, %cst_62 {dimension_numbers = #tpu.dot_dimension_numbers<[1], [0], [0], [1], [0, 0, 1, 1], [], []>} : vector<64x64xf32>, vector<64x128xf32>, vector<64x128xf32> -> vector<64x128xf32>
    %c0_63 = arith.constant 0 : index
    %c7_64 = arith.constant 7 : index
    %115 = vector.load %arg7[%c0_63, %c7_64] : memref<32x9xf32, #tpu.memory_space<vmem>>, vector<32x1xf32>
    %116 = vector.extract_strided_slice %114 {offsets = [0, 0], sizes = [32, 128], strides = [1, 1]} : vector<64x128xf32> to vector<32x128xf32>
    %117 = vector.broadcast %115 : vector<32x1xf32> to vector<32x128xf32>
    %118 = arith.mulf %117, %116 : vector<32x128xf32>
    %119 = arith.addf %105, %118 : vector<32x128xf32>
    %c0_65 = arith.constant 0 : index
    %c7_66 = arith.constant 7 : index
    %120 = vector.load %arg10[%c0_65, %c7_66] : memref<32x9xf32, #tpu.memory_space<vmem>>, vector<32x1xf32>
    %121 = vector.extract_strided_slice %114 {offsets = [32, 0], sizes = [32, 128], strides = [1, 1]} : vector<64x128xf32> to vector<32x128xf32>
    %122 = vector.broadcast %120 : vector<32x1xf32> to vector<32x128xf32>
    %123 = arith.mulf %122, %121 : vector<32x128xf32>
    %124 = arith.addf %110, %123 : vector<32x128xf32>
    %c8 = arith.constant 8 : index
    %c0_67 = arith.constant 0 : index
    %c0_68 = arith.constant 0 : index
    %125 = vector.load %arg4[%c8, %c0_67, %c0_68] : memref<9x64x128xbf16, #tpu.memory_space<vmem>>, vector<1x64x128xbf16>
    %126 = vector.shape_cast %125 : vector<1x64x128xbf16> to vector<64x128xbf16>
    %127 = arith.extf %126 : vector<64x128xbf16> to vector<64x128xf32>
    %cst_69 = arith.constant dense<0.000000e+00> : vector<64x128xf32>
    %128 = tpu.matmul %12, %127, %cst_69 {dimension_numbers = #tpu.dot_dimension_numbers<[1], [0], [0], [1], [0, 0, 1, 1], [], []>} : vector<64x64xf32>, vector<64x128xf32>, vector<64x128xf32> -> vector<64x128xf32>
    %c0_70 = arith.constant 0 : index
    %c8_71 = arith.constant 8 : index
    %129 = vector.load %arg7[%c0_70, %c8_71] : memref<32x9xf32, #tpu.memory_space<vmem>>, vector<32x1xf32>
    %130 = vector.extract_strided_slice %128 {offsets = [0, 0], sizes = [32, 128], strides = [1, 1]} : vector<64x128xf32> to vector<32x128xf32>
    %131 = vector.broadcast %129 : vector<32x1xf32> to vector<32x128xf32>
    %132 = arith.mulf %131, %130 : vector<32x128xf32>
    %133 = arith.addf %119, %132 : vector<32x128xf32>
    %c0_72 = arith.constant 0 : index
    %c8_73 = arith.constant 8 : index
    %134 = vector.load %arg10[%c0_72, %c8_73] : memref<32x9xf32, #tpu.memory_space<vmem>>, vector<32x1xf32>
    %135 = vector.extract_strided_slice %128 {offsets = [32, 0], sizes = [32, 128], strides = [1, 1]} : vector<64x128xf32> to vector<32x128xf32>
    %136 = vector.broadcast %134 : vector<32x1xf32> to vector<32x128xf32>
    %137 = arith.mulf %136, %135 : vector<32x128xf32>
    %138 = arith.addf %124, %137 : vector<32x128xf32>
    %c0_74 = arith.constant 0 : index
    %c0_75 = arith.constant 0 : index
    %139 = vector.load %arg11[%c0_74, %c0_75] : memref<32x1xf32, #tpu.memory_space<vmem>>, vector<32x1xf32>
    %140 = vector.broadcast %139 : vector<32x1xf32> to vector<32x128xf32>
    %141 = arith.addf %138, %140 : vector<32x128xf32>
    %c0_76 = arith.constant 0 : index
    %c0_77 = arith.constant 0 : index
    %142 = vector.load %arg5[%c0_76, %c0_77] : memref<16x32xf32, #tpu.memory_space<vmem>>, vector<16x32xf32>
    %cst_78 = arith.constant dense<0.000000e+00> : vector<16x128xf32>
    %143 = tpu.matmul %142, %133, %cst_78 {dimension_numbers = #tpu.dot_dimension_numbers<[1], [0], [0], [1], [0, 0, 1, 1], [], []>} : vector<16x32xf32>, vector<32x128xf32>, vector<16x128xf32> -> vector<16x128xf32>
    %c0_79 = arith.constant 0 : index
    %c0_80 = arith.constant 0 : index
    %144 = vector.load %arg6[%c0_79, %c0_80] : memref<16x1xf32, #tpu.memory_space<vmem>>, vector<16x1xf32>
    %145 = vector.broadcast %144 : vector<16x1xf32> to vector<16x128xf32>
    %146 = arith.addf %143, %145 : vector<16x128xf32>
    %cst_81 = arith.constant 0.000000e+00 : f32
    %147 = vector.broadcast %cst_81 : f32 to vector<24x128xf32>
    %148 = vector.extract_strided_slice %146 {offsets = [0, 0], sizes = [8, 128], strides = [1, 1]} : vector<16x128xf32> to vector<8x128xf32>
    %149 = vector.extract_strided_slice %7 {offsets = [0, 0], sizes = [8, 64], strides = [1, 1]} : vector<16x64xf32> to vector<8x64xf32>
    %150 = vector.extract_strided_slice %8 {offsets = [0, 0], sizes = [16, 64], strides = [1, 1]} : vector<32x64xf32> to vector<16x64xf32>
    %cst_82 = arith.constant dense<0.000000e+00> : vector<128x64xf32>
    %151 = tpu.matmul %148, %149, %cst_82 {dimension_numbers = #tpu.dot_dimension_numbers<[0], [0], [1], [1], [0, 1, 1, 1], [], []>} : vector<8x128xf32>, vector<8x64xf32>, vector<128x64xf32> -> vector<128x64xf32>
    %cst_83 = arith.constant 0.353553385 : f32
    %152 = vector.broadcast %cst_83 : f32 to vector<128x64xf32>
    %153 = arith.mulf %151, %152 : vector<128x64xf32>
    %cst_84 = arith.constant dense<0xFF800000> : vector<128xf32>
    %154 = vector.multi_reduction <maximumf>, %153, %cst_84 [1] : vector<128x64xf32> to vector<128xf32>
    %155 = vector.shape_cast %154 : vector<128xf32> to vector<128x1xf32>
    %156 = vector.broadcast %155 : vector<128x1xf32> to vector<128x64xf32>
    %157 = arith.subf %153, %156 : vector<128x64xf32>
    %158 = math.exp %157 : vector<128x64xf32>
    %cst_85 = arith.constant dense<0.000000e+00> : vector<128xf32>
    %159 = vector.multi_reduction <add>, %158, %cst_85 [1] : vector<128x64xf32> to vector<128xf32>
    %160 = vector.shape_cast %159 : vector<128xf32> to vector<128x1xf32>
    %161 = tpu.reciprocal %160 {approx = true} : vector<128x1xf32> -> vector<128x1xf32>
    %162 = vector.broadcast %161 : vector<128x1xf32> to vector<128x64xf32>
    %163 = arith.mulf %158, %162 : vector<128x64xf32>
    %cst_86 = arith.constant dense<0.000000e+00> : vector<16x128xf32>
    %164 = tpu.matmul %150, %163, %cst_86 {dimension_numbers = #tpu.dot_dimension_numbers<[1], [1], [0], [0], [0, 0, 1, 0], [], []>} : vector<16x64xf32>, vector<128x64xf32>, vector<16x128xf32> -> vector<16x128xf32>
    %165 = vector.extract_strided_slice %141 {offsets = [0, 0], sizes = [16, 128], strides = [1, 1]} : vector<32x128xf32> to vector<16x128xf32>
    %166 = arith.addf %164, %165 : vector<16x128xf32>
    %cst_87 = arith.constant 0.000000e+00 : f32
    %167 = vector.broadcast %cst_87 : f32 to vector<16x128xf32>
    %168 = arith.maximumf %166, %167 : vector<16x128xf32>
    %c0_88 = arith.constant 0 : index
    %c0_89 = arith.constant 0 : index
    %169 = vector.load %arg12[%c0_88, %c0_89] : memref<24x32xf32, #tpu.memory_space<vmem>>, vector<24x16xf32>
    %cst_90 = arith.constant dense<0.000000e+00> : vector<24x128xf32>
    %170 = tpu.matmul %169, %168, %cst_90 {dimension_numbers = #tpu.dot_dimension_numbers<[1], [0], [0], [1], [0, 0, 1, 1], [], []>} : vector<24x16xf32>, vector<16x128xf32>, vector<24x128xf32> -> vector<24x128xf32>
    %171 = arith.addf %147, %170 : vector<24x128xf32>
    %172 = vector.extract_strided_slice %146 {offsets = [8, 0], sizes = [8, 128], strides = [1, 1]} : vector<16x128xf32> to vector<8x128xf32>
    %173 = vector.extract_strided_slice %7 {offsets = [8, 0], sizes = [8, 64], strides = [1, 1]} : vector<16x64xf32> to vector<8x64xf32>
    %174 = vector.extract_strided_slice %8 {offsets = [16, 0], sizes = [16, 64], strides = [1, 1]} : vector<32x64xf32> to vector<16x64xf32>
    %cst_91 = arith.constant dense<0.000000e+00> : vector<128x64xf32>
    %175 = tpu.matmul %172, %173, %cst_91 {dimension_numbers = #tpu.dot_dimension_numbers<[0], [0], [1], [1], [0, 1, 1, 1], [], []>} : vector<8x128xf32>, vector<8x64xf32>, vector<128x64xf32> -> vector<128x64xf32>
    %cst_92 = arith.constant 0.353553385 : f32
    %176 = vector.broadcast %cst_92 : f32 to vector<128x64xf32>
    %177 = arith.mulf %175, %176 : vector<128x64xf32>
    %cst_93 = arith.constant dense<0xFF800000> : vector<128xf32>
    %178 = vector.multi_reduction <maximumf>, %177, %cst_93 [1] : vector<128x64xf32> to vector<128xf32>
    %179 = vector.shape_cast %178 : vector<128xf32> to vector<128x1xf32>
    %180 = vector.broadcast %179 : vector<128x1xf32> to vector<128x64xf32>
    %181 = arith.subf %177, %180 : vector<128x64xf32>
    %182 = math.exp %181 : vector<128x64xf32>
    %cst_94 = arith.constant dense<0.000000e+00> : vector<128xf32>
    %183 = vector.multi_reduction <add>, %182, %cst_94 [1] : vector<128x64xf32> to vector<128xf32>
    %184 = vector.shape_cast %183 : vector<128xf32> to vector<128x1xf32>
    %185 = tpu.reciprocal %184 {approx = true} : vector<128x1xf32> -> vector<128x1xf32>
    %186 = vector.broadcast %185 : vector<128x1xf32> to vector<128x64xf32>
    %187 = arith.mulf %182, %186 : vector<128x64xf32>
    %cst_95 = arith.constant dense<0.000000e+00> : vector<16x128xf32>
    %188 = tpu.matmul %174, %187, %cst_95 {dimension_numbers = #tpu.dot_dimension_numbers<[1], [1], [0], [0], [0, 0, 1, 0], [], []>} : vector<16x64xf32>, vector<128x64xf32>, vector<16x128xf32> -> vector<16x128xf32>
    %189 = vector.extract_strided_slice %141 {offsets = [16, 0], sizes = [16, 128], strides = [1, 1]} : vector<32x128xf32> to vector<16x128xf32>
    %190 = arith.addf %188, %189 : vector<16x128xf32>
    %cst_96 = arith.constant 0.000000e+00 : f32
    %191 = vector.broadcast %cst_96 : f32 to vector<16x128xf32>
    %192 = arith.maximumf %190, %191 : vector<16x128xf32>
    %c0_97 = arith.constant 0 : index
    %c16 = arith.constant 16 : index
    %193 = vector.load %arg12[%c0_97, %c16] : memref<24x32xf32, #tpu.memory_space<vmem>>, vector<24x16xf32>
    %cst_98 = arith.constant dense<0.000000e+00> : vector<24x128xf32>
    %194 = tpu.matmul %193, %192, %cst_98 {dimension_numbers = #tpu.dot_dimension_numbers<[1], [0], [0], [1], [0, 0, 1, 1], [], []>} : vector<24x16xf32>, vector<16x128xf32>, vector<24x128xf32> -> vector<24x128xf32>
    %195 = arith.addf %171, %194 : vector<24x128xf32>
    %c0_99 = arith.constant 0 : index
    %c0_100 = arith.constant 0 : index
    %196 = vector.load %arg13[%c0_99, %c0_100] : memref<24x1xf32, #tpu.memory_space<vmem>>, vector<24x1xf32>
    %197 = vector.broadcast %196 : vector<24x1xf32> to vector<24x128xf32>
    %198 = arith.addf %195, %197 : vector<24x128xf32>
    %c0_101 = arith.constant 0 : index
    %c0_102 = arith.constant 0 : index
    %c0_103 = arith.constant 0 : index
    %199 = vector.load %arg14[%c0_101, %c0_102, %c0_103] : memref<1x24x128xf32, #tpu.memory_space<vmem>>, vector<1x24x128xf32>
    %200 = vector.shape_cast %199 : vector<1x24x128xf32> to vector<24x128xf32>
    %201 = vector.shape_cast %198 : vector<24x128xf32> to vector<1x24x128xf32>
    tpu.vector_store %arg14[%c0_101, %c0_102, %c0_103], %201 {strides = array<i32>} : memref<1x24x128xf32, #tpu.memory_space<vmem>>, vector<1x24x128xf32>,
    return
  }
  func.func @transform_0(%arg0: i32, %arg1: i32) -> (i32, i32, i32) {
    %c0_i32 = arith.constant 0 : i32
    %c0_i32_0 = arith.constant 0 : i32
    %c0_i32_1 = arith.constant 0 : i32
    return %arg0, %c0_i32, %c0_i32_0 : i32, i32, i32
  }
  func.func @transform_1(%arg0: i32, %arg1: i32) -> (i32, i32) {
    %c0_i32 = arith.constant 0 : i32
    %c0_i32_0 = arith.constant 0 : i32
    return %c0_i32, %arg1 : i32, i32
  }
  func.func @transform_2(%arg0: i32, %arg1: i32) -> (i32, i32, i32) {
    %c0_i32 = arith.constant 0 : i32
    %c0_i32_0 = arith.constant 0 : i32
    %c0_i32_1 = arith.constant 0 : i32
    return %c0_i32, %c0_i32_0, %arg1 : i32, i32, i32
  }
  func.func @transform_3(%arg0: i32, %arg1: i32) -> (i32, i32) {
    %c0_i32 = arith.constant 0 : i32
    %c0_i32_0 = arith.constant 0 : i32
    %c0_i32_1 = arith.constant 0 : i32
    return %c0_i32, %c0_i32_0 : i32, i32
  }
  func.func @transform_4(%arg0: i32, %arg1: i32) -> (i32, i32) {
    %c0_i32 = arith.constant 0 : i32
    %c0_i32_0 = arith.constant 0 : i32
    %c0_i32_1 = arith.constant 0 : i32
    return %c0_i32, %c0_i32_0 : i32, i32
  }
  func.func @transform_5(%arg0: i32, %arg1: i32) -> (i32, i32) {
    %c0_i32 = arith.constant 0 : i32
    %c0_i32_0 = arith.constant 0 : i32
    %c0_i32_1 = arith.constant 0 : i32
    return %c0_i32, %c0_i32_0 : i32, i32
  }
  func.func @transform_6(%arg0: i32, %arg1: i32) -> (i32, i32) {
    %c0_i32 = arith.constant 0 : i32
    %c0_i32_0 = arith.constant 0 : i32
    %c0_i32_1 = arith.constant 0 : i32
    return %c0_i32, %c0_i32_0 : i32, i32
  }
  func.func @transform_7(%arg0: i32, %arg1: i32) -> (i32, i32) {
    %c0_i32 = arith.constant 0 : i32
    %c0_i32_0 = arith.constant 0 : i32
    %c0_i32_1 = arith.constant 0 : i32
    return %c0_i32, %c0_i32_0 : i32, i32
  }
  func.func @transform_8(%arg0: i32, %arg1: i32) -> (i32, i32) {
    %c0_i32 = arith.constant 0 : i32
    %c0_i32_0 = arith.constant 0 : i32
    %c0_i32_1 = arith.constant 0 : i32
    return %c0_i32, %c0_i32_0 : i32, i32
  }
  func.func @transform_9(%arg0: i32, %arg1: i32) -> (i32, i32) {
    %c0_i32 = arith.constant 0 : i32
    %c0_i32_0 = arith.constant 0 : i32
    %c0_i32_1 = arith.constant 0 : i32
    return %c0_i32, %c0_i32_0 : i32, i32
  }
  func.func @transform_10(%arg0: i32, %arg1: i32) -> (i32, i32) {
    %c0_i32 = arith.constant 0 : i32
    %c0_i32_0 = arith.constant 0 : i32
    %c0_i32_1 = arith.constant 0 : i32
    return %c0_i32, %c0_i32_0 : i32, i32
  }
  func.func @transform_11(%arg0: i32, %arg1: i32) -> (i32, i32) {
    %c0_i32 = arith.constant 0 : i32
    %c0_i32_0 = arith.constant 0 : i32
    %c0_i32_1 = arith.constant 0 : i32
    return %c0_i32, %c0_i32_0 : i32, i32
  }
  func.func @transform_12(%arg0: i32, %arg1: i32) -> (i32, i32, i32) {
    %c0_i32 = arith.constant 0 : i32
    %c0_i32_0 = arith.constant 0 : i32
    return %arg0, %c0_i32, %arg1 : i32, i32, i32
  }
}

</mosaic_0001>

<bundles_post_ra>
// kernel: squeeze.10
= control target key start
LH: loop header
LB: loop body
LE: loop exit
PB: predicated region body
PF: predicated region fallthrough
CT: control target
= control target key end

     0   :  { %vm15_vm0 = vcmask 261120   ;;  %s59_s0 = inlined_call_operand.vmem [shape: f32[32,3,3], index: 0, kind: input, shape index: {}]   ;;  %s60_s1 = inlined_call_operand.vmem [shape: f32[32,9], index: 1, kind: output, shape index: {}]  }
   0x1   :  { %v27_v0 = vld [vmem:[%s59_s0 + $0x8] sm:$0xf]  ;;  %v28_v1 = vld [vmem:[%s59_s0 + $0x4] sm:$0xf]  ;;  %v12_v2 = vld [vmem:[%s59_s0] sm:$0xf] }
   0x2   :  { %7 = vst [vmem:[#allocation0] sm:$0xf] %v27_v0 }
   0x3   :  { %11 = vst [vmem:[#allocation0 + $0x10] sm:$0xf] %v28_v1 }
   0x4   :  { %13 = vst [vmem:[#allocation0 + $0x8] sm:$0xf] %v12_v2 }
   0x9   :  { %v23_v3 = vld [vmem:[#allocation0] sm:$0x7]  }
   0xa   :  { %v18_v4 = vld [vmem:[#allocation0 + $0x10] sm:$0x7]   ;;  %30 = vst.msk [vmem:[%s60_s1 + $0x6] sm:$0x7] %vm15_vm0, %v23_v3  }
   0xb   :  { %v14_v5 = vld [vmem:[#allocation0 + $0x8] sm:$0x7]   ;;  %29 = vst.msk [vmem:[%s60_s1 + $0x3] sm:$0x7] %vm15_vm0, %v18_v4  }
   0xc   :  { %16 = vst.msk [vmem:[%s60_s1] sm:$0x7] %vm15_vm0, %v14_v5  }

// kernel: attention4d_upsample_forward.1
= control target key start
LH: loop header
LB: loop body
LE: loop exit
PB: predicated region body
PF: predicated region fallthrough
CT: control target
= control target key end

     0   :  { %s5047_s0 = inlined_call_operand.vmem [shape: f32[2,32,64], index: 0, kind: input, shape index: {}]   ;;  %s5048_s1 = inlined_call_operand.vmem [shape: f32[64,256], index: 1, kind: input, shape index: {}]   ;;  %s5049_s2 = inlined_call_operand.hbm [shape: bf16[9,64,256], index: 2, kind: input, shape index: {}]   ;;  %s5050_s3 = inlined_call_operand.vmem [shape: f32[16,32], index: 3, kind: input, shape index: {}]   ;;  %s5051_s4 = inlined_call_operand.vmem [shape: f32[16,1], index: 4, kind: input, shape index: {}]   ;;  %s5052_s5 = inlined_call_operand.vmem [shape: f32[32,9], index: 5, kind: input, shape index: {}]   ;;  %s5053_s6 = inlined_call_operand.vmem [shape: f32[48,32], index: 6, kind: input, shape index: {}]   ;;  %s5054_s7 = inlined_call_operand.vmem [shape: f32[48,1], index: 7, kind: input, shape index: {}]   ;;  %s5055_s8 = inlined_call_operand.vmem [shape: f32[32,9], index: 8, kind: input, shape index: {}]   ;;  %s5056_s9 = inlined_call_operand.vmem [shape: f32[32,1], index: 9, kind: input, shape index: {}]   ;;  %s5057_s10 = inlined_call_operand.vmem [shape: f32[24,32], index: 10, kind: input, shape index: {}]   ;;  %s5058_s11 = inlined_call_operand.vmem [shape: f32[24,1], index: 11, kind: input, shape index: {}]   ;;  %s5059_s12 = inlined_call_operand.vmem [shape: f32[2,24,256], index: 12, kind: output, shape index: {}]  }
   0x1   :  { %5083 = sst [smem:[#allocation35_spill]] %s5048_s1 }
   0x2   :  { %5084 = sst [smem:[#allocation36_spill]] %s5058_s11 }
   0x3   :  { %5085 = sst [smem:[#allocation37_spill]] %s5059_s12 }
   0x4   :  { %17 = vsyncpa [#allocation4], 0 }
   0x5   :  { %19 = vsyncpa [#allocation4 + $0x1], 0  ;;  %s3728_s21 = smov 0   ;;  %s3730_s22 = smov 0  }
   0x6   :  { %s3732_s23 = smov 0   ;;  %s3734_s24 = smov 0  }
   0x7   :  { %s3736_s25 = smov 0   ;;  %s3738_s26 = smov 0  }
   0x8   :  { %s3740_s27 = smov 0   ;;  %s3742_s28 = smov 0  }
   0x9   :  { %s3744_s29 = smov 0   ;;  %s3746_s30 = smov 0  }
   0xa LB: > { %5086 = sst [smem:[#allocation7_spill]] %s3616_s22  ;;  %s2823_s13 = sadd.s32 4294967295, %s3648_s30   ;;  %s3648_s30 = sphi %s3746_s30, %s25_s30   ;;  %s3644_s29 = sphi %s3744_s29, %s5157_s29   ;;  %s3640_s28 = sphi %s3742_s28, %s5163_s28   ;;  %s3636_s27 = sphi %s3740_s27, %s5162_s27   ;;  %s3632_s26 = sphi %s3738_s26, %s5161_s26   ;;  %s3628_s25 = sphi %s3736_s25, %s5160_s25   ;;  %s3624_s24 = sphi %s3734_s24, %s5159_s24   ;;  %s3620_s23 = sphi %s3732_s23, %s5158_s23   ;;  %s3616_s22 = sphi %s3730_s22, %s5153_s22   ;;  %s3612_s21 = sphi %s3728_s21, %s5152_s21  }
   0xb   : > { %5087 = sst [smem:[#allocation8_spill]] %s3632_s26  ;;  %s34_s14 = sadd.s32 1, %s3640_s28 }
   0xc   : > { %5088 = sst [smem:[#allocation9_spill]] %s3644_s29  ;;  %p35_p0 = scmp.ge.s32.totalorder %s34_s14, 2 }
   0xd   : > { %s37_s15 = sadd.s32 1, %s3644_s29  ;;  %s70_s16 = sadd.s32 1, %s3628_s25 }
   0xe   : > { %p77_p1 = scmp.ne.s32.totalorder %s3628_s25, %s3624_s24  ;;  %s5165_s14 = smov (%p35_p0, %s34_s14), 0 }
   0xf   : > { %5089 = sst [smem:[#allocation10_spill]] %s5165_s14  ;;  %s5167_s15 = smov (!%p35_p0, %s37_s15), %s3644_s29 }
  0x10   : > { %s67_s17 = ssub.s32 %s3640_s28, %s5165_s14  ;;  %p78_p2 = scmp.eq.s32.totalorder %s3648_s30, 0 }
  0x11   : > { %p39_p3 = scmp.ge.s32.totalorder %s5167_s15, 2  ;;  %p68_p4 = scmp.eq.s32.totalorder %s67_s17, 0 }
  0x12   : > { %p3788_p5 = por %p78_p2, %p77_p1  ;;  %p109_p6 = scmp.ne.s32.totalorder %s3624_s24, %s3620_s23 }
  0x13   : > { %s5169_s15 = smov (%p39_p3, %s5167_s15), 0  ;;  %p110_p7 = scmp.eq.s32.totalorder %s2823_s13, 0 }
  0x14   : > { %5091 = sst [smem:[#allocation11_spill]] %s5169_s15  ;;  %s308_s20 = ssub.s32 %s3644_s29, %s5169_s15 }
  0x15   : > { %s3796_s19 = scalar_select %p68_p4, %s3628_s25, %s70_s16  }
  0x16   : > { %s310_s12 = sor.u32 %s308_s20, %s67_s17  ;;  %s313_s26 = sadd.s32 1, %s3616_s22 }
  0x17   : > { %5092 = sst [smem:[#allocation12_spill]] %s3796_s19  ;;  %p3801_p8 = por %p110_p7, %p109_p6 }
  0x18   : > { %p311_p9 = scmp.eq.s32.totalorder %s310_s12, 0  ;;  %p323_p10 = scmp.ne.s32.totalorder %s3616_s22, %s3612_s21 }
  0x19   : > { %p324_p11 = scmp.eq.s32.totalorder %s2823_s13, 3  ;;  %p2826_p13 = scmp.ge.s32.totalorder %s3648_s30, 4 }
  0x1a   : > { %s3808_s11 = scalar_select %p311_p9, %s3616_s22, %s313_s26  }
  0x1b   : > { %p3810_p12 = por %p324_p11, %p323_p10  ;;  %373 = sbr.rel (%p2826_p13) target bundleno = 57 (0x39), region = 52 }
  0x1c   : > { %5094 = sst [smem:[#allocation13_spill]] %s3808_s11 }
  0x1d   : > { %s5095_s23 = scalar_select %p3810_p12, 1, 0 }
  0x1f   : > { %5096 = sst [smem:[#allocation14_spill]] %s5095_s23 }
  0x20   : > { %384 = sbr.rel (!%p3788_p5) target bundleno = 50 (0x32), region = 60  ;;  %s386_s16 = sand.u32 (%p3788_p5), 1, %s3628_s25  }
  0x21   : > { %s2828_s17 = sshll.u32 (%p3788_p5), %s3640_s28, 3  ;;  %s2827_s20 = sshll.u32 (%p3788_p5), %s386_s16, 6 }
  0x22   : > { %s5097_s1 = sld [smem:[#allocation35_spill]] (%p3788_p5)  ;;  %s388_s13 = scalar_lea.vmem (%p3788_p5), [#allocation2], %s2827_s20 }
  0x28   : > { %s390_s26 = scalar_lea.vmem %s5097_s1, %s2828_s17 }
  0x29   : > { %v433_v0 = vld [vmem:[%s390_s26] sm:$0xff]  ;;  %v435_v1 = vld [vmem:[%s390_s26 + $0x10] sm:$0xff] }
  0x2a   : > { %v437_v2 = vld [vmem:[%s390_s26 + $0x20] sm:$0xff]  ;;  %434 = vst [vmem:[%s388_s13] sm:$0xff] %v433_v0  ;;  %v439_v3 = vld [vmem:[%s390_s26 + $0x30] sm:$0xff] }
  0x2b   : > { %436 = vst [vmem:[%s388_s13 + $0x8] sm:$0xff] %v435_v1  ;;  %v441_v4 = vld [vmem:[%s390_s26 + $0x40] sm:$0xff]  ;;  %v443_v5 = vld [vmem:[%s390_s26 + $0x50] sm:$0xff] }
  0x2c   : > { %438 = vst [vmem:[%s388_s13 + $0x10] sm:$0xff] %v437_v2  ;;  %v445_v6 = vld [vmem:[%s390_s26 + $0x60] sm:$0xff]  ;;  %v447_v7 = vld [vmem:[%s390_s26 + $0x70] sm:$0xff] }
  0x2d   : > { %440 = vst [vmem:[%s388_s13 + $0x18] sm:$0xff] %v439_v3 }
  0x2e   : > { %442 = vst [vmem:[%s388_s13 + $0x20] sm:$0xff] %v441_v4 }
  0x2f   : > { %444 = vst [vmem:[%s388_s13 + $0x28] sm:$0xff] %v443_v5 }
  0x30   : > { %446 = vst [vmem:[%s388_s13 + $0x30] sm:$0xff] %v445_v6 }
  0x31   : > { %448 = vst [vmem:[%s388_s13 + $0x38] sm:$0xff] %v447_v7 }
  0x32 PF: > { %s455_s15 = sand.u32 1, %s3628_s25   ;;  %s2829_s16 = sshll.u32 %s3640_s28, 2 }
  0x33   : > { %s3247_s17 = smul.u32 288, %s455_s15  ;;  %s463_s1 = scalar_lea.hbm %s5049_s2, %s2829_s16 }
  0x34   : > { %s464_s29 = sshll.u32 %s463_s1, 4  ;;  %s456_s26 = scalar_lea.sflag [#allocation4], %s455_s15  ;;  %s465_s29 = int_to_ptr.hbm [resolvable:$true] %s464_s29 }
  0x35   : > { %s459_s19 = scalar_lea.vmem [#allocation3], %s3247_s17  ;;  %s3650_s22 = smov 128  }
  0x36   : > { %s466_s11 = sshll.u32 %s459_s19, 4  ;;  %s3651_s23 = smov 64   ;;  %s467_s11 = int_to_ptr.vmem [resolvable:$true] %s466_s11 }
  0x37   : > { %s3652_s13 = smov 4  }
  0x38   : > { %3251 = dma.hbm_to_vmem [thread:$0]  (%p3788_p5), %s465_s29, 4608, %s467_s11, %s456_s26, %s3650_s22, %s3651_s23, %s3652_s13  }
  0x39 PF: > { %p2830_p0 = scmp.ge.s32.totalorder %s3648_s30, 1  ;;  %p474_p1 = scmp.lt.s32.totalorder %s3648_s30, 5 }
  0x3b   : > { %p475_p2 = pnand %p2830_p0, %p474_p1 }
  0x3d   : > { %478 = sbr.rel (%p475_p2) target bundleno = 1799 (0x707), region = 102 }
  0x42   : > { %s481_s1 = sand.u32 1, %s3624_s24  }
  0x43   : > { %s2831_s16 = sshll.u32 %s481_s1, 6  ;;  %s3248_s17 = smul.u32 288, %s481_s1 }
  0x44   : > { %s3832_s19 = scalar_lea.vmem [#allocation2], %s2831_s16  ;;  %s488_s15 = scalar_lea.sflag [#allocation4], %s481_s1 }
  0x45   : > { %s3834_s20 = scalar_lea.vmem [#allocation3], %s3248_s17 }
  0x46   : > { %3607 = dma.done.wait (%p3801_p8), %s488_s15, 4608  }
  0x47   : > { %3609 = vsyncadd (%p3801_p8), %s488_s15, 4294962688  ;;  %p541_p3 = scmp.lt.s32.totalorder %s3636_s27, 1  ;;  %v5076_v8 = vmov 0   ;;  %v3851_v9 = vld [vmem:[%s5052_s5 + $0x18] sm:$0xff]  ;;  %v560_v11 = vld [vmem:[%s5054_s7 + $0x20] sm:$0xff]  ;;  %vm592_vm0 = vcmask 261120  }
  0x48   : > { %3349 = vset.pattern.permute.xlu2 %v5076_v8  ;;  %3348 = vset.pattern.permute.xlu1 %v5076_v8  ;;  %v653_v10 = vld [vmem:[%s3832_s19 + $0x38] sm:$0xff]  ;;  %v652_v14 = vld [vmem:[%s3832_s19 + $0x30] sm:$0xff]  ;;  %v651_v15 = vld [vmem:[%s3832_s19 + $0x28] sm:$0xff]  ;;  %vm670_vm1 = vcmask 523264   ;;  %v5080_v42 = vmov 1   ;;  %v5081_v54 = vmov 2  }
  0x49   : > { %s542_s11 = scalar_select %p541_p3, %s3636_s27, 1  ;;  %3347 = vset.pattern.permute.xlu0 %v5076_v8  ;;  %757 = vperm.xlu2 %3349, %v3851_v9   ;;  %v650_v17 = vld [vmem:[%s3832_s19 + $0x20] sm:$0xff]  ;;  %v3878_v20 = vld [vmem:[%s5052_s5 + $0x10] sm:$0xff]  ;;  %v649_v21 = vld [vmem:[%s3832_s19 + $0x18] sm:$0xff]  ;;  %v5074_v7 = vmov 3   ;;  %vm1776_vm2 = vcmask 64512  }
  0x4a   : > { %772 = vmatpush.msra.mxu2 %v653_v10  ;;  %584 = vperm.xlu1 %3348, %v560_v11   ;;  %v550_v19 = vld [vmem:[%s5053_s6] sm:$0xff]  ;;  %v561_v22 = vld [vmem:[%s5054_s7 + $0x28] sm:$0xff]  ;;  %v558_v23 = vld [vmem:[%s5054_s7 + $0x10] sm:$0xff]  ;;  %s3662_s13 = smov 112   ;;  %s5127_s23 = sld [smem:[#allocation36_spill]]  ;;  %vm2577_vm3 = vcmask 130048  }
  0x4b   : > { %s3059_s22 = sshll.u32 %s542_s11, 5  ;;  %v3210_v24 = vld [vmem:[%s3834_s20 + $0x38] sm:$0xff]   ;;  %574 = vperm.xlu0 %3347, %v558_v23   ;;  %v648_v25 = vld [vmem:[%s3832_s19 + $0x10] sm:$0xff]  ;;  %v647_v31 = vld [vmem:[%s3832_s19 + $0x8] sm:$0xff]  ;;  %s538_s17 = sand.u32 1, %s3612_s21  }
  0x4c   : > { %s545_s14 = scalar_lea.vmem %s5047_s0, %s3059_s22  ;;  %773 = vmatpush.msra.mxu2 %v652_v14  ;;  %v3091_v26 = vunpack.c.h.bf16 %v3210_v24  ;;  %v3206_v27 = vld [vmem:[%s3834_s20 + $0x18] sm:$0xff]   ;;  %v3209_v28 = vld [vmem:[%s3834_s20 + $0x30] sm:$0xff]   ;;  %v3090_v32 = vunpack.c.l.bf16 %v3210_v24  ;;  %v646_v33 = vld [vmem:[%s3832_s19] sm:$0xff]  ;;  %s3249_s15 = smul.u32 24, %s538_s17 }
  0x4d   : > { %v3858_v12 = vld [vmem:[%s545_s14 + $0x18] sm:$0xff]  ;;  %v3860_v13 = vld [vmem:[%s545_s14 + $0x10] sm:$0xff]  ;;  %v3865_v16 = vld [vmem:[%s545_s14 + $0x8] sm:$0xff]  ;;  %v3075_v29 = vunpack.c.h.bf16 %v3206_v27  ;;  %v3074_v30 = vunpack.c.l.bf16 %v3206_v27  ;;  %v3087_v35 = vunpack.c.h.bf16 %v3209_v28  ;;  %v3086_v43 = vunpack.c.l.bf16 %v3209_v28  ;;  %s5150_s21 = sld [smem:[#allocation8_spill]] (%p3810_p12)  ;;  %s3250_s29 = smul.u32 (%p3810_p12), 6, %s3636_s27 }
  0x4e   : > { %623 = vmatpush.msra.mxu1 %v3858_v12  ;;  %774 = vmatpush.msra.mxu2 %v651_v15  ;;  %v3869_v18 = vld [vmem:[%s545_s14] sm:$0xff]  ;;  %v559_v34 = vld [vmem:[%s5054_s7 + $0x18] sm:$0xff]  ;;  %v3205_v36 = vld [vmem:[%s3834_s20 + $0x10] sm:$0xff]   ;;  %s540_s11 = scalar_lea.vmem [#allocation5], %s3249_s15  ;;  %s5151_s26 = sld [smem:[#allocation37_spill]] (%p3810_p12) }
  0x4f   : > { %3239 = vmatpush.msra.mxu3 %v3091_v26  ;;  %v551_v37 = vld [vmem:[%s5053_s6 + $0x8] sm:$0xff]  ;;  %v3071_v39 = vunpack.c.h.bf16 %v3205_v36  ;;  %v3070_v44 = vunpack.c.l.bf16 %v3205_v36  ;;  %v552_v47 = vld [vmem:[%s5053_s6 + $0x10] sm:$0xff]  ;;  %v3218_v48 = vld [vmem:[%s3834_s20 + $0x78] sm:$0xff]  }
  0x50   : > { %624 = vmatpush.msra.mxu1 %v3860_v13  ;;  %775 = vmatpush.msra.mxu2 %v650_v17  ;;  %v3906_v38 = vld [vmem:[%s5052_s5 + $0x8] sm:$0xff]  ;;  %v3061_v49 = vld [vmem:[%s3834_s20] sm:$0xff]   ;;  %v3123_v53 = vunpack.c.h.bf16 %v3218_v48  ;;  %v3122_v57 = vunpack.c.l.bf16 %v3218_v48  ;;  %v3214_v59 = vld [vmem:[%s3834_s20 + $0x58] sm:$0xff]  }
  0x51   : > { %752 = vperm.xlu2 %3349, %v3878_v20   ;;  %3240 = vmatpush.msra.mxu3 %v3090_v32  ;;  %v3208_v40 = vld [vmem:[%s3834_s20 + $0x28] sm:$0xff]   ;;  %v3928_v50 = vld [vmem:[%s5052_s5] sm:$0xff]  ;;  %v3063_v56 = vunpack.c.h.bf16 %v3061_v49  ;;  %v3217_v60 = vld [vmem:[%s3834_s20 + $0x70] sm:$0xff]   ;;  %v3062_v63 = vunpack.c.l.bf16 %v3061_v49  ;;  %v3107_v0 = vunpack.c.h.bf16 %v3214_v59  ;;  %v3106_v3 = vunpack.c.l.bf16 %v3214_v59 }
  0x52   : > { %625 = vmatpush.msra.mxu1 %v3865_v16  ;;  %776 = vmatpush.msra.mxu2 %v649_v21  ;;  %v3204_v41 = vld [vmem:[%s3834_s20 + $0x8] sm:$0xff]   ;;  %v3083_v45 = vunpack.c.h.bf16 %v3208_v40  ;;  %v3931_v51 = vld [vmem:[%s3834_s20 + $0x20] sm:$0xff]   ;;  %v3082_v55 = vunpack.c.l.bf16 %v3208_v40  ;;  %v553_v61 = vld [vmem:[%s5053_s6 + $0x18] sm:$0xff]  ;;  %v3119_v2 = vunpack.c.h.bf16 %v3217_v60  ;;  %v3118_v5 = vunpack.c.l.bf16 %v3217_v60 }
  0x53   : > { %589 = vperm.xlu1 %3348, %v561_v22   ;;  %3241 = vmatpush.msra.mxu3 %v3087_v35  ;;  %v3067_v46 = vunpack.c.h.bf16 %v3204_v41  ;;  %v3066_v52 = vunpack.c.l.bf16 %v3204_v41  ;;  %v3079_v58 = vunpack.c.h.bf16 %v3931_v51  ;;  %v3078_v62 = vunpack.c.l.bf16 %v3931_v51  ;;  %v3213_v1 = vld [vmem:[%s3834_s20 + $0x50] sm:$0xff]   ;;  %v3216_v4 = vld [vmem:[%s3834_s20 + $0x68] sm:$0xff]   ;;  %v3215_v14 = vld [vmem:[%s3834_s20 + $0x60] sm:$0xff]   ;;  %s2674_s18 = sadd.s32 (%p3810_p12), %s5150_s21, %s3250_s29 }
  0x54   : > { %626 = vmatpush.msra.mxu1 %v3869_v18  ;;  %777 = vmatpush.msra.mxu2 %v648_v25  ;;  %v3103_v6 = vunpack.c.h.bf16 %v3213_v1  ;;  %v3115_v10 = vunpack.c.h.bf16 %v3216_v4  ;;  %v3212_v11 = vld [vmem:[%s3834_s20 + $0x48] sm:$0xff]   ;;  %v554_v15 = vld [vmem:[%s5053_s6 + $0x20] sm:$0xff]  ;;  %v3102_v17 = vunpack.c.l.bf16 %v3213_v1  ;;  %v3111_v22 = vunpack.c.h.bf16 %v3215_v14  ;;  %v3234_v49 = vld [vmem:[%s3834_s20 + $0xf8] sm:$0xff]   ;;  %s3056_s14 = sshll.u32 (%p3810_p12), %s2674_s18, 3 }
  0x55   : > { %2834 = vmatmul.msk.f32.vlgmr.msra.gmra.mxu1 %vm592_vm0, %v550_v19  ;;  %579 = vperm.xlu0 %3347, %v559_v34   ;;  %v3114_v19 = vunpack.c.l.bf16 %v3216_v4  ;;  %v3099_v21 = vunpack.c.h.bf16 %v3212_v11  ;;  %v3211_v23 = vld [vmem:[%s3834_s20 + $0x40] sm:$0xff]   ;;  %v3098_v24 = vunpack.c.l.bf16 %v3212_v11  ;;  %v3110_v25 = vunpack.c.l.bf16 %v3215_v14  ;;  %v555_v27 = vld [vmem:[%s5053_s6 + $0x28] sm:$0xff]  ;;  %s2676_s1 = scalar_lea.vmem (%p3810_p12), %s5151_s26, %s3056_s14 }
  0x56   : > { %703 = vmatpush.msrb.mxu1 %v3075_v29  ;;  %778 = vmatpush.msra.mxu2 %v647_v31  ;;  %v3094_v28 = vunpack.c.l.bf16 %v3211_v23  ;;  %v5072_v29 = vmov 4   ;;  %v5078_v31 = vmov 6   ;;  %v556_v40 = vld [vmem:[%s5054_s7] sm:$0xff]  ;;  %v3224_v11 = vld [vmem:[%s3834_s20 + $0xa8] sm:$0xff]  }
  0x57   : > { %3242 = vmatpush.msra.mxu3 %v3086_v43  ;;  %1062 = vmatpush.msra.mxu0 %v3123_v53  ;;  %v3228_v14 = vld [vmem:[%s3834_s20 + $0xc8] sm:$0xff]  }
  0x58   : > { %704 = vmatpush.msrb.mxu1 %v3074_v30  ;;  %779 = vmatpush.msra.mxu2 %v646_v33  ;;  %v5070_v30 = vmov 5  }
  0x59   : > { %2848 = vmatmul.msk.f32.vlgmr.msra.gmra.mxu2 %vm670_vm1, %v3869_v18  ;;  %3351 = vset.pattern.permute.xlu2 %v5080_v42 }
  0x5a   : > { %892 = vperm.xlu2 %3351, %v3878_v20   ;;  %850 = vmatpush.msrb.mxu2 %v3091_v26  ;;  %v3095_v26 = vunpack.c.h.bf16 %v3211_v23  ;;  %v3146_v23 = vunpack.c.l.bf16 %v3224_v11 }
  0x5b   : > { %747 = vperm.xlu1 %3348, %v3906_v38   ;;  %705 = vmatpush.msrb.mxu1 %v3071_v39 }
  0x5c   : > { %851 = vmatpush.msrb.mxu2 %v3090_v32  ;;  %3243 = vmatpush.msra.mxu3 %v3083_v45  ;;  %v5068_v32 = vmov 7  }
  0x5d   : > { %2835 = vmatmul.msk.f32.gmra.mxu1 %vm592_vm0, %v551_v37  ;;  %3350 = vset.pattern.permute.xlu0 %v5080_v42 }
  0x5e   : > { %706 = vmatpush.msrb.mxu1 %v3070_v44  ;;  %852 = vmatpush.msrb.mxu2 %v3087_v35  ;;  %v5066_v35 = vmov 8   ;;  %v3226_v44 = vld [vmem:[%s3834_s20 + $0xb8] sm:$0xff]  }
  0x5f   : > { %896 = vperm.xlu0 %3350, %v3851_v9   ;;  %1063 = vmatpush.msra.mxu0 %v3122_v57  ;;  %v3154_v51 = vunpack.c.l.bf16 %v3226_v44  ;;  %v3225_v57 = vld [vmem:[%s3834_s20 + $0xb0] sm:$0xff]  }
  0x60   : > { %707 = vmatpush.msrb.mxu1 %v3067_v46  ;;  %853 = vmatpush.msrb.mxu2 %v3086_v43  ;;  %v3222_v43 = vld [vmem:[%s3834_s20 + $0x98] sm:$0xff]   ;;  %v3151_v60 = vunpack.c.h.bf16 %v3225_v57  ;;  %v3150_v4 = vunpack.c.l.bf16 %v3225_v57 }
  0x61   : > { %2849 = vmatmul.msk.f32.gmra.mxu2 %vm670_vm1, %v3865_v16  ;;  %3244 = vmatpush.msra.mxu3 %v3082_v55  ;;  %v3139_v46 = vunpack.c.h.bf16 %v3222_v43  ;;  %v3138_v53 = vunpack.c.l.bf16 %v3222_v43 }
  0x62   : > { %3353 = vset.pattern.permute.xlu2 %v5076_v8  ;;  %854 = vmatpush.msrb.mxu2 %v3083_v45  ;;  %v3230_v45 = vld [vmem:[%s3834_s20 + $0xd8] sm:$0xff]  }
  0x63   : > { %3352 = vset.pattern.permute.xlu1 %v5081_v54  ;;  %742 = vperm.xlu2 %3353, %v3928_v50   ;;  %v3171_v48 = vunpack.c.h.bf16 %v3230_v45 }
  0x64   : > { %1002 = vperm.xlu1 %3352, %v3851_v9   ;;  %708 = vmatpush.msrb.mxu1 %v3066_v52  ;;  %v3186_v52 = vunpack.c.l.bf16 %v3234_v49 }
  0x65   : > { %2836 = vmatmul.msk.f32.gmra.mxu1 %vm592_vm0, %v552_v47  ;;  %855 = vmatpush.msrb.mxu2 %v3082_v55  ;;  %v3155_v47 = vunpack.c.h.bf16 %v3226_v44  ;;  %v3170_v55 = vunpack.c.l.bf16 %v3230_v45  ;;  %v3231_v45 = vld [vmem:[%s3834_s20 + $0xe0] sm:$0xff]  }
  0x66   : > { %709 = vmatpush.msrb.mxu1 %v3063_v56  ;;  %1064 = vmatpush.msra.mxu0 %v3119_v2  ;;  %v3221_v56 = vld [vmem:[%s3834_s20 + $0x90] sm:$0xff]   ;;  %v793_v2 = vld [vmem:[%s5055_s8] sm:$0xff] }
  0x67   : > { %856 = vmatpush.msrb.mxu2 %v3079_v58  ;;  %888 = vperm.xlu0 %3350, %v3906_v38   ;;  %v3135_v59 = vunpack.c.h.bf16 %v3221_v56 }
  0x68   : > { %710 = vmatpush.msrb.mxu1 %v3062_v63  ;;  %1065 = vmatpush.msra.mxu0 %v3118_v5 }
  0x69   : > { %2850 = vmatmul.msk.f32.gmra.mxu2 %vm670_vm1, %v3860_v13  ;;  %3245 = vmatpush.msra.mxu3 %v3079_v58  ;;  %v3229_v58 = vld [vmem:[%s3834_s20 + $0xd0] sm:$0xff]  }
  0x6a   : > { %857 = vmatpush.msrb.mxu2 %v3078_v62  ;;  %1066 = vmatpush.msra.mxu0 %v3115_v10  ;;  %v3166_v5 = vunpack.c.l.bf16 %v3229_v58  ;;  %v3220_v10 = vld [vmem:[%s3834_s20 + $0x88] sm:$0xff]  }
  0x6b   : > { %3354 = vset.pattern.permute.xlu2 %v5074_v7  ;;  %3246 = vmatpush.msra.mxu3 %v3078_v62  ;;  %v3233_v62 = vld [vmem:[%s3834_s20 + $0xf0] sm:$0xff]  }
  0x6c   : > { %998 = vperm.xlu1 %3352, %v3878_v20   ;;  %956 = vmatpush.msra.mxu2 %v3107_v0  ;;  %v3183_v0 = vunpack.c.h.bf16 %v3233_v62 }
  0x6d   : > { %2837 = vmatmul.msk.f32.gmra.mxu1 %vm592_vm0, %v553_v61  ;;  %1108 = vperm.xlu2 %3354, %v3851_v9   ;;  %v3167_v61 = vunpack.c.h.bf16 %v3229_v58 }
  0x6e   : > { %957 = vmatpush.msra.mxu2 %v3106_v3  ;;  %1067 = vmatpush.msra.mxu0 %v3114_v19  ;;  %v3134_v3 = vunpack.c.l.bf16 %v3221_v56  ;;  %v3163_v19 = vunpack.c.h.bf16 %v3228_v14 }
  0x6f   : > { %2862 = vmatmul.msk.f32.vlgmr.msra.gmra.mxu3 %vm670_vm1, %v3860_v13  ;;  %884 = vperm.xlu0 %3350, %v3928_v50  }
  0x70   : > { %958 = vmatpush.msra.mxu2 %v3103_v6  ;;  %1068 = vmatpush.msra.mxu0 %v3111_v22  ;;  %v3182_v6 = vunpack.c.l.bf16 %v3233_v62 }
  0x71   : > { %2851 = vmatmul.msk.f32.gmra.mxu2 %vm670_vm1, %v3858_v12  ;;  %1168 = vmatpush.msra.mxu1 %v3139_v46 }
  0x72   : > { %959 = vmatpush.msra.mxu2 %v3102_v17  ;;  %1069 = vmatpush.msra.mxu0 %v3110_v25  ;;  %v3147_v17 = vunpack.c.h.bf16 %v3224_v11  ;;  %v3130_v25 = vunpack.c.l.bf16 %v3220_v10 }
  0x73   : > { %2892 = vmatmul.msk.f32.vlgmr.msra.gmra.mxu0 %vm670_vm1, %v3869_v18  ;;  %1274 = vmatpush.msrb.mxu3 %v3155_v47 }
  0x74   : > { %994 = vperm.xlu1 %3352, %v3906_v38   ;;  %960 = vmatpush.msra.mxu2 %v3099_v21  ;;  %v3232_v21 = vld [vmem:[%s3834_s20 + $0xe8] sm:$0xff]  }
  0x75   : > { %2838 = vmatmul.msk.f32.gmra.mxu1 %vm592_vm0, %v554_v15  ;;  %1104 = vperm.xlu2 %3354, %v3878_v20   ;;  %v3131_v15 = vunpack.c.h.bf16 %v3220_v10  ;;  %v3179_v22 = vunpack.c.h.bf16 %v3232_v21 }
  0x76   : > { %961 = vmatpush.msra.mxu2 %v3098_v24  ;;  %1275 = vmatpush.msrb.mxu3 %v3154_v51  ;;  %v3178_v24 = vunpack.c.l.bf16 %v3232_v21 }
  0x77   : > { %2863 = vmatmul.msk.f32.gmra.mxu3 %vm670_vm1, %v3858_v12  ;;  %3355 = vset.pattern.permute.xlu0 %v5072_v29 }
  0x78   : > { %962 = vmatpush.msra.mxu2 %v3095_v26  ;;  %1214 = vperm.xlu0 %3355, %v3851_v9   ;;  %v3162_v26 = vunpack.c.l.bf16 %v3228_v14 }
  0x79   : > { %2860 = vmatmul.msk.f32.vlgmr.msrb.gmra.mxu2 %vm670_vm1, %v3869_v18  ;;  %1169 = vmatpush.msra.mxu1 %v3138_v53  ;;  %v3174_v53 = vunpack.c.l.bf16 %v3231_v45 }
  0x7a   : > { %963 = vmatpush.msra.mxu2 %v3094_v28  ;;  %1276 = vmatpush.msrb.mxu3 %v3151_v60  ;;  %v3219_v28 = vld [vmem:[%s3834_s20 + $0x80] sm:$0xff]  }
  0x7b   : > { %2893 = vmatmul.msk.f32.gmra.mxu0 %vm670_vm1, %v3865_v16  ;;  %1170 = vmatpush.msra.mxu1 %v3135_v59 }
  0x7c   : > { %990 = vperm.xlu1 %3352, %v3928_v50   ;;  %1380 = vmatpush.msrb.mxu2 %v3171_v48  ;;  %v3175_v48 = vunpack.c.h.bf16 %v3231_v45 }
  0x7d   : > { %2839 = vmatmul.msk.f32.gmra.mxu1 %vm592_vm0, %v555_v27  ;;  %1100 = vperm.xlu2 %3354, %v3906_v38  }
  0x7e   : > { %1381 = vmatpush.msrb.mxu2 %v3170_v55  ;;  %1171 = vmatpush.msra.mxu1 %v3134_v3 }
  0x7f   : > { %1277 = vmatpush.msrb.mxu3 %v3150_v4  ;;  %v796_v4 = vld [vmem:[%s5055_s8 + $0x18] sm:$0xff] }
  0x80   : > { %3358 = vset.pattern.permute.xlu0 %v5074_v7  ;;  %1382 = vmatpush.msrb.mxu2 %v3167_v61  ;;  %v795_v61 = vld [vmem:[%s5055_s8 + $0x10] sm:$0xff] }
  0x81   : > { %2861 = vmatmul.msk.f32.gmra.mxu2 %vm670_vm1, %v3865_v16  ;;  %1096 = vperm.xlu0 %3358, %v3928_v50  }
  0x82   : > { %1383 = vmatpush.msrb.mxu2 %v3166_v5  ;;  %1172 = vmatpush.msra.mxu1 %v3131_v15 }
  0x83   : > { %2894 = vmatmul.msk.f32.gmra.mxu0 %vm670_vm1, %v3860_v13  ;;  %1278 = vmatpush.msrb.mxu3 %v3147_v17 }
  0x84   : > { %3356 = vset.pattern.permute.xlu1 %v5072_v29  ;;  %1384 = vmatpush.msrb.mxu2 %v3163_v19 }
  0x85   : > { %2840 = vmatmul.msk.f32.vlgmr.msrb.gmra.mxu1 %vm670_vm1, %v3869_v18  ;;  %1210 = vperm.xlu1 %3356, %v3878_v20  }
  0x86   : > { %3357 = vset.pattern.permute.xlu2 %v5070_v30  ;;  %1173 = vmatpush.msra.mxu1 %v3130_v25 }
  0x87   : > { %1320 = vperm.xlu2 %3357, %v3851_v9   ;;  %1279 = vmatpush.msrb.mxu3 %v3146_v23  ;;  %v3238_v23 = vld [vmem:[%s3834_s20 + $0x118] sm:$0xff]  }
  0x88   : > { %1385 = vmatpush.msrb.mxu2 %v3162_v26  ;;  %v3202_v25 = vunpack.c.l.bf16 %v3238_v23  ;;  %v3237_v26 = vld [vmem:[%s3834_s20 + $0x110] sm:$0xff]  }
  0x89   : > { %2876 = vmatmul.msk.f32.vlgmr.msra.gmra.mxu2 %vm670_vm1, %v3869_v18  ;;  %3361 = vset.pattern.permute.xlu0 %v5070_v30 }
  0x8a   : > { %1312 = vperm.xlu0 %3361, %v3906_v38  }
  0x8b   : > { %2895 = vmatmul.msk.f32.gmra.mxu0 %vm670_vm1, %v3858_v12 }
  0x8d   : > { %2841 = vmatmul.msk.f32.gmra.mxu1 %vm670_vm1, %v3865_v16  ;;  %1206 = vperm.xlu1 %3356, %v3906_v38  }
  0x8f   : > { %1316 = vperm.xlu2 %3357, %v3878_v20  }
  0x91   : > { %2877 = vmatmul.msk.f32.gmra.mxu2 %vm670_vm1, %v3865_v16 }
  0x92   : > { %3365 = vset.pattern.permute.xlu0 %v5068_v32 }
  0x93   : > { %1528 = vperm.xlu0 %3365, %v3878_v20  }
  0x95   : > { %2842 = vmatmul.msk.f32.gmra.mxu1 %vm670_vm1, %v3860_v13  ;;  %3359 = vset.pattern.permute.xlu1 %v5078_v31 }
  0x96   : > { %1426 = vperm.xlu1 %3359, %v3851_v9  }
  0x97   : > { %3360 = vset.pattern.permute.xlu2 %v5072_v29 }
  0x98   : > { %1202 = vperm.xlu2 %3360, %v3928_v50  }
  0x99   : > { %2878 = vmatmul.msk.f32.gmra.mxu2 %vm670_vm1, %v3860_v13 }
  0x9b   : > { %1520 = vperm.xlu0 %3365, %v3928_v50  }
  0x9d   : > { %2843 = vmatmul.msk.f32.gmra.mxu1 %vm670_vm1, %v3858_v12 }
  0x9e   : > { %1422 = vperm.xlu1 %3359, %v3878_v20  }
  0xa0   : > { %3362 = vset.pattern.permute.xlu2 %v5068_v32 }
  0xa1   : > { %1532 = vperm.xlu2 %3362, %v3851_v9   ;;  %2879 = vmatmul.msk.f32.gmra.mxu2 %vm670_vm1, %v3858_v12 }
  0xa3   : > { %v4025_v33 = vpop.permute.xlu2 %757  ;;  %3370 = vset.pattern.permute.xlu0 %v5076_v8 }
  0xa6   : > { %3363 = vset.pattern.permute.xlu1 %v5070_v30 }
  0xa7   : > { %1308 = vperm.xlu1 %3363, %v3928_v50  }
  0xa9   : > { %3364 = vset.pattern.permute.xlu2 %v5078_v31 }
  0xaa   : > { %1418 = vperm.xlu2 %3364, %v3906_v38  }
  0xab   : > { %v4032_v34 = vpop.permute.xlu2 %752 }
  0xaf   : > { %3366 = vset.pattern.permute.xlu1 %v5066_v35 }
  0xb0   : > { %1638 = vperm.xlu1 %3366, %v3851_v9   ;;  %v1703_v9 = vld [vmem:[%s5051_s4] sm:$0xff] }
  0xb2   : > { %1414 = vperm.xlu2 %3364, %v3928_v50  }
  0xb4   : > { %v4038_v36 = vpop.permute.xlu2 %892 }
  0xb8   : > { %3367 = vset.pattern.permute.xlu1 %v5068_v32 }
  0xb9   : > { %1524 = vperm.xlu1 %3367, %v3906_v38  }
  0xba   : > { %3368 = vset.pattern.permute.xlu2 %v5066_v35 }
  0xbb   : > { %1634 = vperm.xlu2 %3368, %v3878_v20   ;;  %v557_v20 = vld [vmem:[%s5054_s7 + $0x8] sm:$0xff] }
  0xbc   : > { %v585_v62 = vpop.permute.xlu1 %584 }
  0xbd   : > { %v4044_v37 = vpop.permute.xlu2 %742  ;;  %v575_v27 = vpop.permute.xlu0 %574 }
  0xc1   : > { %3369 = vset.pattern.permute.xlu1 %v5066_v35 }
  0xc2   : > { %1630 = vperm.xlu1 %3369, %v3906_v38  }
  0xc3   : > { %1626 = vperm.xlu2 %3368, %v3928_v50   ;;  %v3187_v50 = vunpack.c.h.bf16 %v3234_v49 }
  0xc5   : > { %1486 = vmatpush.msrb.mxu0 %v3187_v50  ;;  %v794_v50 = vld [vmem:[%s5055_s8 + $0x8] sm:$0xff] }
  0xc7   : > { %v4052_v39 = vpop.permute.xlu2 %1108  ;;  %1487 = vmatpush.msrb.mxu0 %v3186_v52  ;;  %v3126_v52 = vunpack.c.l.bf16 %v3219_v28  ;;  %v580_v57 = vpop.permute.xlu0 %579 }
  0xc9   : > { %1488 = vmatpush.msrb.mxu0 %v3183_v0 }
  0xca   : > { %3371 = vset.pattern.permute.xlu1 %v5076_v8 }
  0xcb   : > { %3372 = vset.pattern.permute.xlu2 %v5076_v8  ;;  %1707 = vperm.xlu1 %3371, %v1703_v9   ;;  %v3223_v9 = vld [vmem:[%s3834_s20 + $0xa0] sm:$0xff]  }
  0xcc   : > { %569 = vperm.xlu2 %3372, %v557_v20   ;;  %1489 = vmatpush.msrb.mxu0 %v3182_v6  ;;  %v3227_v20 = vld [vmem:[%s3834_s20 + $0xc0] sm:$0xff]   ;;  %v3143_v43 = vunpack.c.h.bf16 %v3223_v9  ;;  %v3142_v51 = vunpack.c.l.bf16 %v3223_v9  ;;  %v590_v6 = vpop.permute.xlu1 %589 }
  0xcd   : > { %v3159_v44 = vunpack.c.h.bf16 %v3227_v20  ;;  %v3158_v55 = vunpack.c.l.bf16 %v3227_v20 }
  0xce   : > { %1490 = vmatpush.msrb.mxu0 %v3179_v22  ;;  %1280 = vmatpush.msrb.mxu3 %v3143_v43  ;;  %v3236_v43 = vld [vmem:[%s3834_s20 + $0x108] sm:$0xff]  }
  0xcf   : > { %v4064_v41 = vpop.permute.xlu2 %1104  ;;  %1386 = vmatpush.msrb.mxu2 %v3159_v44  ;;  %v3195_v44 = vunpack.c.h.bf16 %v3236_v43  ;;  %v3194_v45 = vunpack.c.l.bf16 %v3236_v43 }
  0xd0   : > { %1491 = vmatpush.msrb.mxu0 %v3178_v24  ;;  %1281 = vmatpush.msrb.mxu3 %v3142_v51  ;;  %v3203_v24 = vunpack.c.h.bf16 %v3238_v23 }
  0xd1   : > { %1387 = vmatpush.msrb.mxu2 %v3158_v55 }
  0xd2   : > { %v4059_v38 = vpop.f32.mrf.mxu1  ;;  %1492 = vmatpush.msrb.mxu0 %v3175_v48  ;;  %v3235_v48 = vld [vmem:[%s3834_s20 + $0x100] sm:$0xff]   ;;  %s5128_s20 = smov %s5127_s23 }
  0xd3   : > { %564 = vperm.xlu1 %3371, %v556_v40   ;;  %v3127_v40 = vunpack.c.h.bf16 %v3219_v28  ;;  %v3199_v28 = vunpack.c.h.bf16 %v3237_v26  ;;  %v3190_v55 = vunpack.c.l.bf16 %v3235_v48 }
  0xd4   : > { %1493 = vmatpush.msrb.mxu0 %v3174_v53 }
  0xd5   : > { %1174 = vmatpush.msra.mxu1 %v3127_v40  ;;  %v3198_v40 = vunpack.c.l.bf16 %v3237_v26 }
  0xd7   : > { %v4076_v1 = vpop.permute.xlu2 %1100  ;;  %1175 = vmatpush.msra.mxu1 %v3126_v52  ;;  %v3191_v52 = vunpack.c.h.bf16 %v3235_v48 }
  0xd9   : > { %1592 = vmatpush.msrb.mxu1 %v3203_v24 }
  0xda   : > { %v4074_v63 = vpop.f32.mrf.mxu1 }
  0xdb   : > { %799 = vperm.xlu1 %3371, %v793_v2   ;;  %1593 = vmatpush.msrb.mxu1 %v3202_v25 }
  0xdc   : > { %v4104_v56 = vpop.f32.mrf.mxu2 }
  0xdd   : > { %1594 = vmatpush.msrb.mxu1 %v3199_v28 }
  0xdf   : > { %1595 = vmatpush.msrb.mxu1 %v3198_v40 }
  0xe1   : > { %v4091_v49 = vpop.permute.xlu2 %1320  ;;  %1596 = vmatpush.msrb.mxu1 %v3195_v44 }
  0xe2   : > { %v634_v46 = vpop.f32.mrf.mxu1 }
  0xe3   : > { %v4089_v47 = vadd.f32 %v634_v46, %v575_v27  ;;  %804 = vperm.xlu1 %3371, %v794_v50   ;;  %v4205_v50 = vpop.permute.xlu1 %747  ;;  %1597 = vmatpush.msrb.mxu1 %v3194_v45 }
  0xe4   : > { %v4121_v0 = vpop.f32.mrf.mxu2 }
  0xe5   : > { %2844 = vmatmul.msk.f32.gmra.mxu1 %vm670_vm1, %v4089_v47  ;;  %2864 = vmatmul.msk.f32.gmra.mxu3 %vm670_vm1, %v4089_v47 }
  0xe6   : > { %2880 = vmatmul.msk.f32.gmra.mxu2 %vm670_vm1, %v4089_v47  ;;  %2896 = vmatmul.msk.f32.gmra.mxu0 %vm670_vm1, %v4089_v47 }
  0xe7   : > { %1598 = vmatpush.msrb.mxu1 %v3191_v52 }
  0xe9   : > { %v4108_v60 = vpop.permute.xlu2 %1316  ;;  %1599 = vmatpush.msrb.mxu1 %v3190_v55 }
  0xea   : > { %v637_v58 = vpop.f32.mrf.mxu1 }
  0xeb   : > { %v4106_v59 = vadd.f32 %v637_v58, %v580_v57  ;;  %809 = vperm.xlu1 %3371, %v795_v61   ;;  %v4216_v61 = vpop.permute.xlu1 %1002 }
  0xec   : > { %v4138_v11 = vpop.f32.mrf.mxu2 }
  0xed   : > { %2845 = vmatmul.msk.f32.gmra.mxu1 %vm670_vm1, %v4106_v59  ;;  %2865 = vmatmul.msk.f32.gmra.mxu3 %vm670_vm1, %v4106_v59 }
  0xee   : > { %2881 = vmatmul.msk.f32.gmra.mxu2 %vm670_vm1, %v4106_v59  ;;  %2897 = vmatmul.msk.f32.gmra.mxu0 %vm670_vm1, %v4106_v59 }
  0xf0   : > { %v1071_v43 = vpop.f32.mrf.mxu0 }
  0xf2   : > { %v640_v2 = vpop.f32.mrf.mxu1  ;;  %v4132_v5 = vpop.permute.xlu2 %1202 }
  0xf3   : > { %v4123_v3 = vadd.f32 %v640_v2, %v585_v62  ;;  %814 = vperm.xlu1 %3371, %v796_v4   ;;  %v999_v24 = vpop.permute.xlu1 %998 }
  0xf4   : > { %v4153_v17 = vpop.f32.mrf.mxu2 }
  0xf5   : > { %2846 = vmatmul.msk.f32.gmra.mxu1 %vm670_vm1, %v4123_v3  ;;  %2866 = vmatmul.msk.f32.gmra.mxu3 %vm670_vm1, %v4123_v3 }
  0xf6   : > { %2882 = vmatmul.msk.f32.gmra.mxu2 %vm670_vm1, %v4123_v3  ;;  %2898 = vmatmul.msk.f32.gmra.mxu0 %vm670_vm1, %v4123_v3 }
  0xf8   : > { %v1074_v48 = vpop.f32.mrf.mxu0 }
  0xfa   : > { %v643_v10 = vpop.f32.mrf.mxu1 }
  0xfb   : > { %v4140_v14 = vadd.f32 %v643_v10, %v590_v6  ;;  %v4150_v15 = vpop.permute.xlu2 %1532  ;;  %3374 = vset.pattern.permute.xlu1 %v5080_v42 }
  0xfc   : > { %v4173_v21 = vpop.f32.mrf.mxu2 }
  0xfd   : > { %2847 = vmatmul.msk.f32.gmra.mxu1 %vm670_vm1, %v4140_v14  ;;  %2867 = vmatmul.msk.f32.gmra.mxu3 %vm670_vm1, %v4140_v14 }
  0xfe   : > { %2883 = vmatmul.msk.f32.gmra.mxu2 %vm670_vm1, %v4140_v14  ;;  %2899 = vmatmul.msk.f32.gmra.mxu0 %vm670_vm1, %v4140_v14 }
 0x102   : > { %v4191_v20 = vpop.f32.mrf.mxu1 }
 0x104   : > { %v4163_v19 = vpop.permute.xlu2 %1418  ;;  %v4189_v9 = vpop.f32.mrf.mxu2 }
 0x105   : > { %2908 = vmatmul.msk.f32.vlgmr.msra.gmra.mxu1 %vm670_vm1, %v3869_v18  ;;  %2924 = vmatmul.msk.f32.vlgmr.msrb.gmra.mxu3 %vm670_vm1, %v3869_v18 }
 0x106   : > { %2940 = vmatmul.msk.f32.vlgmr.msrb.gmra.mxu2 %vm670_vm1, %v3869_v18  ;;  %2956 = vmatmul.msk.f32.vlgmr.msrb.gmra.mxu0 %vm670_vm1, %v3869_v18 }
 0x10a   : > { %v715_v53 = vpop.f32.mrf.mxu1 }
 0x10c   : > { %v4175_v22 = vpop.permute.xlu2 %1414  ;;  %v965_v51 = vpop.f32.mrf.mxu2 }
 0x10d   : > { %2909 = vmatmul.msk.f32.gmra.mxu1 %vm670_vm1, %v3865_v16  ;;  %2925 = vmatmul.msk.f32.gmra.mxu3 %vm670_vm1, %v3865_v16 }
 0x10e   : > { %2941 = vmatmul.msk.f32.gmra.mxu2 %vm670_vm1, %v3865_v16  ;;  %2957 = vmatmul.msk.f32.gmra.mxu0 %vm670_vm1, %v3865_v16 }
 0x112   : > { %v718_v2 = vpop.f32.mrf.mxu1 }
 0x113   : > { %v762_v4 = vmul.f32 %v4032_v34, %v718_v2 }
 0x114   : > { %v968_v62 = vpop.f32.mrf.mxu2 }
 0x115   : > { %2910 = vmatmul.msk.f32.gmra.mxu1 %vm670_vm1, %v3860_v13  ;;  %2926 = vmatmul.msk.f32.gmra.mxu3 %vm670_vm1, %v3860_v13  ;;  %v4187_v27 = vpop.permute.xlu2 %1634  ;;  %v788_v6 = vadd.f32 %v4138_v11, %v762_v4 }
 0x116   : > { %2942 = vmatmul.msk.f32.gmra.mxu2 %vm670_vm1, %v3860_v13  ;;  %2958 = vmatmul.msk.f32.gmra.mxu0 %vm670_vm1, %v3860_v13 }
 0x11a   : > { %v4253_v11 = vpop.f32.mrf.mxu1 }
 0x11b   : > { %v763_v35 = vmul.f32 %v4025_v33, %v4253_v11 }
 0x11c   : > { %v971_v25 = vpop.f32.mrf.mxu2 }
 0x11d   : > { %2911 = vmatmul.msk.f32.gmra.mxu1 %vm670_vm1, %v3858_v12  ;;  %2927 = vmatmul.msk.f32.gmra.mxu3 %vm670_vm1, %v3858_v12  ;;  %v4202_v46 = vpop.permute.xlu2 %1626  ;;  %v1007_v34 = vmul.f32 %v999_v24, %v971_v25  ;;  %v791_v7 = vadd.f32 %v4153_v17, %v763_v35 }
 0x11e   : > { %2943 = vmatmul.msk.f32.gmra.mxu2 %vm670_vm1, %v3858_v12  ;;  %2959 = vmatmul.msk.f32.gmra.mxu0 %vm670_vm1, %v3858_v12 }
 0x125   : > { %2912 = vmatmul.msk.f32.gmra.mxu1 %vm670_vm1, %v4089_v47  ;;  %2928 = vmatmul.msk.f32.gmra.mxu3 %vm670_vm1, %v4089_v47 }
 0x126   : > { %2944 = vmatmul.msk.f32.gmra.mxu2 %vm670_vm1, %v4089_v47  ;;  %2960 = vmatmul.msk.f32.gmra.mxu0 %vm670_vm1, %v4089_v47  ;;  %v570_v57 = vpop.permute.xlu2 %569 }
 0x127   : > { %v632_v58 = vadd.f32 %v4074_v63, %v570_v57  ;;  %v865_v63 = vpop.f32.mrf.mxu3 }
 0x128   : > { %v901_v10 = vmul.f32 %v4038_v36, %v865_v63  ;;  %v4251_v36 = vpop.permute.xlu0 %896  ;;  %v1077_v63 = vpop.f32.mrf.mxu0 }
 0x129   : > { %2253 = vmatpush.msra.mxu0 %v632_v58 }
 0x12a   : > { %v905_v23 = vadd.f32 %v901_v10, %v788_v6  ;;  %v761_v10 = vmul.f32 %v4205_v50, %v715_v53 }
 0x12c   : > { %v1011_v26 = vadd.f32 %v1007_v34, %v905_v23  ;;  %v785_v25 = vadd.f32 %v4121_v0, %v761_v10 }
 0x12d   : > { %2913 = vmatmul.msk.f32.gmra.mxu1 %vm670_vm1, %v4106_v59  ;;  %2929 = vmatmul.msk.f32.gmra.mxu3 %vm670_vm1, %v4106_v59 }
 0x12e   : > { %2945 = vmatmul.msk.f32.gmra.mxu2 %vm670_vm1, %v4106_v59  ;;  %2961 = vmatmul.msk.f32.gmra.mxu0 %vm670_vm1, %v4106_v59 }
 0x130   : > { %v889_v28 = vpop.permute.xlu0 %888 }
 0x135   : > { %2914 = vmatmul.msk.f32.gmra.mxu1 %vm670_vm1, %v4123_v3  ;;  %2930 = vmatmul.msk.f32.gmra.mxu3 %vm670_vm1, %v4123_v3 }
 0x136   : > { %2946 = vmatmul.msk.f32.gmra.mxu2 %vm670_vm1, %v4123_v3  ;;  %2962 = vmatmul.msk.f32.gmra.mxu0 %vm670_vm1, %v4123_v3 }
 0x13d   : > { %2915 = vmatmul.msk.f32.gmra.mxu1 %vm670_vm1, %v4140_v14  ;;  %2931 = vmatmul.msk.f32.gmra.mxu3 %vm670_vm1, %v4140_v14 }
 0x13e   : > { %2947 = vmatmul.msk.f32.gmra.mxu2 %vm670_vm1, %v4140_v14  ;;  %2963 = vmatmul.msk.f32.gmra.mxu0 %vm670_vm1, %v4140_v14 }
 0x145   : > { %2972 = vmatmul.msk.f32.vlgmr.msrb.gmra.mxu1 %vm670_vm1, %v3869_v18  ;;  %v885_v18 = vpop.permute.xlu0 %884 }
 0x146   : > { %v899_v57 = vmul.f32 %v885_v18, %v4173_v21 }
 0x14d   : > { %2973 = vmatmul.msk.f32.gmra.mxu1 %vm670_vm1, %v3865_v16  ;;  %v995_v16 = vpop.permute.xlu1 %994 }
 0x14e   : > { %v1006_v34 = vmul.f32 %v995_v16, %v968_v62 }
 0x155   : > { %2974 = vmatmul.msk.f32.gmra.mxu1 %vm670_vm1, %v3860_v13  ;;  %v4265_v13 = vpop.permute.xlu0 %1214  ;;  %v991_v52 = vpop.permute.xlu1 %990 }
 0x156   : > { %v1005_v2 = vmul.f32 %v991_v52, %v965_v51 }
 0x15d   : > { %2975 = vmatmul.msk.f32.gmra.mxu1 %vm670_vm1, %v3858_v12  ;;  %v760_v12 = vmul.f32 %v4044_v37, %v4191_v20  ;;  %v1097_v6 = vpop.permute.xlu0 %1096  ;;  %v868_v37 = vpop.f32.mrf.mxu3 }
 0x15e   : > { %v1111_v23 = vmul.f32 %v1097_v6, %v1071_v43  ;;  %v1211_v24 = vpop.permute.xlu1 %1210  ;;  %v1112_v43 = vmul.f32 %v4076_v1, %v1074_v48  ;;  %v902_v8 = vmul.f32 %v4251_v36, %v868_v37 }
 0x15f   : > { %v782_v55 = vadd.f32 %v4104_v56, %v760_v12  ;;  %v900_v56 = vmul.f32 %v889_v28, %v4189_v9  ;;  %v974_v12 = vpop.f32.mrf.mxu2  ;;  %v1113_v28 = vmul.f32 %v4064_v41, %v1077_v63 }
 0x160   : > { %v906_v54 = vadd.f32 %v902_v8, %v791_v7 }
 0x161   : > { %v903_v4 = vadd.f32 %v899_v57, %v782_v55  ;;  %v904_v52 = vadd.f32 %v900_v56, %v785_v25  ;;  %v1080_v55 = vpop.f32.mrf.mxu0 }
 0x162   : > { %v4257_v40 = vpop.f32.mrf.mxu1 }
 0x163   : > { %v1009_v20 = vadd.f32 %v1005_v2, %v903_v4  ;;  %v1010_v57 = vadd.f32 %v1006_v34, %v904_v52 }
 0x165   : > { %2976 = vmatmul.msk.f32.gmra.mxu1 %vm670_vm1, %v4089_v47  ;;  %v1115_v18 = vadd.f32 %v1111_v23, %v1009_v20  ;;  %v1116_v0 = vadd.f32 %v1112_v43, %v1010_v57  ;;  %v1117_v20 = vadd.f32 %v1113_v28, %v1011_v26  ;;  %v1313_v42 = vpop.permute.xlu0 %1312 }
 0x166   : > { %v1207_v2 = vpop.permute.xlu1 %1206 }
 0x168   : > { %v4285_v53 = vpop.f32.mrf.mxu3 }
 0x169   : > { %v4288_v9 = vpop.f32.mrf.mxu2 }
 0x16a   : > { %v4261_v44 = vpop.f32.mrf.mxu1  ;;  %5098 = vst [vmem:[#allocation15_spill] sm:$0xff] %v4288_v9 }
 0x16d   : > { %2977 = vmatmul.msk.f32.gmra.mxu1 %vm670_vm1, %v4106_v59 }
 0x16e   : > { %v1427_v34 = vpop.permute.xlu1 %1426 }
 0x170   : > { %v4293_v16 = vpop.f32.mrf.mxu3 }
 0x171   : > { %v4295_v56 = vpop.f32.mrf.mxu2 }
 0x172   : > { %v4267_v45 = vpop.f32.mrf.mxu1 }
 0x175   : > { %2978 = vmatmul.msk.f32.gmra.mxu1 %vm670_vm1, %v4123_v3 }
 0x176   : > { %v1423_v52 = vpop.permute.xlu1 %1422 }
 0x178   : > { %v4299_v48 = vpop.f32.mrf.mxu3 }
 0x17a   : > { %v4275_v58 = vpop.f32.mrf.mxu1 }
 0x17d   : > { %2979 = vmatmul.msk.f32.gmra.mxu1 %vm670_vm1, %v4140_v14 }
 0x180   : > { %v4307_v63 = vpop.f32.mrf.mxu3 }
 0x182   : > { %v1177_v21 = vpop.f32.mrf.mxu1 }
 0x183   : > { %v1217_v51 = vmul.f32 %v4132_v5, %v1177_v21  ;;  %v4291_v5 = vpop.f32.mrf.mxu0 }
 0x184   : > { %5099 = vst [vmem:[#allocation16_spill] sm:$0xff] %v4291_v5  ;;  %v1114_v5 = vmul.f32 %v4052_v39, %v1080_v55 }
 0x185   : > { %v4283_v50 = vadd.f32 %v1217_v51, %v1115_v18  ;;  %v4301_v18 = vpop.f32.mrf.mxu2 }
 0x186   : > { %5101 = vst [vmem:[#allocation18_spill] sm:$0xff] %v4301_v18 }
 0x188   : > { %v1283_v43 = vpop.f32.mrf.mxu3 }
 0x18a   : > { %v1180_v4 = vpop.f32.mrf.mxu1 }
 0x18b   : > { %v1218_v6 = vmul.f32 %v1207_v2, %v1180_v4  ;;  %v4297_v1 = vpop.f32.mrf.mxu0  ;;  %v1309_v2 = vpop.permute.xlu1 %1308 }
 0x18c   : > { %5100 = vst [vmem:[#allocation17_spill] sm:$0xff] %v4297_v1 }
 0x18d   : > { %v1222_v62 = vadd.f32 %v1218_v6, %v1116_v0  ;;  %v4309_v26 = vpop.f32.mrf.mxu2 }
 0x18e   : > { %5104 = vst [vmem:[#allocation21_spill] sm:$0xff] %v4309_v26  ;;  %v1323_v26 = vmul.f32 %v1309_v2, %v1283_v43 }
 0x190   : > { %v1286_v28 = vpop.f32.mrf.mxu3 }
 0x192   : > { %v1183_v10 = vpop.f32.mrf.mxu1 }
 0x193   : > { %v1219_v23 = vmul.f32 %v1211_v24, %v1183_v10  ;;  %v4305_v41 = vpop.f32.mrf.mxu0  ;;  %v1639_v10 = vpop.permute.xlu1 %1638 }
 0x194   : > { %5103 = vst [vmem:[#allocation20_spill] sm:$0xff] %v4305_v41  ;;  %v1529_v41 = vpop.permute.xlu0 %1528 }
 0x195   : > { %v1223_v25 = vadd.f32 %v1219_v23, %v1117_v20  ;;  %v1389_v0 = vpop.f32.mrf.mxu2 }
 0x198   : > { %v1289_v30 = vpop.f32.mrf.mxu3 }
 0x199   : > { %v1325_v17 = vmul.f32 %v4108_v60, %v1289_v30  ;;  %v1429_v30 = vmul.f32 %v4175_v22, %v1389_v0 }
 0x19a   : > { %v1186_v21 = vpop.f32.mrf.mxu1 }
 0x19b   : > { %v4313_v57 = vpop.f32.mrf.mxu0  ;;  %v1525_v31 = vpop.permute.xlu1 %1524  ;;  %v1220_v33 = vmul.f32 %v4265_v13, %v1186_v21  ;;  %v1329_v39 = vadd.f32 %v1325_v17, %v1223_v25  ;;  %v1704_v25 = vld [vmem:[%s5051_s4 + $0x8] sm:$0xff] }
 0x19c   : > { %5106 = vst [vmem:[#allocation23_spill] sm:$0xff] %v4313_v57  ;;  %v1521_v60 = vpop.permute.xlu0 %1520  ;;  %1712 = vperm.xlu0 %3370, %v1704_v25  }
 0x19d   : > { %v1392_v23 = vpop.f32.mrf.mxu2 }
 0x19e   : > { %v1430_v13 = vmul.f32 %v4163_v19, %v1392_v23 }
 0x1a2   : > { %v4303_v51 = vpop.f32.mrf.mxu1 }
 0x1a3   : > { %5102 = vst [vmem:[#allocation19_spill] sm:$0xff] %v4303_v51  ;;  %v1495_v6 = vpop.f32.mrf.mxu0  ;;  %v1631_v11 = vpop.permute.xlu1 %1630 }
 0x1a5   : > { %v1395_v1 = vpop.f32.mrf.mxu2 }
 0x1aa   : > { %v4311_v24 = vpop.f32.mrf.mxu1 }
 0x1ab   : > { %5105 = vst [vmem:[#allocation22_spill] sm:$0xff] %v4311_v24  ;;  %v1498_v32 = vpop.f32.mrf.mxu0  ;;  %v1008_v24 = vmul.f32 %v4216_v61, %v974_v12  ;;  %v1324_v61 = vmul.f32 %v1313_v42, %v1286_v28 }
 0x1ac   : > { %v1536_v28 = vmul.f32 %v1525_v31, %v1498_v32 }
 0x1ad   : > { %v1012_v9 = vadd.f32 %v1008_v24, %v906_v54  ;;  %v1398_v8 = vpop.f32.mrf.mxu2  ;;  %v1431_v54 = vmul.f32 %v1423_v52, %v1395_v1  ;;  %v1328_v24 = vadd.f32 %v1324_v61, %v1222_v62  ;;  %v1535_v52 = vmul.f32 %v1521_v60, %v1495_v6 }
 0x1ae   : > { %v1432_v12 = vmul.f32 %v1427_v34, %v1398_v8  ;;  %v5114_v8 = vmov 1  }
 0x1af   : > { %v1118_v57 = vadd.f32 %v1114_v5, %v1012_v9  ;;  %v1708_v5 = vpop.permute.xlu1 %1707  ;;  %v1435_v42 = vadd.f32 %v1431_v54, %v1329_v39  ;;  %v1434_v62 = vadd.f32 %v1430_v13, %v1328_v24 }
 0x1b1   : > { %v1224_v36 = vadd.f32 %v1220_v33, %v1118_v57  ;;  %v1540_v2 = vadd.f32 %v1536_v28, %v1434_v62 }
 0x1b2   : > { %v4315_v4 = vpop.f32.mrf.mxu1 }
 0x1b3   : > { %5107 = vst [vmem:[#allocation24_spill] sm:$0xff] %v4315_v4  ;;  %v1501_v4 = vpop.f32.mrf.mxu0 }
 0x1b4   : > { %v1537_v57 = vmul.f32 %v1529_v41, %v1501_v4 }
 0x1b7   : > { %v565_v0 = vpop.permute.xlu1 %564 }
 0x1b8   : > { %v629_v6 = vadd.f32 %v4059_v38, %v565_v0 }
 0x1ba   : > { %v4317_v20 = vpop.f32.mrf.mxu1 }
 0x1bb   : > { %5108 = vst [vmem:[#allocation25_spill] sm:$0xff] %v4317_v20  ;;  %v1292_v20 = vpop.f32.mrf.mxu3  ;;  %v1504_v55 = vpop.f32.mrf.mxu0 }
 0x1bc   : > { %v1326_v35 = vmul.f32 %v4091_v49, %v1292_v20  ;;  %v1538_v21 = vmul.f32 %v4150_v15, %v1504_v55  ;;  %v1327_v49 = vadd.f32 %v1323_v26, %v4283_v50  ;;  %v1541_v26 = vadd.f32 %v1537_v57, %v1435_v42 }
 0x1be   : > { %v1330_v37 = vadd.f32 %v1326_v35, %v1224_v36  ;;  %v1433_v43 = vadd.f32 %v1429_v30, %v1327_v49  ;;  %v5113_v36 = vmov 2  }
 0x1c0   : > { %v1436_v9 = vadd.f32 %v1432_v12, %v1330_v37  ;;  %v1539_v32 = vadd.f32 %v1535_v52, %v1433_v43 }
 0x1c2   : > { %v1601_v29 = vpop.f32.mrf.mxu1  ;;  %v1542_v1 = vadd.f32 %v1538_v21, %v1436_v9 }
 0x1c3   : > { %v1641_v41 = vmul.f32 %v4202_v46, %v1601_v29  ;;  %v1702_v29 = vld [vmem:[%s5050_s3 + $0x8] sm:$0xff]  ;;  %v4346_v46 = vpop.f32.mrf.mxu3 }
 0x1c4   : > { %5109 = vst [vmem:[#allocation26_spill] sm:$0xff] %v4346_v46 }
 0x1c5   : > { %v1645_v20 = vadd.f32 %v1641_v41, %v1539_v32 }
 0x1ca   : > { %v1604_v51 = vpop.f32.mrf.mxu1 }
 0x1cb   : > { %v1642_v50 = vmul.f32 %v1631_v11, %v1604_v51  ;;  %v4348_v51 = vpop.f32.mrf.mxu3 }
 0x1cc   : > { %5110 = vst [vmem:[#allocation27_spill] sm:$0xff] %v4348_v51 }
 0x1cd   : > { %v1646_v4 = vadd.f32 %v1642_v50, %v1540_v2 }
 0x1d2   : > { %v1607_v7 = vpop.f32.mrf.mxu1 }
 0x1d3   : > { %v1643_v19 = vmul.f32 %v4187_v27, %v1607_v7  ;;  %v1701_v27 = vld [vmem:[%s5050_s3] sm:$0xff] }
 0x1d5   : > { %v1647_v31 = vadd.f32 %v1643_v19, %v1541_v26 }
 0x1da   : > { %v1610_v34 = vpop.f32.mrf.mxu1 }
 0x1db   : > { %v1644_v15 = vmul.f32 %v1639_v10, %v1610_v34  ;;  %v4350_v10 = vpop.f32.mrf.mxu3 }
 0x1dc   : > { %5111 = vst [vmem:[#allocation28_spill] sm:$0xff] %v4350_v10 }
 0x1dd   : > { %v1648_v22 = vadd.f32 %v1644_v15, %v1542_v1  ;;  %v4378_v1 = vpop.f32.mrf.mxu0 }
 0x1de   : > { %5115 = vst [vmem:[#allocation30_spill] sm:$0xff] %v4378_v1 }
 0x1df   : > { %1733 = vmatpush.msra.mxu3 %v1648_v22 }
 0x1e1   : > { %1734 = vmatpush.msra.mxu3 %v1647_v31 }
 0x1e3   : > { %1735 = vmatpush.msra.mxu3 %v1646_v4  ;;  %v4352_v23 = vpop.f32.mrf.mxu3 }
 0x1e4   : > { %5112 = vst [vmem:[#allocation29_spill] sm:$0xff] %v4352_v23 }
 0x1e5   : > { %1736 = vmatpush.msra.mxu3 %v1645_v20  ;;  %v4383_v50 = vpop.f32.mrf.mxu0 }
 0x1e6   : > { %2980 = vmatmul.msk.f32.vlgmr.msra.gmra.mxu3 %vm592_vm0, %v1701_v27  ;;  %5116 = vst [vmem:[#allocation31_spill] sm:$0xff] %v4383_v50 }
 0x1e7   : > { %1840 = vmatpush.msrb.mxu3 %v629_v6 }
 0x1ed   : > { %v4387_v2 = vpop.f32.mrf.mxu0 }
 0x1ee   : > { %2981 = vmatmul.msk.f32.gmra.mxu3 %vm592_vm0, %v1702_v29  ;;  %5117 = vst [vmem:[#allocation32_spill] sm:$0xff] %v4387_v2 }
 0x1f5   : > { %v4392_v4 = vpop.f32.mrf.mxu0 }
 0x1f6   : > { %5118 = vst [vmem:[#allocation33_spill] sm:$0xff] %v4392_v4 }
 0x20e   : > { %v1713_v11 = vpop.permute.xlu0 %1712 }
 0x269   : > { %v1738_v33 = vpop.f32.mrf.mxu3 }
 0x26a   : > { %v1739_v38 = vadd.f32 %v1738_v33, %v1708_v5 }
 0x26c   : > { %1744 = vxpose.xlu0.b32.start.end [1/1] (short) %v1739_v38, 128 }
 0x271   : > { %v1741_v35 = vpop.f32.mrf.mxu3 }
 0x272   : > { %v1742_v17 = vadd.f32 %v1741_v35, %v1713_v11 }
 0x274   : > { %2158 = vxpose.xlu2.b32.start.end [1/1] (short) %v1742_v17, 128 }
 0x2d3   : > { %3375 = vset.pattern.permute.xlu0 %v5113_v36 }
 0x2d6   : > { %3373 = vset.pattern.permute.xlu2 %v5114_v8 }
 0x30d   : > { %v2174_v7 = vpop.trf.xlu2 }
 0x30e   : > { %3016 = vmatmul.msk.f32.vlgmr.msra.gmra.mxu0 %vm1776_vm2, %v2174_v7 }
 0x310   : > { %v1760_v61 = vpop.trf.xlu0 }
 0x311   : > { %2982 = vmatmul.msk.f32.vlgmr.msrb.gmra.mxu3 %vm1776_vm2, %v1760_v61 }
 0x315   : > { %v2175_v37 = vpop.trf.xlu2 }
 0x316   : > { %3017 = vmatmul.msk.f32.gmra.mxu0 %vm1776_vm2, %v2175_v37 }
 0x318   : > { %v1761_v12 = vpop.trf.xlu0 }
 0x319   : > { %2983 = vmatmul.msk.f32.gmra.mxu3 %vm1776_vm2, %v1761_v12 }
 0x31d   : > { %v2176_v39 = vpop.trf.xlu2 }
 0x31e   : > { %3018 = vmatmul.msk.f32.gmra.mxu0 %vm1776_vm2, %v2176_v39 }
 0x320   : > { %v1762_v54 = vpop.trf.xlu0 }
 0x321   : > { %2984 = vmatmul.msk.f32.gmra.mxu3 %vm1776_vm2, %v1762_v54 }
 0x325   : > { %v2177_v55 = vpop.trf.xlu2 }
 0x326   : > { %3019 = vmatmul.msk.f32.gmra.mxu0 %vm1776_vm2, %v2177_v55 }
 0x328   : > { %v1763_v24 = vpop.trf.xlu0 }
 0x329   : > { %2985 = vmatmul.msk.f32.gmra.mxu3 %vm1776_vm2, %v1763_v24 }
 0x32d   : > { %v2178_v13 = vpop.trf.xlu2 }
 0x32e   : > { %3020 = vmatmul.msk.f32.gmra.mxu0 %vm1776_vm2, %v2178_v13 }
 0x330   : > { %v1764_v21 = vpop.trf.xlu0 }
 0x331   : > { %2986 = vmatmul.msk.f32.gmra.mxu3 %vm1776_vm2, %v1764_v21 }
 0x335   : > { %v2179_v9 = vpop.trf.xlu2 }
 0x336   : > { %3021 = vmatmul.msk.f32.gmra.mxu0 %vm1776_vm2, %v2179_v9 }
 0x338   : > { %v1765_v5 = vpop.trf.xlu0 }
 0x339   : > { %2987 = vmatmul.msk.f32.gmra.mxu3 %vm1776_vm2, %v1765_v5 }
 0x33d   : > { %v2180_v49 = vpop.trf.xlu2 }
 0x33e   : > { %3022 = vmatmul.msk.f32.gmra.mxu0 %vm1776_vm2, %v2180_v49 }
 0x340   : > { %v1766_v30 = vpop.trf.xlu0 }
 0x341   : > { %2988 = vmatmul.msk.f32.gmra.mxu3 %vm1776_vm2, %v1766_v30 }
 0x345   : > { %v2181_v60 = vpop.trf.xlu2 }
 0x346   : > { %3023 = vmatmul.msk.f32.gmra.mxu0 %vm1776_vm2, %v2181_v60 }
 0x348   : > { %v1767_v57 = vpop.trf.xlu0 }
 0x349   : > { %2989 = vmatmul.msk.f32.gmra.mxu3 %vm1776_vm2, %v1767_v57 }
 0x34d   : > { %v2182_v42 = vpop.trf.xlu2 }
 0x34e   : > { %3024 = vmatmul.msk.f32.gmra.mxu0 %vm1776_vm2, %v2182_v42 }
 0x350   : > { %v1768_v28 = vpop.trf.xlu0 }
 0x351   : > { %2990 = vmatmul.msk.f32.gmra.mxu3 %vm1776_vm2, %v1768_v28 }
 0x355   : > { %v2183_v34 = vpop.trf.xlu2 }
 0x356   : > { %3025 = vmatmul.msk.f32.gmra.mxu0 %vm1776_vm2, %v2183_v34 }
 0x358   : > { %v1769_v25 = vpop.trf.xlu0 }
 0x359   : > { %2991 = vmatmul.msk.f32.gmra.mxu3 %vm1776_vm2, %v1769_v25 }
 0x35d   : > { %v2184_v62 = vpop.trf.xlu2 }
 0x35e   : > { %3026 = vmatmul.msk.f32.gmra.mxu0 %vm1776_vm2, %v2184_v62 }
 0x360   : > { %v1770_v19 = vpop.trf.xlu0 }
 0x361   : > { %2992 = vmatmul.msk.f32.gmra.mxu3 %vm1776_vm2, %v1770_v19 }
 0x365   : > { %v2185_v15 = vpop.trf.xlu2 }
 0x366   : > { %3027 = vmatmul.msk.f32.gmra.mxu0 %vm1776_vm2, %v2185_v15 }
 0x368   : > { %v1771_v52 = vpop.trf.xlu0 }
 0x369   : > { %2993 = vmatmul.msk.f32.gmra.mxu3 %vm1776_vm2, %v1771_v52 }
 0x36d   : > { %v2186_v43 = vpop.trf.xlu2 }
 0x36e   : > { %3028 = vmatmul.msk.f32.gmra.mxu0 %vm1776_vm2, %v2186_v43 }
 0x370   : > { %v1772_v26 = vpop.trf.xlu0 }
 0x371   : > { %2994 = vmatmul.msk.f32.gmra.mxu3 %vm1776_vm2, %v1772_v26 }
 0x375   : > { %v2187_v22 = vpop.trf.xlu2 }
 0x376   : > { %3029 = vmatmul.msk.f32.gmra.mxu0 %vm1776_vm2, %v2187_v22 }
 0x378   : > { %v1773_v41 = vpop.trf.xlu0 }
 0x379   : > { %2995 = vmatmul.msk.f32.gmra.mxu3 %vm1776_vm2, %v1773_v41 }
 0x37d   : > { %v2188_v31 = vpop.trf.xlu2 }
 0x37e   : > { %3030 = vmatmul.msk.f32.gmra.mxu0 %vm1776_vm2, %v2188_v31 }
 0x380   : > { %v1774_v32 = vpop.trf.xlu0 }
 0x381   : > { %2996 = vmatmul.msk.f32.gmra.mxu3 %vm1776_vm2, %v1774_v32 }
 0x385   : > { %v2189_v0 = vpop.trf.xlu2 }
 0x386   : > { %3031 = vmatmul.msk.f32.gmra.mxu0 %vm1776_vm2, %v2189_v0 }
 0x388   : > { %v1775_v20 = vpop.trf.xlu0 }
 0x389   : > { %2997 = vmatmul.msk.f32.gmra.mxu3 %vm1776_vm2, %v1775_v20 }
 0x38b   : > { %v4396_v27 = vpop.f32.mrf.mxu0 }
 0x393   : > { %v4398_v6 = vpop.f32.mrf.mxu0 }
 0x394   : > { %v1842_v29 = vpop.f32.mrf.mxu3 }
 0x395   : > { %v4432_v42 = vmul.f32 0.35355338, %v1842_v29 }
 0x397   : > { %v1906_v25 = vsel %vm670_vm1, %v4432_v42, -inf }
 0x39b   : > { %v4400_v33 = vpop.f32.mrf.mxu0 }
 0x39c   : > { %v1845_v38 = vpop.f32.mrf.mxu3  ;;  %v4549_v18 = vmul.f32 0.35355338, %v4400_v33 }
 0x39d   : > { %v4426_v49 = vmul.f32 0.35355338, %v1845_v38 }
 0x39f   : > { %v1909_v57 = vsel %vm670_vm1, %v4426_v49, -inf }
 0x3a3   : > { %v4402_v11 = vpop.f32.mrf.mxu0 }
 0x3a4   : > { %v1848_v35 = vpop.f32.mrf.mxu3  ;;  %v4536_v2 = vmul.f32 0.35355338, %v4402_v11 }
 0x3a5   : > { %v4420_v13 = vmul.f32 0.35355338, %v1848_v35 }
 0x3a7   : > { %v1912_v5 = vsel %vm670_vm1, %v4420_v13, -inf }
 0x3ab   : > { %v4404_v17 = vpop.f32.mrf.mxu0 }
 0x3ac   : > { %v4406_v8 = vpop.f32.mrf.mxu3  ;;  %v4526_v1 = vmul.f32 0.35355338, %v4404_v17  ;;  %v2328_v17 = vsel %vm670_vm1, %v4536_v2, -inf }
 0x3b3   : > { %v4408_v7 = vpop.f32.mrf.mxu0 }
 0x3b4   : > { %v4410_v61 = vpop.f32.mrf.mxu3 }
 0x3bb   : > { %v4412_v37 = vpop.f32.mrf.mxu0 }
 0x3bc   : > { %v1857_v12 = vpop.f32.mrf.mxu3 }
 0x3c3   : > { %v4414_v39 = vpop.f32.mrf.mxu0 }
 0x3c4   : > { %v1860_v54 = vpop.f32.mrf.mxu3 }
 0x3c5   : > { %v4416_v55 = vmul.f32 0.35355338, %v1860_v54  ;;  %v4450_v54 = vmul.f32 0.35355338, %v1857_v12 }
 0x3c7   : > { %v1924_v24 = vsel %vm670_vm1, %v4416_v55, -inf }
 0x3c8   : > { %1925 = vmax.xlane.f32.xlu2 %v1924_v24 }
 0x3cb   : > { %v2279_v21 = vpop.f32.mrf.mxu0 }
 0x3cc   : > { %v4422_v9 = vpop.f32.mrf.mxu3 }
 0x3cd   : > { %v4543_v4 = vmul.f32 0.35355338, %v4422_v9 }
 0x3d0   : > { %1913 = vmax.xlane.f32.xlu2 %v1912_v5 }
 0x3d3   : > { %v2282_v30 = vpop.f32.mrf.mxu0 }
 0x3d4   : > { %v4428_v60 = vpop.f32.mrf.mxu3 }
 0x3d5   : > { %v4531_v46 = vmul.f32 0.35355338, %v4428_v60 }
 0x3d8   : > { %1910 = vmax.xlane.f32.xlu2 %v1909_v57 }
 0x3db   : > { %v2285_v28 = vpop.f32.mrf.mxu0 }
 0x3dc   : > { %v4434_v34 = vpop.f32.mrf.mxu3 }
 0x3dd   : > { %v4521_v51 = vmul.f32 0.35355338, %v4434_v34  ;;  %v1930_v34 = vsel %vm670_vm1, %v4531_v46, -inf }
 0x3e0   : > { %1907 = vmax.xlane.f32.xlu2 %v1906_v25  ;;  %v1921_v25 = vsel %vm670_vm1, %v4450_v54, -inf }
 0x3e3   : > { %v2288_v62 = vpop.f32.mrf.mxu0 }
 0x3e4   : > { %v1872_v19 = vpop.f32.mrf.mxu3 }
 0x3e5   : > { %v4509_v50 = vmul.f32 0.35355338, %v1872_v19  ;;  %v1933_v19 = vsel %vm670_vm1, %v4521_v51, -inf }
 0x3eb   : > { %v2291_v15 = vpop.f32.mrf.mxu0 }
 0x3ec   : > { %v1875_v52 = vpop.f32.mrf.mxu3  ;;  %v4452_v24 = vmul.f32 0.35355338, %v2291_v15 }
 0x3ee   : > { %v2355_v57 = vsel %vm670_vm1, %v4452_v24, -inf }
 0x3f3   : > { %v2294_v43 = vpop.f32.mrf.mxu0 }
 0x3f4   : > { %v1878_v26 = vpop.f32.mrf.mxu3  ;;  %v4442_v0 = vmul.f32 0.35355338, %v2294_v43  ;;  %v4458_v43 = vmul.f32 0.35355338, %v2288_v62 }
 0x3f6   : > { %v2358_v38 = vsel %vm670_vm1, %v4442_v0, -inf }
 0x3fb   : > { %v2297_v22 = vpop.f32.mrf.mxu0 }
 0x3fc   : > { %v4438_v41 = vmul.f32 0.35355338, %v2297_v22  ;;  %v1881_v32 = vpop.f32.mrf.mxu3 }
 0x3fe   : > { %v2361_v31 = vsel %vm670_vm1, %v4438_v41, -inf }
 0x3ff   : > { %2362 = vmax.xlane.f32.xlu1 %v2361_v31  ;;  %v2352_v31 = vsel %vm670_vm1, %v4458_v43, -inf }
 0x403   : > { %v2300_v20 = vpop.f32.mrf.mxu0 }
 0x404   : > { %v4444_v29 = vmul.f32 0.35355338, %v2300_v20  ;;  %v1884_v5 = vpop.f32.mrf.mxu3  ;;  %v2313_v20 = vmul.f32 0.35355338, %v2285_v28 }
 0x406   : > { %v2364_v35 = vsel %vm670_vm1, %v4444_v29, -inf }
 0x407   : > { %2359 = vmax.xlane.f32.xlu1 %v2358_v38  ;;  %2365 = vmax.xlane.f32.xlu0 %v2364_v35  ;;  %v2349_v38 = vsel %vm670_vm1, %v2313_v20, -inf  ;;  %v4467_v35 = vmul.f32 0.35355338, %v1884_v5 }
 0x409   : > { %v1948_v62 = vsel %vm670_vm1, %v4467_v35, -inf }
 0x40c   : > { %v1887_v22 = vpop.f32.mrf.mxu3 }
 0x40d   : > { %v4462_v12 = vmul.f32 0.35355338, %v1887_v22  ;;  %v4475_v22 = vmul.f32 0.35355338, %v1881_v32  ;;  %v4490_v32 = vmul.f32 0.35355338, %v4414_v39 }
 0x40f   : > { %2356 = vmax.xlane.f32.xlu1 %v2355_v57  ;;  %1922 = vmax.xlane.f32.xlu0 %v1921_v25  ;;  %v1951_v15 = vsel %vm670_vm1, %v4462_v12, -inf  ;;  %v4471_v57 = vmul.f32 0.35355338, %v2282_v30  ;;  %v1945_v28 = vsel %vm670_vm1, %v4475_v22, -inf  ;;  %v4485_v30 = vpop.permute.xlu1 %799 }
 0x411   : > { %v2346_v25 = vsel %vm670_vm1, %v4471_v57, -inf }
 0x417   : > { %2353 = vmax.xlane.f32.xlu1 %v2352_v31  ;;  %v4479_v31 = vmul.f32 0.35355338, %v2279_v21  ;;  %v2340_v21 = vsel %vm670_vm1, %v4490_v32, -inf }
 0x419   : > { %v2343_v5 = vsel %vm670_vm1, %v4479_v31, -inf }
 0x41f   : > { %1952 = vmax.xlane.f32.xlu1 %v1951_v15  ;;  %v4483_v15 = vmul.f32 0.35355338, %v1878_v26 }
 0x427   : > { %2350 = vmax.xlane.f32.xlu1 %v2349_v38  ;;  %v1942_v38 = vsel %vm670_vm1, %v4483_v15, -inf }
 0x42f   : > { %1949 = vmax.xlane.f32.xlu1 %v1948_v62  ;;  %v4492_v62 = vpop.permute.xlu1 %804 }
 0x437   : > { %2347 = vmax.xlane.f32.xlu1 %v2346_v25  ;;  %v4496_v25 = vmul.f32 0.35355338, %v1875_v52  ;;  %v1936_v52 = vsel %vm670_vm1, %v4509_v50, -inf }
 0x439   : > { %v1939_v26 = vsel %vm670_vm1, %v4496_v25, -inf }
 0x43f   : > { %1946 = vmax.xlane.f32.xlu1 %v1945_v28  ;;  %v4500_v28 = vpop.permute.xlu1 %809 }
 0x447   : > { %2344 = vmax.xlane.f32.xlu1 %v2343_v5  ;;  %v4503_v5 = vmul.f32 0.35355338, %v4412_v37 }
 0x449   : > { %v2337_v39 = vsel %vm670_vm1, %v4503_v5, -inf }
 0x44f   : > { %1943 = vmax.xlane.f32.xlu1 %v1942_v38  ;;  %v4507_v38 = vpop.permute.xlu1 %814 }
 0x450   : > { %5119 = vst [vmem:[#allocation34_spill] sm:$0xff] %v4507_v38 }
 0x457   : > { %2341 = vmax.xlane.f32.xlu1 %v2340_v21  ;;  %v4514_v21 = vmul.f32 0.35355338, %v4408_v7  ;;  %v2331_v7 = vsel %vm670_vm1, %v4526_v1, -inf }
 0x459   : > { %v2334_v37 = vsel %vm670_vm1, %v4514_v21, -inf }
 0x45f   : > { %1940 = vmax.xlane.f32.xlu1 %v1939_v26 }
 0x467   : > { %2338 = vmax.xlane.f32.xlu1 %v2337_v39 }
 0x46f   : > { %1937 = vmax.xlane.f32.xlu1 %v1936_v52 }
 0x472   : > { %v4516_v26 = vpop.xlane.xlu1 %2362 }
 0x477   : > { %2335 = vmax.xlane.f32.xlu1 %v2334_v37 }
 0x47a   : > { %v2360_v39 = vpop.xlane.xlu1 %2359 }
 0x47f   : > { %1934 = vmax.xlane.f32.xlu1 %v1933_v19 }
 0x482   : > { %v2357_v52 = vpop.xlane.xlu1 %2356 }
 0x483   : > { %v2379_v9 = vsub.f32 %v4452_v24, %v2357_v52 }
 0x487   : > { %2332 = vmax.xlane.f32.xlu1 %v2331_v7 }
 0x48a   : > { %v2354_v37 = vpop.xlane.xlu1 %2353 }
 0x48b   : > { %v2378_v23 = vsub.f32 %v4458_v43, %v2354_v37  ;;  %v2325_v43 = vsel %vm670_vm1, %v4549_v18, -inf }
 0x48d   : > { %v2405_v11 = vmul.f32 1.442695, %v2378_v23  ;;  %v4561_v23 = vmul.f32 0.35355338, %v4398_v6 }
 0x48f   : > { %1931 = vmax.xlane.f32.xlu1 %v1930_v34  ;;  %v1927_v34 = vsel %vm670_vm1, %v4543_v4, -inf  ;;  %v2322_v24 = vsel %vm670_vm1, %v4561_v23, -inf }
 0x492   : > { %v4538_v19 = vpop.xlane.xlu1 %1952 }
 0x497   : > { %2329 = vmax.xlane.f32.xlu1 %v2328_v17 }
 0x49a   : > { %v2351_v7 = vpop.xlane.xlu1 %2350 }
 0x49b   : > { %v2377_v60 = vsub.f32 %v2313_v20, %v2351_v7  ;;  %v2380_v7 = vsub.f32 %v4442_v0, %v2360_v39 }
 0x49d   : > { %v2403_v10 = vmul.f32 1.442695, %v2377_v60  ;;  %v2409_v60 = vmul.f32 1.442695, %v2380_v7  ;;  %v2381_v7 = vsub.f32 %v4438_v41, %v4516_v26 }
 0x49f   : > { %3406 = vpow2.f32 %v2403_v10  ;;  %1928 = vmax.xlane.f32.xlu1 %v1927_v34  ;;  %v2407_v10 = vmul.f32 1.442695, %v2379_v9  ;;  %v4571_v34 = vmul.f32 0.35355338, %v4396_v27 }
 0x4a0   : > { %3408 = vpow2.f32 %v2405_v11 }
 0x4a1   : > { %3410 = vpow2.f32 %v2407_v10  ;;  %v2319_v39 = vsel %vm670_vm1, %v4571_v34, -inf }
 0x4a2   : > { %v4551_v38 = vpop.xlane.xlu1 %1949  ;;  %3412 = vpow2.f32 %v2409_v60  ;;  %v4595_v60 = vmul.f32 0.35355338, %v4406_v8 }
 0x4a5   : > { %v4553_v17 = vpop.eup %3406 }
 0x4a6   : > { %v2445_v20 = vsel %vm670_vm1, %v4553_v17, 0.0  ;;  %v4563_v37 = vpop.eup %3408 }
 0x4a7   : > { %2326 = vmax.xlane.f32.xlu1 %v2325_v43  ;;  %2446 = vadd.xlane.f32.xlu0 %v2445_v20  ;;  %v2448_v52 = vsel %vm670_vm1, %v4563_v37, 0.0  ;;  %v4575_v11 = vpop.eup %3410  ;;  %v4583_v20 = vmul.f32 0.35355338, %v4410_v61 }
 0x4a8   : > { %v2451_v9 = vsel %vm670_vm1, %v4575_v11, 0.0  ;;  %v4585_v10 = vpop.eup %3412 }
 0x4aa   : > { %v2348_v33 = vpop.xlane.xlu1 %2347 }
 0x4ab   : > { %v2376_v0 = vsub.f32 %v4471_v57, %v2348_v33  ;;  %v1918_v33 = vsel %vm670_vm1, %v4583_v20, -inf }
 0x4ad   : > { %v2401_v43 = vmul.f32 1.442695, %v2376_v0 }
 0x4af   : > { %2323 = vmax.xlane.f32.xlu1 %v2322_v24  ;;  %2449 = vadd.xlane.f32.xlu0 %v2448_v52  ;;  %3414 = vpow2.f32 %v2401_v43  ;;  %v2454_v24 = vsel %vm670_vm1, %v4585_v10, 0.0  ;;  %v2411_v52 = vmul.f32 1.442695, %v2381_v7 }
 0x4b1   : > { %3416 = vpow2.f32 %v2411_v52 }
 0x4b2   : > { %v4573_v6 = vpop.xlane.xlu1 %1946 }
 0x4b7   : > { %2320 = vmax.xlane.f32.xlu1 %v2319_v39  ;;  %2452 = vadd.xlane.f32.xlu0 %v2451_v9  ;;  %v4597_v39 = vpop.eup %3414  ;;  %v1915_v9 = vsel %vm670_vm1, %v4595_v60, -inf }
 0x4b8   : > { %v2442_v43 = vsel %vm670_vm1, %v4597_v39, 0.0 }
 0x4ba   : > { %v2345_v27 = vpop.xlane.xlu1 %2344 }
 0x4bb   : > { %v2375_v57 = vsub.f32 %v4479_v31, %v2345_v27  ;;  %v1969_v31 = vsub.f32 %v4462_v12, %v4538_v19  ;;  %v4606_v27 = vpop.eup %3416 }
 0x4bc   : > { %v2457_v19 = vsel %vm670_vm1, %v4606_v27, 0.0 }
 0x4bd   : > { %v2399_v61 = vmul.f32 1.442695, %v2375_v57  ;;  %v2000_v8 = vmul.f32 1.442695, %v1969_v31  ;;  %v2366_v57 = vpop.xlane.xlu0 %2365 }
 0x4be   : > { %v2382_v12 = vsub.f32 %v4444_v29, %v2366_v57  ;;  %v1968_v29 = vsub.f32 %v4467_v35, %v4551_v38 }
 0x4bf   : > { %1919 = vmax.xlane.f32.xlu1 %v1918_v33  ;;  %2455 = vadd.xlane.f32.xlu0 %v2454_v24  ;;  %3418 = vpow2.f32 %v2399_v61 }
 0x4c0   : > { %v2413_v61 = vmul.f32 1.442695, %v2382_v12 }
 0x4c2   : > { %v1944_v0 = vpop.xlane.xlu1 %1943 }
 0x4c3   : > { %v1966_v41 = vsub.f32 %v4483_v15, %v1944_v0 }
 0x4c5   : > { %v1994_v26 = vmul.f32 1.442695, %v1966_v41  ;;  %v4608_v15 = vpop.eup %3418 }
 0x4c6   : > { %v2439_v24 = vsel %vm670_vm1, %v4608_v15, 0.0 }
 0x4c7   : > { %3420 = vpow2.f32 %v1994_v26  ;;  %1916 = vmax.xlane.f32.xlu1 %v1915_v9  ;;  %2443 = vadd.xlane.f32.xlu0 %v2442_v43  ;;  %v1998_v43 = vmul.f32 1.442695, %v1968_v29 }
 0x4c8   : > { %3422 = vpow2.f32 %v2000_v8 }
 0x4c9   : > { %3424 = vpow2.f32 %v2413_v61 }
 0x4ca   : > { %v2342_v7 = vpop.xlane.xlu1 %2341 }
 0x4cd   : > { %v4610_v33 = vpop.eup %3420 }
 0x4ce   : > { %v2038_v52 = vsel %vm670_vm1, %v4610_v33, 0.0  ;;  %v4619_v41 = vpop.eup %3422 }
 0x4cf   : > { %2458 = vadd.xlane.f32.xlu1 %v2457_v19  ;;  %2440 = vadd.xlane.f32.xlu0 %v2439_v24  ;;  %v2047_v9 = vsel %vm670_vm1, %v4619_v41, 0.0  ;;  %v4626_v57 = vpop.eup %3424 }
 0x4d0   : > { %2039 = vadd.xlane.f32.xlu2 %v2038_v52  ;;  %v2460_v35 = vsel %vm670_vm1, %v4626_v57, 0.0 }
 0x4d2   : > { %v1941_v0 = vpop.xlane.xlu1 %1940 }
 0x4d3   : > { %v1965_v31 = vsub.f32 %v4496_v25, %v1941_v0  ;;  %v1967_v25 = vsub.f32 %v4475_v22, %v4573_v6 }
 0x4d5   : > { %v1992_v26 = vmul.f32 1.442695, %v1965_v31  ;;  %v1996_v52 = vmul.f32 1.442695, %v1967_v25  ;;  %v2374_v31 = vsub.f32 %v4490_v32, %v2342_v7 }
 0x4d7   : > { %3426 = vpow2.f32 %v1992_v26  ;;  %2048 = vadd.xlane.f32.xlu1 %v2047_v9  ;;  %v2397_v29 = vmul.f32 1.442695, %v2374_v31 }
 0x4d8   : > { %3428 = vpow2.f32 %v1998_v43 }
 0x4da   : > { %v2339_v8 = vpop.xlane.xlu1 %2338 }
 0x4db   : > { %v2373_v12 = vsub.f32 %v4503_v5, %v2339_v8 }
 0x4dd   : > { %v4629_v19 = vpop.eup %3426  ;;  %v2395_v24 = vmul.f32 1.442695, %v2373_v12 }
 0x4de   : > { %v2035_v38 = vsel %vm670_vm1, %v4629_v19, 0.0  ;;  %v4637_v0 = vpop.eup %3428 }
 0x4df   : > { %3430 = vpow2.f32 %v2395_v24  ;;  %2461 = vadd.xlane.f32.xlu1 %v2460_v35  ;;  %2036 = vadd.xlane.f32.xlu0 %v2035_v38  ;;  %v2044_v22 = vsel %vm670_vm1, %v4637_v0, 0.0 }
 0x4e0   : > { %3432 = vpow2.f32 %v1996_v52 }
 0x4e1   : > { %3434 = vpow2.f32 %v2397_v29 }
 0x4e2   : > { %v1938_v61 = vpop.xlane.xlu1 %1937 }
 0x4e3   : > { %v1964_v8 = vsub.f32 %v4509_v50, %v1938_v61 }
 0x4e5   : > { %v4639_v5 = vpop.eup %3430  ;;  %v1990_v7 = vmul.f32 1.442695, %v1964_v8 }
 0x4e6   : > { %v2433_v6 = vsel %vm670_vm1, %v4639_v5, 0.0  ;;  %v4646_v9 = vpop.eup %3432 }
 0x4e7   : > { %2045 = vadd.xlane.f32.xlu1 %v2044_v22  ;;  %2434 = vadd.xlane.f32.xlu2 %v2433_v6  ;;  %v2041_v32 = vsel %vm670_vm1, %v4646_v9, 0.0  ;;  %v4652_v24 = vpop.eup %3434 }
 0x4ea   : > { %v2336_v26 = vpop.xlane.xlu1 %2335 }
 0x4eb   : > { %v2372_v43 = vsub.f32 %v4514_v21, %v2336_v26  ;;  %v2436_v21 = vsel %vm670_vm1, %v4652_v24, 0.0 }
 0x4ed   : > { %v2393_v12 = vmul.f32 1.442695, %v2372_v43 }
 0x4ef   : > { %3436 = vpow2.f32 %v2393_v12  ;;  %2042 = vadd.xlane.f32.xlu1 %v2041_v32 }
 0x4f0   : > { %3438 = vpow2.f32 %v1990_v7  ;;  %v1926_v7 = vpop.xlane.xlu2 %1925 }
 0x4f2   : > { %v1935_v25 = vpop.xlane.xlu1 %1934 }
 0x4f3   : > { %v1963_v35 = vsub.f32 %v4521_v51, %v1935_v25 }
 0x4f5   : > { %v4655_v38 = vpop.eup %3436  ;;  %v1988_v52 = vmul.f32 1.442695, %v1963_v35 }
 0x4f6   : > { %v2430_v50 = vsel %vm670_vm1, %v4655_v38, 0.0  ;;  %v4661_v31 = vpop.eup %3438 }
 0x4f7   : > { %3440 = vpow2.f32 %v1988_v52  ;;  %2437 = vadd.xlane.f32.xlu1 %v2436_v21  ;;  %2431 = vadd.xlane.f32.xlu0 %v2430_v50  ;;  %v2032_v29 = vsel %vm670_vm1, %v4661_v31, 0.0  ;;  %v1960_v21 = vsub.f32 %v4416_v55, %v1926_v7  ;;  %v1923_v55 = vpop.xlane.xlu0 %1922 }
 0x4f8   : > { %v1959_v7 = vsub.f32 %v4450_v54, %v1923_v55 }
 0x4fa   : > { %v2333_v61 = vpop.xlane.xlu1 %2332 }
 0x4fb   : > { %v2371_v22 = vsub.f32 %v4526_v1, %v2333_v61  ;;  %v1982_v61 = vmul.f32 1.442695, %v1960_v21  ;;  %v1980_v21 = vmul.f32 1.442695, %v1959_v7 }
 0x4fd   : > { %v4664_v6 = vpop.eup %3440  ;;  %v2391_v51 = vmul.f32 1.442695, %v2371_v22 }
 0x4fe   : > { %v2029_v26 = vsel %vm670_vm1, %v4664_v6, 0.0 }
 0x4ff   : > { %3442 = vpow2.f32 %v2391_v51  ;;  %2033 = vadd.xlane.f32.xlu1 %v2032_v29  ;;  %2030 = vadd.xlane.f32.xlu2 %v2029_v26 }
 0x502   : > { %v1932_v43 = vpop.xlane.xlu1 %1931 }
 0x503   : > { %v1962_v8 = vsub.f32 %v4531_v46, %v1932_v43 }
 0x505   : > { %v4671_v12 = vpop.eup %3442  ;;  %v1986_v32 = vmul.f32 1.442695, %v1962_v8 }
 0x506   : > { %v2427_v1 = vsel %vm670_vm1, %v4671_v12, 0.0 }
 0x507   : > { %3444 = vpow2.f32 %v1986_v32  ;;  %2428 = vadd.xlane.f32.xlu1 %v2427_v1 }
 0x50a   : > { %v2330_v25 = vpop.xlane.xlu1 %2329 }
 0x50b   : > { %v2370_v35 = vsub.f32 %v4536_v2, %v2330_v25 }
 0x50d   : > { %v4676_v52 = vpop.eup %3444  ;;  %v2389_v50 = vmul.f32 1.442695, %v2370_v35 }
 0x50e   : > { %v2026_v46 = vsel %vm670_vm1, %v4676_v52, 0.0 }
 0x50f   : > { %3446 = vpow2.f32 %v2389_v50  ;;  %2027 = vadd.xlane.f32.xlu0 %v2026_v46 }
 0x510   : > { %3448 = vpow2.f32 %v1982_v61 }
 0x512   : > { %v1929_v22 = vpop.xlane.xlu1 %1928 }
 0x513   : > { %v1961_v51 = vsub.f32 %v4543_v4, %v1929_v22  ;;  %v1914_v22 = vpop.xlane.xlu2 %1913 }
 0x515   : > { %v4682_v29 = vpop.eup %3446  ;;  %v1984_v26 = vmul.f32 1.442695, %v1961_v51 }
 0x516   : > { %v2424_v2 = vsel %vm670_vm1, %v4682_v29, 0.0  ;;  %v4686_v8 = vpop.eup %3448 }
 0x517   : > { %3450 = vpow2.f32 %v1984_v26  ;;  %2425 = vadd.xlane.f32.xlu2 %v2424_v2  ;;  %v2020_v25 = vsel %vm670_vm1, %v4686_v8, 0.0 }
 0x51a   : > { %v2327_v43 = vpop.xlane.xlu1 %2326 }
 0x51b   : > { %v2369_v32 = vsub.f32 %v4549_v18, %v2327_v43  ;;  %v1956_v43 = vsub.f32 %v4420_v13, %v1914_v22 }
 0x51d   : > { %v4689_v1 = vpop.eup %3450  ;;  %v2387_v4 = vmul.f32 1.442695, %v2369_v32 }
 0x51e   : > { %v2023_v35 = vsel %vm670_vm1, %v4689_v1, 0.0 }
 0x51f   : > { %3452 = vpow2.f32 %v2387_v4  ;;  %2021 = vadd.xlane.f32.xlu2 %v2020_v25  ;;  %2024 = vadd.xlane.f32.xlu1 %v2023_v35  ;;  %v1911_v25 = vpop.xlane.xlu2 %1910  ;;  %v1974_v35 = vmul.f32 1.442695, %v1956_v43 }
 0x520   : > { %3454 = vpow2.f32 %v1980_v21  ;;  %v1955_v13 = vsub.f32 %v4426_v49, %v1911_v25 }
 0x522   : > { %v2324_v50 = vpop.xlane.xlu1 %2323 }
 0x523   : > { %v2368_v46 = vsub.f32 %v4561_v23, %v2324_v50  ;;  %v4707_v23 = vpop.xlane.xlu0 %2446 }
 0x525   : > { %v4697_v61 = vpop.eup %3452  ;;  %v2385_v18 = vmul.f32 1.442695, %v2368_v46 }
 0x526   : > { %v2421_v54 = vsel %vm670_vm1, %v4697_v61, 0.0  ;;  %v4701_v26 = vpop.eup %3454 }
 0x527   : > { %3456 = vpow2.f32 %v2385_v18  ;;  %2422 = vadd.xlane.f32.xlu0 %v2421_v54  ;;  %v2017_v7 = vsel %vm670_vm1, %v4701_v26, 0.0  ;;  %v1972_v54 = vmul.f32 1.442695, %v1955_v13 }
 0x52a   : > { %v2321_v51 = vpop.xlane.xlu1 %2320 }
 0x52b   : > { %v2367_v2 = vsub.f32 %v4571_v34, %v2321_v51  ;;  %v2450_v22 = vpop.xlane.xlu0 %2449  ;;  %v1908_v51 = vpop.xlane.xlu2 %1907 }
 0x52d   : > { %v4704_v55 = vpop.eup %3456  ;;  %v2383_v32 = vmul.f32 1.442695, %v2367_v2 }
 0x52e   : > { %v2418_v4 = vsel %vm670_vm1, %v4704_v55, 0.0 }
 0x52f   : > { %3458 = vpow2.f32 %v2383_v32  ;;  %2018 = vadd.xlane.f32.xlu0 %v2017_v7  ;;  %2419 = vadd.xlane.f32.xlu1 %v2418_v4  ;;  %v1954_v7 = vsub.f32 %v4432_v42, %v1908_v51 }
 0x530   : > { %3460 = vpow2.f32 %v1974_v35 }
 0x531   : > { %v1970_v35 = vmul.f32 1.442695, %v1954_v7 }
 0x532   : > { %v1920_v21 = vpop.xlane.xlu1 %1919 }
 0x533   : > { %v1958_v34 = vsub.f32 %v4583_v20, %v1920_v21  ;;  %v2453_v21 = vpop.xlane.xlu0 %2452 }
 0x535   : > { %v4714_v50 = vpop.eup %3458  ;;  %v1978_v46 = vmul.f32 1.442695, %v1958_v34 }
 0x536   : > { %v2415_v18 = vsel %vm670_vm1, %v4714_v50, 0.0  ;;  %v4719_v32 = vpop.eup %3460 }
 0x537   : > { %3462 = vpow2.f32 %v1978_v46  ;;  %2416 = vadd.xlane.f32.xlu2 %v2415_v18  ;;  %v2008_v4 = vsel %vm670_vm1, %v4719_v32, 0.0 }
 0x538   : > { %3464 = vpow2.f32 %v1972_v54 }
 0x53a   : > { %v1917_v2 = vpop.xlane.xlu1 %1916 }
 0x53b   : > { %v1957_v43 = vsub.f32 %v4595_v60, %v1917_v2  ;;  %v2456_v51 = vpop.xlane.xlu0 %2455 }
 0x53d   : > { %v4722_v20 = vpop.eup %3462  ;;  %v1976_v49 = vmul.f32 1.442695, %v1957_v43 }
 0x53e   : > { %v2014_v25 = vsel %vm670_vm1, %v4722_v20, 0.0  ;;  %v4729_v13 = vpop.eup %3464 }
 0x53f   : > { %3466 = vpow2.f32 %v1976_v49  ;;  %2009 = vadd.xlane.f32.xlu2 %v2008_v4  ;;  %2015 = vadd.xlane.f32.xlu1 %v2014_v25  ;;  %v2005_v42 = vsel %vm670_vm1, %v4729_v13, 0.0  ;;  %v4746_v25 = vld [vmem:[%s5055_s8] sm:$0xff] }
 0x540   : > { %3468 = vpow2.f32 %v1970_v35 }
 0x542   : > { %v2459_v34 = vpop.xlane.xlu1 %2458 }
 0x543   : > { %v2444_v4 = vpop.xlane.xlu0 %2443 }
 0x545   : > { %v4731_v60 = vpop.eup %3466 }
 0x546   : > { %v2011_v46 = vsel %vm670_vm1, %v4731_v60, 0.0  ;;  %v4737_v54 = vpop.eup %3468 }
 0x547   : > { %2006 = vadd.xlane.f32.xlu1 %v2005_v42  ;;  %2012 = vadd.xlane.f32.xlu0 %v2011_v46  ;;  %v2002_v2 = vsel %vm670_vm1, %v4737_v54, 0.0 }
 0x54a   : > { %v2049_v18 = vpop.xlane.xlu1 %2048 }
 0x54b   : > { %3470 = vrcp.f32 %v2049_v18 }
 0x54f   : > { %2003 = vadd.xlane.f32.xlu0 %v2002_v2 }
 0x551   : > { %v3471_v43 = vpop.eup %3470 }
 0x552   : > { %v2081_v7 = vmul.f32 %v3471_v43, %v4619_v41  ;;  %v2462_v49 = vpop.xlane.xlu1 %2461  ;;  %v2441_v41 = vpop.xlane.xlu0 %2440 }
 0x553   : > { %3472 = vrcp.f32 %v2462_v49 }
 0x554   : > { %2998 = vmatpush.xpose.msk.msra.mxu2 %vm670_vm1, %v2081_v7  ;;  %3474 = vrcp.f32 %v2459_v34  ;;  %v4754_v34 = vld [vmem:[%s5055_s8 + $0x10] sm:$0xff]  ;;  %v2040_v7 = vpop.xlane.xlu2 %2039 }
 0x555   : > { %3476 = vrcp.f32 %v2456_v51 }
 0x557   : > { %908 = vperm.xlu2 %3373, %v4746_v25  }
 0x559   : > { %v3473_v35 = vpop.eup %3472 }
 0x55a   : > { %v2046_v42 = vpop.xlane.xlu1 %2045  ;;  %v2494_v46 = vmul.f32 %v3473_v35, %v4626_v57  ;;  %v3475_v18 = vpop.eup %3474  ;;  %v4761_v57 = vld [vmem:[%s5055_s8 + $0x8] sm:$0xff] }
 0x55b   : > { %3478 = vrcp.f32 %v2046_v42  ;;  %v2493_v2 = vmul.f32 %v3475_v18, %v4606_v27  ;;  %v3477_v43 = vpop.eup %3476  ;;  %v2037_v42 = vpop.xlane.xlu0 %2036 }
 0x55c   : > { %3032 = vmatpush.xpose.msk.msra.mxu1 %vm670_vm1, %v2494_v46  ;;  %3480 = vrcp.f32 %v2453_v21  ;;  %v2492_v27 = vmul.f32 %v3477_v43, %v4585_v10  ;;  %v4777_v10 = vld [vmem:[%s5055_s8 + $0x18] sm:$0xff]  ;;  %v5120_v43 = vmov 6  }
 0x55d   : > { %3482 = vrcp.f32 %v2450_v22 }
 0x55f   : > { %916 = vperm.xlu2 %3373, %v4754_v34  }
 0x560   : > { %912 = vperm.xlu1 %3374, %v4761_v57   ;;  %3033 = vmatpush.xpose.msk.msra.mxu1 %vm670_vm1, %v2493_v2 }
 0x561   : > { %v3479_v21 = vpop.eup %3478 }
 0x562   : > { %v2043_v51 = vpop.xlane.xlu1 %2042  ;;  %v2080_v49 = vmul.f32 %v3479_v21, %v4637_v0  ;;  %v3481_v35 = vpop.eup %3480 }
 0x563   : > { %3484 = vrcp.f32 %v2043_v51  ;;  %1014 = vperm.xlu0 %3375, %v4746_v25   ;;  %v2491_v22 = vmul.f32 %v3481_v35, %v4575_v11  ;;  %v3483_v46 = vpop.eup %3482  ;;  %v2435_v11 = vpop.xlane.xlu2 %2434 }
 0x564   : > { %3486 = vrcp.f32 %v4707_v23  ;;  %2999 = vmatpush.xpose.msk.msra.mxu2 %vm670_vm1, %v2080_v49  ;;  %3034 = vmatpush.xpose.msk.msra.mxu1 %vm670_vm1, %v2492_v27  ;;  %v2490_v21 = vmul.f32 %v3483_v46, %v4563_v37 }
 0x565   : > { %3488 = vrcp.f32 %v2040_v7 }
 0x566   : > { %3490 = vrcp.f32 %v2444_v4 }
 0x567   : > { %3376 = vset.pattern.permute.xlu2 %v5113_v36  ;;  %3492 = vrcp.f32 %v2037_v42 }
 0x568   : > { %1018 = vperm.xlu2 %3376, %v4761_v57   ;;  %920 = vperm.xlu1 %3374, %v4777_v10   ;;  %3494 = vrcp.f32 %v2441_v41 }
 0x569   : > { %v3485_v0 = vpop.eup %3484  ;;  %3035 = vmatpush.xpose.msk.msra.mxu1 %vm670_vm1, %v2491_v22 }
 0x56a   : > { %v2438_v23 = vpop.xlane.xlu1 %2437  ;;  %v2079_v18 = vmul.f32 %v3485_v0, %v4646_v9  ;;  %v3487_v2 = vpop.eup %3486 }
 0x56b   : > { %3384 = vset.pattern.permute.xlu0 %v5120_v43  ;;  %v3489_v51 = vpop.eup %3488  ;;  %v2489_v49 = vmul.f32 %v3487_v2, %v4553_v17  ;;  %3496 = vrcp.f32 %v2438_v23  ;;  %v1676_v17 = vld [vmem:[%s5056_s9 + $0x18] sm:$0xff]  ;;  %v2432_v42 = vpop.xlane.xlu0 %2431 }
 0x56c   : > { %1446 = vperm.xlu0 %3384, %v4754_v34   ;;  %3000 = vmatpush.xpose.msk.msra.mxu2 %vm670_vm1, %v2079_v18  ;;  %v3491_v4 = vpop.eup %3490  ;;  %v2078_v7 = vmul.f32 %v3489_v51, %v4610_v33 }
 0x56d   : > { %3036 = vmatpush.xpose.msk.msra.mxu1 %vm670_vm1, %v2490_v21  ;;  %v3493_v9 = vpop.eup %3492  ;;  %v2488_v33 = vmul.f32 %v3491_v4, %v4597_v39  ;;  %v5122_v39 = vmov 3  }
 0x56e   : > { %v2077_v41 = vmul.f32 %v3493_v9, %v4629_v19  ;;  %v3495_v35 = vpop.eup %3494 }
 0x56f   : > { %v2487_v19 = vmul.f32 %v3495_v35, %v4608_v15 }
 0x570   : > { %1026 = vperm.xlu2 %3376, %v4777_v10   ;;  %3377 = vset.pattern.permute.xlu1 %v5113_v36  ;;  %v5121_v36 = vmov 0  }
 0x571   : > { %3001 = vmatpush.xpose.msk.msra.mxu2 %vm670_vm1, %v2078_v7  ;;  %3037 = vmatpush.xpose.msk.msra.mxu1 %vm670_vm1, %v2489_v49  ;;  %v3497_v22 = vpop.eup %3496 }
 0x572   : > { %1022 = vperm.xlu1 %3377, %v4754_v34   ;;  %v2034_v37 = vpop.xlane.xlu1 %2033  ;;  %v2031_v27 = vpop.xlane.xlu2 %2030  ;;  %v2486_v2 = vmul.f32 %v3497_v22, %v4652_v24  ;;  %v5124_v24 = vmov 5  }
 0x573   : > { %3498 = vrcp.f32 %v2034_v37 }
 0x574   : > { %3389 = vset.pattern.permute.xlu0 %v5121_v36  ;;  %3500 = vrcp.f32 %v2435_v11  ;;  %v5123_v11 = vmov 4  }
 0x575   : > { %3002 = vmatpush.xpose.msk.msra.mxu2 %vm670_vm1, %v2077_v41  ;;  %3038 = vmatpush.xpose.msk.msra.mxu1 %vm670_vm1, %v2488_v33  ;;  %3502 = vrcp.f32 %v2031_v27 }
 0x576   : > { %1694 = vperm.xlu0 %3389, %v1676_v17   ;;  %3504 = vrcp.f32 %v2432_v42 }
 0x578   : > { %3379 = vset.pattern.permute.xlu2 %v5122_v39 }
 0x579   : > { %3039 = vmatpush.xpose.msk.msra.mxu1 %vm670_vm1, %v2487_v19  ;;  %1128 = vperm.xlu2 %3379, %v4754_v34   ;;  %v3499_v46 = vpop.eup %3498  ;;  %v5126_v19 = vmov 8  }
 0x57a   : > { %3378 = vset.pattern.permute.xlu1 %v5122_v39  ;;  %v3501_v0 = vpop.eup %3500  ;;  %v2429_v23 = vpop.xlane.xlu1 %2428  ;;  %v2076_v18 = vmul.f32 %v3499_v46, %v4661_v31 }
 0x57b   : > { %1132 = vperm.xlu1 %3378, %v4777_v10   ;;  %v3503_v15 = vpop.eup %3502  ;;  %3506 = vrcp.f32 %v2429_v23  ;;  %v2485_v51 = vmul.f32 %v3501_v0, %v4639_v5 }
 0x57c   : > { %3003 = vmatpush.xpose.msk.msra.mxu2 %vm670_vm1, %v2076_v18  ;;  %v2075_v21 = vmul.f32 %v3503_v15, %v4664_v6  ;;  %v3505_v4 = vpop.eup %3504 }
 0x57d   : > { %3040 = vmatpush.xpose.msk.msra.mxu1 %vm670_vm1, %v2486_v2  ;;  %v2484_v7 = vmul.f32 %v3505_v4, %v4655_v38  ;;  %v4834_v38 = vld [vmem:[%s5057_s10 + $0x8] sm:$0xff] }
 0x57e   : > { %3390 = vset.pattern.permute.xlu0 %v5123_v11 }
 0x57f   : > { %1238 = vperm.xlu0 %3390, %v4777_v10  }
 0x580   : > { %3004 = vmatpush.xpose.msk.msra.mxu2 %vm670_vm1, %v2075_v21 }
 0x581   : > { %3041 = vmatpush.xpose.msk.msra.mxu1 %vm670_vm1, %v2485_v51  ;;  %3381 = vset.pattern.permute.xlu2 %v5124_v24  ;;  %v3507_v49 = vpop.eup %3506 }
 0x582   : > { %v2028_v31 = vpop.xlane.xlu0 %2027  ;;  %1344 = vperm.xlu2 %3381, %v4777_v10   ;;  %v2483_v5 = vmul.f32 %v3507_v49, %v4671_v12  ;;  %v5125_v12 = vmov 7  }
 0x583   : > { %3508 = vrcp.f32 %v2028_v31  ;;  %3380 = vset.pattern.permute.xlu1 %v5123_v11 }
 0x584   : > { %1234 = vperm.xlu1 %3380, %v4754_v34  }
 0x585   : > { %3042 = vmatpush.xpose.msk.msra.mxu1 %vm670_vm1, %v2484_v7  ;;  %v817_v7 = vmul.f32 %v4485_v30, %v4257_v40 }
 0x587   : > { %1230 = vperm.xlu0 %3390, %v4761_v57  }
 0x589   : > { %v3509_v6 = vpop.eup %3508  ;;  %3043 = vmatpush.xpose.msk.msra.mxu1 %vm670_vm1, %v2483_v5 }
 0x58a   : > { %v2426_v9 = vpop.xlane.xlu2 %2425  ;;  %v2074_v37 = vmul.f32 %v3509_v6, %v4676_v52  ;;  %3383 = vset.pattern.permute.xlu2 %v5120_v43 }
 0x58b   : > { %3510 = vrcp.f32 %v2426_v9  ;;  %1450 = vperm.xlu2 %3383, %v4777_v10   ;;  %v819_v9 = vmul.f32 %v4500_v28, %v4267_v45 }
 0x58c   : > { %3382 = vset.pattern.permute.xlu1 %v5124_v24  ;;  %3005 = vmatpush.xpose.msk.msra.mxu2 %vm670_vm1, %v2074_v37 }
 0x58d   : > { %1340 = vperm.xlu1 %3382, %v4754_v34  }
 0x58f   : > { %2573 = vrot.lane.b32.xlu0 %v4834_v38, %s3662_s13 }
 0x590   : > { %3400 = vset.pattern.permute.xlu0 %v5125_v12 }
 0x591   : > { %v3511_v52 = vpop.eup %3510 }
 0x592   : > { %v2025_v27 = vpop.xlane.xlu1 %2024  ;;  %v2482_v41 = vmul.f32 %v3511_v52, %v4682_v29  ;;  %v2022_v33 = vpop.xlane.xlu2 %2021 }
 0x593   : > { %3512 = vrcp.f32 %v2025_v27  ;;  %3386 = vset.pattern.permute.xlu2 %v5125_v12 }
 0x594   : > { %3044 = vmatpush.xpose.msk.msra.mxu1 %vm670_vm1, %v2482_v41  ;;  %1552 = vperm.xlu2 %3386, %v4754_v34   ;;  %3514 = vrcp.f32 %v2022_v33 }
 0x595   : > { %3385 = vset.pattern.permute.xlu1 %v5125_v12 }
 0x596   : > { %1556 = vperm.xlu1 %3385, %v4777_v10  }
 0x597   : > { %1544 = vperm.xlu0 %3400, %v4746_v25  }
 0x599   : > { %v3513_v17 = vpop.eup %3512 }
 0x59a   : > { %v2423_v35 = vpop.xlane.xlu0 %2422  ;;  %v2073_v29 = vmul.f32 %v3513_v17, %v4689_v1  ;;  %v3515_v42 = vpop.eup %3514 }
 0x59b   : > { %3516 = vrcp.f32 %v2423_v35  ;;  %v2072_v22 = vmul.f32 %v3515_v42, %v4686_v8  ;;  %v1675_v8 = vld [vmem:[%s5056_s9 + $0x10] sm:$0xff] }
 0x59c   : > { %3388 = vset.pattern.permute.xlu2 %v5126_v19  ;;  %3006 = vmatpush.xpose.msk.msra.mxu2 %vm670_vm1, %v2073_v29 }
 0x59d   : > { %1658 = vperm.xlu2 %3388, %v4754_v34   ;;  %v4861_v34 = vld [vmem:[%s5057_s10] sm:$0xff] }
 0x59e   : > { %3387 = vset.pattern.permute.xlu1 %v5126_v19 }
 0x59f   : > { %1662 = vperm.xlu1 %3387, %v4777_v10   ;;  %3404 = vset.pattern.permute.xlu0 %v5121_v36 }
 0x5a0   : > { %3007 = vmatpush.xpose.msk.msra.mxu2 %vm670_vm1, %v2072_v22 }
 0x5a1   : > { %v3517_v46 = vpop.eup %3516 }
 0x5a2   : > { %v2019_v0 = vpop.xlane.xlu0 %2018  ;;  %v2420_v1 = vpop.xlane.xlu1 %2419  ;;  %v2481_v23 = vmul.f32 %v3517_v46, %v4697_v61 }
 0x5a3   : > { %3518 = vrcp.f32 %v2019_v0  ;;  %v4951_v46 = vpop.f32.mrf.mxu1 }
 0x5a4   : > { %3520 = vrcp.f32 %v2420_v1  ;;  %3045 = vmatpush.xpose.msk.msra.mxu1 %vm670_vm1, %v2481_v23 }
 0x5a5   : > { %2571 = vrot.lane.b32.xlu2 %v4861_v34, %s3662_s13 }
 0x5a6   : > { %3393 = vset.pattern.permute.xlu2 %v5122_v39 }
 0x5a7   : > { %3391 = vset.pattern.permute.xlu1 %v5121_v36 }
 0x5a8   : > { %1689 = vperm.xlu1 %3391, %v1675_v8   ;;  %v4955_v8 = vpop.f32.mrf.mxu2 }
 0x5a9   : > { %v3519_v61 = vpop.eup %3518 }
 0x5aa   : > { %v3521_v10 = vpop.eup %3520  ;;  %v2417_v18 = vpop.xlane.xlu2 %2416  ;;  %v2071_v2 = vmul.f32 %v3519_v61, %v4701_v26  ;;  %v1673_v26 = vld [vmem:[%s5056_s9] sm:$0xff] }
 0x5ab   : > { %3522 = vrcp.f32 %v2417_v18  ;;  %v2480_v15 = vmul.f32 %v3521_v10, %v4704_v55  ;;  %1679 = vperm.xlu0 %3404, %v1673_v26   ;;  %v4957_v10 = vpop.f32.mrf.mxu1 }
 0x5ac   : > { %3008 = vmatpush.xpose.msk.msra.mxu2 %vm670_vm1, %v2071_v2 }
 0x5ad   : > { %3046 = vmatpush.xpose.msk.msra.mxu1 %vm670_vm1, %v2480_v15  ;;  %1120 = vperm.xlu2 %3393, %v4746_v25  }
 0x5b0   : > { %3392 = vset.pattern.permute.xlu1 %v5122_v39  ;;  %v4959_v15 = vpop.f32.mrf.mxu2 }
 0x5b1   : > { %v3523_v21 = vpop.eup %3522  ;;  %1124 = vperm.xlu1 %3392, %v4761_v57  }
 0x5b2   : > { %v2010_v51 = vpop.xlane.xlu2 %2009  ;;  %v2016_v4 = vpop.xlane.xlu1 %2015  ;;  %v2479_v31 = vmul.f32 %v3523_v21, %v4714_v50 }
 0x5b3   : > { %3524 = vrcp.f32 %v2016_v4  ;;  %v5129_v4 = vld [vmem:[#allocation34_spill] sm:$0xff]  ;;  %v1619_v26 = vpop.f32.mrf.mxu1 }
 0x5b4   : > { %3047 = vmatpush.xpose.msk.msra.mxu1 %vm670_vm1, %v2479_v31  ;;  %v820_v31 = vmul.f32 %v5129_v4, %v4275_v58 }
 0x5b5   : > { %3395 = vset.pattern.permute.xlu2 %v5124_v24 }
 0x5b6   : > { %1336 = vperm.xlu2 %3395, %v4761_v57  }
 0x5b7   : > { %3048 = vmatmul.msk.f32.vlgmr.msra.gmra.mxu1 %vm670_vm1, %v4123_v3 }
 0x5b9   : > { %3394 = vset.pattern.permute.xlu1 %v5123_v11  ;;  %v3525_v55 = vpop.eup %3524 }
 0x5ba   : > { %1226 = vperm.xlu1 %3394, %v4746_v25   ;;  %v909_v50 = vpop.permute.xlu2 %908  ;;  %v2013_v39 = vpop.xlane.xlu0 %2012  ;;  %v2070_v5 = vmul.f32 %v3525_v55, %v4722_v20  ;;  %v5130_v55 = vld [vmem:[#allocation18_spill] sm:$0xff] }
 0x5bb   : > { %v923_v49 = vmul.f32 %v909_v50, %v4285_v53  ;;  %3526 = vrcp.f32 %v2013_v39  ;;  %v2007_v3 = vpop.xlane.xlu1 %2006 }
 0x5bc   : > { %3528 = vrcp.f32 %v2010_v51  ;;  %3009 = vmatpush.xpose.msk.msra.mxu2 %vm670_vm1, %v2070_v5  ;;  %v5131_v5 = vld [vmem:[#allocation21_spill] sm:$0xff] }
 0x5bd   : > { %v4893_v6 = vadd.f32 %v923_v49, %v817_v7  ;;  %3530 = vrcp.f32 %v2007_v3 }
 0x5be   : > { %3397 = vset.pattern.permute.xlu2 %v5120_v43 }
 0x5bf   : > { %3049 = vmatmul.msk.f32.gmra.mxu1 %vm670_vm1, %v4140_v14  ;;  %1442 = vperm.xlu2 %3397, %v4761_v57  }
 0x5c1   : > { %v3527_v11 = vpop.eup %3526 }
 0x5c2   : > { %3396 = vset.pattern.permute.xlu1 %v5124_v24  ;;  %v917_v40 = vpop.permute.xlu2 %916  ;;  %v2004_v53 = vpop.xlane.xlu0 %2003  ;;  %v2069_v30 = vmul.f32 %v3527_v11, %v4731_v60 }
 0x5c3   : > { %v3529_v20 = vpop.eup %3528  ;;  %v925_v37 = vmul.f32 %v917_v40, %v4299_v48  ;;  %1332 = vperm.xlu1 %3396, %v4746_v25   ;;  %3532 = vrcp.f32 %v2004_v53  ;;  %v5132_v40 = vld [vmem:[#allocation23_spill] sm:$0xff] }
 0x5c4   : > { %3010 = vmatpush.xpose.msk.msra.mxu2 %vm670_vm1, %v2069_v30  ;;  %v2068_v52 = vmul.f32 %v3529_v20, %v4719_v32  ;;  %v3531_v24 = vpop.eup %3530  ;;  %v1407_v30 = vpop.f32.mrf.mxu2 }
 0x5c5   : > { %v4907_v14 = vadd.f32 %v925_v37, %v819_v9  ;;  %v2067_v45 = vmul.f32 %v3531_v24, %v4729_v13  ;;  %v818_v13 = vmul.f32 %v4492_v62, %v4261_v44  ;;  %v1674_v44 = vld [vmem:[%s5056_s9 + $0x8] sm:$0xff]  ;;  %v4944_v62 = vld [vmem:[%s5057_s10 + $0x10] sm:$0xff]  ;;  %v5134_v37 = vld [vmem:[#allocation25_spill] sm:$0xff] }
 0x5c7   : > { %3399 = vset.pattern.permute.xlu2 %v5125_v12 }
 0x5c8   : > { %3011 = vmatpush.xpose.msk.msra.mxu2 %vm670_vm1, %v2068_v52  ;;  %1548 = vperm.xlu2 %3399, %v4761_v57   ;;  %v5135_v52 = vld [vmem:[#allocation24_spill] sm:$0xff] }
 0x5c9   : > { %v3533_v48 = vpop.eup %3532 }
 0x5ca   : > { %v1019_v60 = vpop.permute.xlu2 %1018  ;;  %v2066_v28 = vmul.f32 %v3533_v48, %v4737_v54  ;;  %v5136_v48 = vld [vmem:[#allocation28_spill] sm:$0xff] }
 0x5cb   : > { %3398 = vset.pattern.permute.xlu1 %v5120_v43  ;;  %v1030_v54 = vmul.f32 %v1019_v60, %v4295_v56 }
 0x5cc   : > { %1438 = vperm.xlu1 %3398, %v4746_v25   ;;  %3012 = vmatpush.xpose.msk.msra.mxu2 %vm670_vm1, %v2067_v45 }
 0x5d0   : > { %3013 = vmatpush.xpose.msk.msra.mxu2 %vm670_vm1, %v2066_v28  ;;  %3402 = vset.pattern.permute.xlu2 %v5126_v19 }
 0x5d1   : > { %1650 = vperm.xlu2 %3402, %v4746_v25  }
 0x5d2   : > { %v1027_v32 = vpop.permute.xlu2 %1026  ;;  %v913_v12 = vpop.permute.xlu1 %912 }
 0x5d3   : > { %v924_v27 = vmul.f32 %v913_v12, %v4293_v16  ;;  %3014 = vmatmul.msk.f32.vlgmr.msra.gmra.mxu2 %vm670_vm1, %v4089_v47  ;;  %v2642_v16 = vld [vmem:[%s5127_s23] sm:$0xff]  ;;  %v1032_v3 = vmul.f32 %v1027_v32, %v5131_v5 }
 0x5d4   : > { %3401 = vset.pattern.permute.xlu1 %v5126_v19 }
 0x5d5   : > { %v928_v43 = vadd.f32 %v924_v27, %v818_v13  ;;  %1654 = vperm.xlu1 %3401, %v4761_v57   ;;  %v2644_v57 = vld [vmem:[%s5128_s20 + $0x10] sm:$0xff]  ;;  %v1015_v42 = vpop.permute.xlu0 %1014  ;;  %v1622_v13 = vpop.f32.mrf.mxu1 }
 0x5d7   : > { %v4929_v41 = vadd.f32 %v1030_v54, %v928_v43  ;;  %v5137_v43 = vld [vmem:[#allocation29_spill] sm:$0xff] }
 0x5d9   : > { %3405 = vset.pattern.permute.xlu2 %v5121_v36 }
 0x5da   : > { %v921_v25 = vpop.permute.xlu1 %920  ;;  %v1129_v47 = vpop.permute.xlu2 %1128  ;;  %2575 = vrot.lane.b32.xlu2 %v4944_v62, %s3662_s13 }
 0x5db   : > { %3015 = vmatmul.msk.f32.gmra.mxu2 %vm670_vm1, %v4106_v59  ;;  %v926_v21 = vmul.f32 %v921_v25, %v4307_v63  ;;  %v5133_v63 = vld [vmem:[#allocation20_spill] sm:$0xff] }
 0x5dc   : > { %v1137_v20 = vmul.f32 %v1129_v47, %v5133_v63 }
 0x5dd   : > { %3403 = vset.pattern.permute.xlu1 %v5121_v36  ;;  %v930_v7 = vadd.f32 %v926_v21, %v820_v31  ;;  %v5138_v21 = vld [vmem:[#allocation33_spill] sm:$0xff] }
 0x5de   : > { %1684 = vperm.xlu1 %3403, %v1674_v44   ;;  %v1447_v0 = vpop.permute.xlu0 %1446 }
 0x5df   : > { %v1036_v9 = vadd.f32 %v1032_v3, %v930_v7  ;;  %v5140_v7 = vld [vmem:[#allocation15_spill] sm:$0xff] }
 0x5e0   : > { %v1029_v5 = vmul.f32 %v1015_v42, %v5140_v7 }
 0x5e2   : > { %v1345_v59 = vpop.permute.xlu2 %1344 }
 0x5e3   : > { %v1350_v25 = vmul.f32 %v1345_v59, %v5137_v43  ;;  %v5145_v43 = vld [vmem:[#allocation17_spill] sm:$0xff] }
 0x5e4   : > { %v1023_v56 = vpop.permute.xlu1 %1022 }
 0x5e5   : > { %v1031_v50 = vmul.f32 %v1023_v56, %v5130_v55  ;;  %v1410_v56 = vpop.f32.mrf.mxu2 }
 0x5e6   : > { %2647 = vperm.xlu1 %3403, %v2642_v16   ;;  %v1455_v16 = vmul.f32 %v1447_v0, %v1407_v30  ;;  %v5141_v0 = vld [vmem:[#allocation16_spill] sm:$0xff] }
 0x5e7   : > { %v1035_v11 = vadd.f32 %v1031_v50, %v4907_v14 }
 0x5e8   : > { %v1695_v61 = vpop.permute.xlu0 %1694 }
 0x5e9   : > { %v1141_v45 = vadd.f32 %v1137_v20, %v1035_v11 }
 0x5ea   : > { %v1451_v33 = vpop.permute.xlu2 %1450 }
 0x5ed   : > { %v1133_v36 = vpop.permute.xlu1 %1132 }
 0x5ee   : > { %2657 = vperm.xlu1 %3403, %v2644_v57   ;;  %v1138_v53 = vmul.f32 %v1133_v36, %v5132_v40  ;;  %v1456_v57 = vmul.f32 %v1451_v33, %v1410_v56  ;;  %v1033_v33 = vadd.f32 %v1029_v5, %v4893_v6  ;;  %v5144_v6 = vld [vmem:[#allocation30_spill] sm:$0xff] }
 0x5f0   : > { %v1142_v60 = vadd.f32 %v1138_v53, %v1036_v9 }
 0x5f1   : > { %v1239_v51 = vpop.permute.xlu0 %1238 }
 0x5f2   : > { %v1553_v35 = vpop.permute.xlu2 %1552  ;;  %v1244_v58 = vmul.f32 %v1239_v51, %v5134_v37  ;;  %v5139_v51 = vld [vmem:[#allocation32_spill] sm:$0xff] }
 0x5f3   : > { %v1561_v4 = vmul.f32 %v1553_v35, %v5139_v51 }
 0x5f4   : > { %v1248_v27 = vadd.f32 %v1244_v58, %v1142_v60 }
 0x5f6   : > { %v1235_v17 = vpop.permute.xlu1 %1234  ;;  %v1354_v47 = vadd.f32 %v1350_v25, %v1248_v27 }
 0x5f7   : > { %v1243_v24 = vmul.f32 %v1235_v17, %v5135_v52 }
 0x5f8   : > { %v1460_v31 = vadd.f32 %v1456_v57, %v1354_v47  ;;  %v5147_v57 = vld [vmem:[#allocation27_spill] sm:$0xff] }
 0x5f9   : > { %v1231_v12 = vpop.permute.xlu0 %1230  ;;  %v1247_v32 = vadd.f32 %v1243_v24, %v1141_v45 }
 0x5fa   : > { %v1659_v19 = vpop.permute.xlu2 %1658 }
 0x5fb   : > { %v1667_v53 = vmul.f32 %v1659_v19, %v1619_v26 }
 0x5ff   : > { %v1341_v29 = vpop.permute.xlu1 %1340 }
 0x600   : > { %v1349_v28 = vmul.f32 %v1341_v29, %v5136_v48 }
 0x601   : > { %v2574_v55 = vpop.permute.xlu0 %2573 }
 0x602   : > { %v4953_v1 = vpop.permute.xlu2 %2571  ;;  %v1353_v44 = vadd.f32 %v1349_v28, %v1247_v32 }
 0x604   : > { %v1459_v36 = vadd.f32 %v1455_v16, %v1353_v44  ;;  %v5146_v16 = vld [vmem:[#allocation22_spill] sm:$0xff] }
 0x605   : > { %v1242_v47 = vmul.f32 %v1231_v12, %v5146_v16  ;;  %v5148_v12 = vld [vmem:[#allocation31_spill] sm:$0xff] }
 0x606   : > { %v1565_v11 = vadd.f32 %v1561_v4, %v1459_v36 }
 0x608   : > { %v1557_v22 = vpop.permute.xlu1 %1556  ;;  %v1671_v20 = vadd.f32 %v1667_v53, %v1565_v11 }
 0x609   : > { %v1562_v17 = vmul.f32 %v1557_v22, %v5138_v21  ;;  %v5142_v22 = vld [vmem:[#allocation19_spill] sm:$0xff]  ;;  %v1545_v48 = vpop.permute.xlu0 %1544 }
 0x60a   : > { %v1121_v18 = vpop.permute.xlu2 %1120  ;;  %v1559_v27 = vmul.f32 %v1545_v48, %v5144_v6 }
 0x60b   : > { %v1566_v3 = vadd.f32 %v1562_v17, %v1460_v31  ;;  %v1135_v30 = vmul.f32 %v1121_v18, %v5141_v0 }
 0x60d   : > { %v1139_v35 = vadd.f32 %v1135_v30, %v1033_v33 }
 0x611   : > { %v1663_v23 = vpop.permute.xlu1 %1662 }
 0x612   : > { %v4965_v39 = vpop.permute.xlu2 %1336  ;;  %v1668_v29 = vmul.f32 %v1663_v23, %v1622_v13  ;;  %v5143_v23 = vld [vmem:[#allocation26_spill] sm:$0xff] }
 0x613   : > { %v1348_v36 = vmul.f32 %v4965_v39, %v5147_v57 }
 0x614   : > { %v1672_v63 = vadd.f32 %v1668_v29, %v1566_v3 }
 0x616   : > { %v1700_v52 = vadd.f32 %v1695_v61, %v1672_v63 }
 0x61a   : > { %v1690_v2 = vpop.permute.xlu1 %1689  ;;  %v1443_v54 = vpop.permute.xlu2 %1442 }
 0x61b   : > { %v1699_v37 = vadd.f32 %v1690_v2, %v1671_v20  ;;  %v1454_v51 = vmul.f32 %v1443_v54, %v4959_v15 }
 0x61d   : > { %v1680_v39 = vpop.permute.xlu0 %1679 }
 0x622   : > { %v1549_v59 = vpop.permute.xlu2 %1548 }
 0x623   : > { %v4967_v49 = vpop.permute.xlu1 %1124  ;;  %v1560_v4 = vmul.f32 %v1549_v59, %v5148_v12 }
 0x624   : > { %v1136_v25 = vmul.f32 %v4967_v49, %v5145_v43 }
 0x62b   : > { %v1651_v13 = vpop.permute.xlu2 %1650 }
 0x62c   : > { %v1227_v14 = vpop.permute.xlu1 %1226  ;;  %v1665_v2 = vmul.f32 %v1651_v13, %v4951_v46 }
 0x62d   : > { %v1241_v9 = vmul.f32 %v1227_v14, %v5142_v22 }
 0x62f   : > { %v1245_v42 = vadd.f32 %v1241_v9, %v1139_v35 }
 0x634   : > { %v2560_v50 = vpop.f32.mrf.mxu1  ;;  %v2576_v17 = vpop.permute.xlu2 %2575 }
 0x635   : > { %v1333_v40 = vpop.permute.xlu1 %1332  ;;  %v2561_v60 = vadd.f32 %v2560_v50, %v1699_v37 }
 0x636   : > { %v1347_v58 = vmul.f32 %v1333_v40, %v5143_v23 }
 0x637   : > { %v2566_v32 = vmax.f32 %v2561_v60, 0.0 }
 0x638   : > { %v1351_v19 = vadd.f32 %v1347_v58, %v1245_v42 }
 0x63c   : > { %v2563_v24 = vpop.f32.mrf.mxu1 }
 0x63d   : > { %v2564_v45 = vadd.f32 %v2563_v24, %v1700_v52 }
 0x63e   : > { %v1439_v28 = vpop.permute.xlu1 %1438 }
 0x63f   : > { %v2567_v26 = vmax.f32 %v2564_v45, 0.0  ;;  %v1453_v18 = vmul.f32 %v1439_v28, %v4955_v8  ;;  %v1140_v8 = vadd.f32 %v1136_v25, %v4929_v41  ;;  %v2643_v41 = vld [vmem:[%s5128_s20 + $0x8] sm:$0xff] }
 0x640   : > { %2652 = vperm.xlu2 %3405, %v2643_v41  }
 0x641   : > { %v1457_v14 = vadd.f32 %v1453_v18, %v1351_v19  ;;  %2598 = vmatpush.msrb.mxu2 %v2567_v26  ;;  %v1246_v56 = vadd.f32 %v1242_v47, %v1140_v8 }
 0x643   : > { %2599 = vmatpush.msrb.mxu2 %v2566_v32  ;;  %v1563_v61 = vadd.f32 %v1559_v27, %v1457_v14  ;;  %v1352_v21 = vadd.f32 %v1348_v36, %v1246_v56 }
 0x644   : > { %3050 = vmatmul.msk.f32.vlgmr.msrb.gmra.mxu2 %vm2577_vm3, %v4953_v1 }
 0x645   : > { %v1669_v44 = vadd.f32 %v1665_v2, %v1563_v61  ;;  %v1458_v1 = vadd.f32 %v1454_v51, %v1352_v21 }
 0x647   : > { %v1655_v46 = vpop.permute.xlu1 %1654  ;;  %v1564_v29 = vadd.f32 %v1560_v4, %v1458_v1  ;;  %v1697_v7 = vadd.f32 %v1680_v39, %v1669_v44 }
 0x648   : > { %v1666_v31 = vmul.f32 %v1655_v46, %v4957_v10 }
 0x64a   : > { %v1670_v50 = vadd.f32 %v1666_v31, %v1564_v29 }
 0x64c   : > { %3051 = vmatmul.msk.f32.gmra.mxu2 %vm2577_vm3, %v2574_v55 }
 0x650   : > { %v1685_v55 = vpop.permute.xlu1 %1684 }
 0x651   : > { %v1698_v15 = vadd.f32 %v1685_v55, %v1670_v50 }
 0x654   : > { %3052 = vmatmul.msk.f32.gmra.mxu2 %vm2577_vm3, %v2576_v17 }
 0x656   : > { %v2147_v49 = vpop.f32.mrf.mxu2 }
 0x657   : > { %v2148_v5 = vadd.f32 %v2147_v49, %v1697_v7 }
 0x658   : > { %v2648_v63 = vpop.permute.xlu1 %2647 }
 0x659   : > { %v2153_v40 = vmax.f32 %v2148_v5, 0.0 }
 0x65e   : > { %v2150_v54 = vpop.f32.mrf.mxu2 }
 0x65f   : > { %v2151_v3 = vadd.f32 %v2150_v54, %v1698_v15 }
 0x660   : > { %v2658_v37 = vpop.permute.xlu1 %2657 }
 0x661   : > { %v2154_v11 = vmax.f32 %v2151_v3, 0.0 }
 0x663   : > { %2630 = vmatpush.msra.mxu2 %v2154_v11 }
 0x665   : > { %2631 = vmatpush.msra.mxu2 %v2153_v40 }
 0x666   : > { %3053 = vmatmul.msk.f32.vlgmr.msra.gmra.mxu2 %vm2577_vm3, %v4861_v34 }
 0x66e   : > { %3054 = vmatmul.msk.f32.gmra.mxu2 %vm2577_vm3, %v4834_v38 }
 0x676   : > { %3055 = vmatmul.msk.f32.gmra.mxu2 %vm2577_vm3, %v4944_v62 }
 0x69a   : > { %v2653_v22 = vpop.permute.xlu2 %2652 }
 0x6c7   : > { %v2601_v10 = vpop.f32.mrf.mxu2 }
 0x6cf   : > { %v2604_v59 = vpop.f32.mrf.mxu2 }
 0x6d7   : > { %v2607_v53 = vpop.f32.mrf.mxu2 }
 0x6e9   : > { %v2633_v0 = vpop.f32.mrf.mxu2 }
 0x6ea   : > { %v2634_v30 = vadd.f32 %v2633_v0, %v2601_v10 }
 0x6ec   : > { %v2660_v33 = vadd.f32 %v2648_v63, %v2634_v30 }
 0x6ee   : > { %2663 = vst [vmem:[%s540_s11] sm:$0xff] %v2660_v33 }
 0x6f1   : > { %v2636_v20 = vpop.f32.mrf.mxu2 }
 0x6f2   : > { %v2637_v34 = vadd.f32 %v2636_v20, %v2604_v59 }
 0x6f4   : > { %v2661_v9 = vadd.f32 %v2653_v22, %v2637_v34 }
 0x6f5   : > { %v2709_v23 = vld [vmem:[%s540_s11] sm:$0xff] (%p3810_p12) }
 0x6f6   : > { %2664 = vst [vmem:[%s540_s11 + $0x8] sm:$0xff] %v2661_v9 }
 0x6f7   : > { %2710 = vst [vmem:[%s2676_s1] sm:$0xff] (%p3810_p12), %v2709_v23 }
 0x6f9   : > { %v2639_v38 = vpop.f32.mrf.mxu2 }
 0x6fa   : > { %v2640_v35 = vadd.f32 %v2639_v38, %v2607_v53  ;;  %2672 = sbr.rel (!%p3810_p12) target bundleno = 1799 (0x707), region = 114 }
 0x6fc   : > { %v2662_v62 = vadd.f32 %v2658_v37, %v2640_v35 }
 0x6fd   : > { %v2711_v58 = vld [vmem:[%s540_s11 + $0x8] sm:$0xff] (%p3810_p12) }
 0x6fe   : > { %2665 = vst [vmem:[%s540_s11 + $0x10] sm:$0xff] %v2662_v62 }
 0x6ff   : > { %2712 = vst [vmem:[%s2676_s1 + $0x10] sm:$0xff] %v2711_v58 }
 0x705   : > { %v2713_v52 = vld [vmem:[%s540_s11 + $0x10] sm:$0xff] }
 0x706   : > { %2714 = vst [vmem:[%s2676_s1 + $0x20] sm:$0xff] %v2713_v52 }
 0x707 PF: > { %s25_s30 = sadd.s32 1, %s3648_s30   ;;  %s5152_s21 = sld [smem:[#allocation7_spill]] }
 0x708   : > { %p22_p4 = scmp.ge.s32.totalorder %s25_s30, 6   ;;  %s5153_s22 = sld [smem:[#allocation13_spill]] }
 0x709   : > { %s5154_s27 = sld [smem:[#allocation12_spill]]  ;;  %s5158_s23 = smov %s3624_s24 }
 0x70a   : > { %s5155_s19 = sld [smem:[#allocation9_spill]]  ;;  %s5159_s24 = smov %s3628_s25 }
 0x70b   : > { %s5156_s13 = sld [smem:[#allocation10_spill]]  ;;  %s5161_s26 = smov %s3640_s28 }
 0x70c   : > { %s5157_s29 = sld [smem:[#allocation11_spill]] }
 0x70d   :  { %24 = sbr.rel (!%p22_p4) target bundleno = 10 (0xa), region = 203 }
 0x70f   : > { %s5160_s25 = smov %s5154_s27 }
 0x710   : > { %s5162_s27 = smov %s5155_s19 }
 0x711   : > { %s5163_s28 = smov %s5156_s13 }
 0x712   :  { %2730 = vsyncpa [#allocation4], 1 }
 0x713   :  { %2732 = vsyncpa [#allocation4 + $0x1], 1 }

</bundles_post_ra>
